<compile_context>
chip_gen: v7x
topology: tpu7x:2x2x1
jax: 0.10.0
libtpu: 0.0.40
codegen_flags: <defaults>
</compile_context>

<pallas_src>
import functools

import jax
import jax.numpy as jnp
from jax.experimental import pallas as pl
from jax.experimental.pallas import tpu as pltpu


def _inverted_residual_kernel(
    x_ref, w1_ref, b1_ref, wdwm_ref, b2_ref, w3_ref, b3_ref, o_ref,
    *, W, use_res,
):
    # x_ref: (inp, L) with L = T*H*W (T images concatenated on the lane axis).
    L = x_ref.shape[1]

    # ---- 1x1 expand conv (BN scale pre-folded) on the MXU + bias + ReLU6 ----
    h = jnp.dot(w1_ref[...], x_ref[...], preferred_element_type=jnp.float32)
    h = jnp.clip(h + b1_ref[...], 0.0, 6.0)                  # (hidden, L)

    # ---- 3x3 depthwise conv, stride 1, pad 1 (BN scale pre-folded) ----
    # Each tap: one XLU lane rotation + one FMA with a host-pre-masked weight
    # slab (masks are per-image via lane % HW and also kill cross-image wrap).
    acc = jnp.broadcast_to(b2_ref[...], h.shape)             # init with bias
    for ky in range(3):
        for kx in range(3):
            k = 3 * ky + kx
            d = (ky - 1) * W + (kx - 1)
            src = h if d == 0 else pltpu.roll(h, shift=(-d) % L, axis=1)
            acc = acc + src * wdwm_ref[k]
    acc = jnp.clip(acc, 0.0, 6.0)

    # ---- 1x1 project conv (BN scale pre-folded) on the MXU + bias ----
    y = jnp.dot(w3_ref[...], acc, preferred_element_type=jnp.float32)
    y = y + b3_ref[...]                                      # (oup, L)

    if use_res:
        y = y + x_ref[...]                                   # residual (reload from VMEM)
    o_ref[...] = y.astype(o_ref.dtype)                       # lane-dense unmasked stores


def _pick_images_per_step(N, HW, max_lanes=1024, min_steps=2):
    """Largest divisor T of N with T*HW <= max_lanes and >= min(min_steps, N) steps."""
    tmax = max(1, max_lanes // HW)
    need_steps = min(min_steps, N)
    best = 1
    for t in range(1, N + 1):
        if N % t == 0 and t <= tmax and (N // t) >= need_steps:
            best = t
    return best


def inverted_residual_pallas(x_nchw, params, *, H, W, inp, oup, hidden, use_res,
                             max_lanes=1024):
    N = x_nchw.shape[0]
    HW = H * W
    T = _pick_images_per_step(N, HW, max_lanes=max_lanes)
    steps = N // T
    L = T * HW

    (w1, b1, wdw, b2, w3, b3) = params    # wdw: (hidden, 9), BN scale pre-folded

    # Lane-axis batching: (N, C, H, W) -> (steps, C, T*HW).
    x = (x_nchw.astype(jnp.float32)
         .reshape(steps, T, inp, HW)
         .transpose(0, 2, 1, 3)
         .reshape(steps, inp, L))

    # Host-side pre-masked per-tap depthwise weights: (9, hidden, L).
    # row/col derived from lane % HW so masks stay per-image; the same masks
    # zero roll wrap across concatenated image boundaries.
    lane = jnp.arange(L)
    pos = lane % HW
    row, col = pos // W, pos % W
    tap_masks = []
    for ky in range(3):
        for kx in range(3):
            dy, dx = ky - 1, kx - 1
            valid = ((row + dy >= 0) & (row + dy < H) &
                     (col + dx >= 0) & (col + dx < W)).astype(jnp.float32)
            tap_masks.append(valid)
    mask = jnp.stack(tap_masks)                               # (9, L)
    wdw_masked = wdw.T[:, :, None] * mask[:, None, :]         # (9, hidden, L)

    kernel = functools.partial(_inverted_residual_kernel, W=W, use_res=use_res)

    const2 = lambda s: (0, 0)       # noqa: E731  weights stay VMEM-resident
    const3 = lambda s: (0, 0, 0)    # noqa: E731

    out = pl.pallas_call(
        kernel,
        out_shape=jax.ShapeDtypeStruct((steps, oup, L), jnp.float32),
        grid=(steps,),
        in_specs=[
            pl.BlockSpec((pl.Squeezed(), inp, L), lambda s: (s, 0, 0)),
            pl.BlockSpec((hidden, inp), const2),
            pl.BlockSpec((hidden, 1), const2),
            pl.BlockSpec((9, hidden, L), const3),
            pl.BlockSpec((hidden, 1), const2),
            pl.BlockSpec((oup, hidden), const2),
            pl.BlockSpec((oup, 1), const2),
        ],
        out_specs=pl.BlockSpec((pl.Squeezed(), oup, L), lambda s: (s, 0, 0)),
        compiler_params=pltpu.CompilerParams(dimension_semantics=("parallel",)),
    )(x, w1, b1, wdw_masked, b2, w3, b3)

    # (steps, oup, T*HW) -> NCHW.
    return (out.reshape(steps, oup, T, HW)
               .transpose(0, 2, 1, 3)
               .reshape(N, oup, H, W))


def _bn_fold(keys, C, eps=1e-5):
    kg, kb, km, kv = keys
    gamma = jax.random.uniform(kg, (C,), minval=0.5, maxval=1.5, dtype=jnp.float32)
    beta = jax.random.normal(kb, (C,), dtype=jnp.float32) * 0.1
    mean = jax.random.normal(km, (C,), dtype=jnp.float32) * 0.1
    var = jax.random.uniform(kv, (C,), minval=0.5, maxval=1.5, dtype=jnp.float32)
    scale = gamma / jnp.sqrt(var + eps)
    bias = beta - mean * scale
    return scale, bias


def _reference_forward(x_nchw, torch_params, *, H, W, use_res):
    """Pure-JAX reference matching PyTorch semantics (eval-mode BN)."""
    (w_expand, w_dw, w_proj, s1, b1, s2, b2, s3, b3) = torch_params
    x = jnp.transpose(x_nchw, (0, 2, 3, 1)).astype(jnp.float32)   # NHWC
    h = jnp.einsum("nhwc,cd->nhwd", x, w_expand.T)
    h = jnp.clip(h * s1 + b1, 0.0, 6.0)
    hp = jnp.pad(h, ((0, 0), (1, 1), (1, 1), (0, 0)))
    wdw_hwc = jnp.transpose(w_dw, (1, 2, 0))                      # (3,3,hidden)
    dw = jnp.zeros_like(h)
    for ky in range(3):
        for kx in range(3):
            dw = dw + hp[:, ky:ky + H, kx:kx + W, :] * wdw_hwc[ky, kx]
    dw = jnp.clip(dw * s2 + b2, 0.0, 6.0)
    y = jnp.einsum("nhwc,cd->nhwd", dw, w_proj.T)
    y = y * s3 + b3
    if use_res:
        y = y + x
    return jnp.transpose(y, (0, 3, 1, 2))


if __name__ == "__main__":
    # Module config: InvertedResidual(inp=4, oup=4, stride=1, expand_ratio=6)
    inp, oup, stride, expand_ratio = 4, 4, 1, 6
    hidden = int(inp * expand_ratio)          # 24
    use_res = (stride == 1 and inp == oup)    # True
    N, H, W = 8, 16, 16                       # -> T=4 images/step, grid=(2,)

    key = jax.random.PRNGKey(0)
    ks = jax.random.split(key, 16)

    # PyTorch-shaped conv weights (bias=False everywhere):
    w_expand = jax.random.normal(ks[0], (hidden, inp), dtype=jnp.float32) * 0.1   # (hid,inp,1,1)
    w_dw = jax.random.normal(ks[1], (hidden, 3, 3), dtype=jnp.float32) * 0.1      # (hid,1,3,3)
    w_proj = jax.random.normal(ks[2], (oup, hidden), dtype=jnp.float32) * 0.1     # (oup,hid,1,1)

    # Fold the three BatchNorms (eval mode) into per-channel scale/bias.
    s1, b1 = _bn_fold(jax.random.split(ks[3], 4), hidden)
    s2, b2 = _bn_fold(jax.random.split(ks[4], 4), hidden)
    s3, b3 = _bn_fold(jax.random.split(ks[5], 4), oup)

    # Kernel-layout parameters: BN scales folded into conv weights on the host,
    # biases kept as (C, 1) columns for lane-broadcast adds.
    w1_k = w_expand * s1[:, None]                                   # (hidden, inp)
    wdw_k = (w_dw * s2[:, None, None]).reshape(hidden, 9)           # (hidden, 9)
    w3_k = w_proj * s3[:, None]                                     # (oup, hidden)
    params = (
        w1_k, b1.reshape(hidden, 1),
        wdw_k, b2.reshape(hidden, 1),
        w3_k, b3.reshape(oup, 1),
    )

    # Input in PyTorch NCHW layout.
    x = jax.random.normal(ks[6], (N, inp, H, W), dtype=jnp.float32)

    out = inverted_residual_pallas(
        x, params, H=H, W=W, inp=inp, oup=oup, hidden=hidden, use_res=use_res)
    out = jax.block_until_ready(out)

    ref = _reference_forward(
        x, (w_expand, w_dw, w_proj, s1, b1, s2, b2, s3, b3), H=H, W=W, use_res=use_res)
    ref = jax.block_until_ready(ref)

    assert out.shape == (N, oup, H, W)
    assert jnp.allclose(out, ref, atol=2e-4, rtol=2e-4), float(jnp.max(jnp.abs(out - ref)))
    print("KERNEL_OK")
</pallas_src>

<mosaic_0001>
module attributes {stable_mosaic.version = 11 : i64} {
  func.func @_inverted_residual_kernel(%arg0: i32, %arg1: memref<1x4x1024xf32, #tpu.memory_space<vmem>>, %arg2: memref<24x4xf32, #tpu.memory_space<vmem>>, %arg3: memref<24x1xf32, #tpu.memory_space<vmem>>, %arg4: memref<9x24x1024xf32, #tpu.memory_space<vmem>>, %arg5: memref<24x1xf32, #tpu.memory_space<vmem>>, %arg6: memref<4x24xf32, #tpu.memory_space<vmem>>, %arg7: memref<4x1xf32, #tpu.memory_space<vmem>>, %arg8: memref<1x4x1024xf32, #tpu.memory_space<vmem>>) attributes {dimension_semantics = [#tpu.dimension_semantics<parallel>], iteration_bounds = array<i64: 2>, scalar_prefetch = 0 : i64, scratch_operands = 0 : i64, tpu.core_type = #tpu.core_type<tc>, window_params = [{transform_indices = @transform_0, window_bounds = array<i64: 1, 4, 1024>}, {pipeline_mode = #tpu.pipeline_mode<synchronous>, transform_indices = @transform_1, window_bounds = array<i64: 24, 4>}, {pipeline_mode = #tpu.pipeline_mode<synchronous>, transform_indices = @transform_2, window_bounds = array<i64: 24, 1>}, {pipeline_mode = #tpu.pipeline_mode<synchronous>, transform_indices = @transform_3, window_bounds = array<i64: 9, 24, 1024>}, {pipeline_mode = #tpu.pipeline_mode<synchronous>, transform_indices = @transform_4, window_bounds = array<i64: 24, 1>}, {pipeline_mode = #tpu.pipeline_mode<synchronous>, transform_indices = @transform_5, window_bounds = array<i64: 4, 24>}, {pipeline_mode = #tpu.pipeline_mode<synchronous>, transform_indices = @transform_6, window_bounds = array<i64: 4, 1>}, {transform_indices = @transform_7, window_bounds = array<i64: 1, 4, 1024>}]} {
    %c0 = arith.constant 0 : index
    %c0_0 = arith.constant 0 : index
    %0 = vector.load %arg2[%c0, %c0_0] : memref<24x4xf32, #tpu.memory_space<vmem>>, vector<24x4xf32>
    %c0_1 = arith.constant 0 : index
    %c0_2 = arith.constant 0 : index
    %c0_3 = arith.constant 0 : index
    %1 = vector.load %arg1[%c0_1, %c0_2, %c0_3] : memref<1x4x1024xf32, #tpu.memory_space<vmem>>, vector<1x4x1024xf32>
    %2 = vector.shape_cast %1 : vector<1x4x1024xf32> to vector<4x1024xf32>
    %cst = arith.constant dense<0.000000e+00> : vector<24x1024xf32>
    %3 = tpu.matmul %0, %2, %cst {dimension_numbers = #tpu.dot_dimension_numbers<[1], [0], [0], [1], [0, 0, 1, 1], [], []>} : vector<24x4xf32>, vector<4x1024xf32>, vector<24x1024xf32> -> vector<24x1024xf32>
    %c0_4 = arith.constant 0 : index
    %c0_5 = arith.constant 0 : index
    %4 = vector.load %arg3[%c0_4, %c0_5] : memref<24x1xf32, #tpu.memory_space<vmem>>, vector<24x1xf32>
    %5 = vector.broadcast %4 : vector<24x1xf32> to vector<24x1024xf32>
    %6 = arith.addf %3, %5 : vector<24x1024xf32>
    %cst_6 = arith.constant 0.000000e+00 : f32
    %cst_7 = arith.constant 6.000000e+00 : f32
    %7 = vector.broadcast %cst_6 : f32 to vector<24x1024xf32>
    %8 = arith.maximumf %7, %6 : vector<24x1024xf32>
    %9 = vector.broadcast %cst_7 : f32 to vector<24x1024xf32>
    %10 = arith.minimumf %9, %8 : vector<24x1024xf32>
    %c0_8 = arith.constant 0 : index
    %c0_9 = arith.constant 0 : index
    %11 = vector.load %arg5[%c0_8, %c0_9] : memref<24x1xf32, #tpu.memory_space<vmem>>, vector<24x1xf32>
    %12 = vector.shape_cast %11 : vector<24x1xf32> to vector<24x1xf32>
    %13 = vector.broadcast %12 : vector<24x1xf32> to vector<24x1024xf32>
    %c17_i32 = arith.constant 17 : i32
    %14 = tpu.dynamic_rotate %10 by %c17_i32 dim 1 : vector<24x1024xf32>, i32 -> vector<24x1024xf32>
    %c0_10 = arith.constant 0 : index
    %c0_11 = arith.constant 0 : index
    %c0_12 = arith.constant 0 : index
    %15 = vector.load %arg4[%c0_10, %c0_11, %c0_12] : memref<9x24x1024xf32, #tpu.memory_space<vmem>>, vector<1x24x1024xf32>
    %16 = vector.shape_cast %15 : vector<1x24x1024xf32> to vector<24x1024xf32>
    %17 = arith.mulf %14, %16 : vector<24x1024xf32>
    %18 = arith.addf %13, %17 : vector<24x1024xf32>
    %c16_i32 = arith.constant 16 : i32
    %19 = tpu.dynamic_rotate %10 by %c16_i32 dim 1 : vector<24x1024xf32>, i32 -> vector<24x1024xf32>
    %c1 = arith.constant 1 : index
    %c0_13 = arith.constant 0 : index
    %c0_14 = arith.constant 0 : index
    %20 = vector.load %arg4[%c1, %c0_13, %c0_14] : memref<9x24x1024xf32, #tpu.memory_space<vmem>>, vector<1x24x1024xf32>
    %21 = vector.shape_cast %20 : vector<1x24x1024xf32> to vector<24x1024xf32>
    %22 = arith.mulf %19, %21 : vector<24x1024xf32>
    %23 = arith.addf %18, %22 : vector<24x1024xf32>
    %c15_i32 = arith.constant 15 : i32
    %24 = tpu.dynamic_rotate %10 by %c15_i32 dim 1 : vector<24x1024xf32>, i32 -> vector<24x1024xf32>
    %c2 = arith.constant 2 : index
    %c0_15 = arith.constant 0 : index
    %c0_16 = arith.constant 0 : index
    %25 = vector.load %arg4[%c2, %c0_15, %c0_16] : memref<9x24x1024xf32, #tpu.memory_space<vmem>>, vector<1x24x1024xf32>
    %26 = vector.shape_cast %25 : vector<1x24x1024xf32> to vector<24x1024xf32>
    %27 = arith.mulf %24, %26 : vector<24x1024xf32>
    %28 = arith.addf %23, %27 : vector<24x1024xf32>
    %c1_i32 = arith.constant 1 : i32
    %29 = tpu.dynamic_rotate %10 by %c1_i32 dim 1 : vector<24x1024xf32>, i32 -> vector<24x1024xf32>
    %c3 = arith.constant 3 : index
    %c0_17 = arith.constant 0 : index
    %c0_18 = arith.constant 0 : index
    %30 = vector.load %arg4[%c3, %c0_17, %c0_18] : memref<9x24x1024xf32, #tpu.memory_space<vmem>>, vector<1x24x1024xf32>
    %31 = vector.shape_cast %30 : vector<1x24x1024xf32> to vector<24x1024xf32>
    %32 = arith.mulf %29, %31 : vector<24x1024xf32>
    %33 = arith.addf %28, %32 : vector<24x1024xf32>
    %c4 = arith.constant 4 : index
    %c0_19 = arith.constant 0 : index
    %c0_20 = arith.constant 0 : index
    %34 = vector.load %arg4[%c4, %c0_19, %c0_20] : memref<9x24x1024xf32, #tpu.memory_space<vmem>>, vector<1x24x1024xf32>
    %35 = vector.shape_cast %34 : vector<1x24x1024xf32> to vector<24x1024xf32>
    %36 = arith.mulf %10, %35 : vector<24x1024xf32>
    %37 = arith.addf %33, %36 : vector<24x1024xf32>
    %c1023_i32 = arith.constant 1023 : i32
    %38 = tpu.dynamic_rotate %10 by %c1023_i32 dim 1 : vector<24x1024xf32>, i32 -> vector<24x1024xf32>
    %c5 = arith.constant 5 : index
    %c0_21 = arith.constant 0 : index
    %c0_22 = arith.constant 0 : index
    %39 = vector.load %arg4[%c5, %c0_21, %c0_22] : memref<9x24x1024xf32, #tpu.memory_space<vmem>>, vector<1x24x1024xf32>
    %40 = vector.shape_cast %39 : vector<1x24x1024xf32> to vector<24x1024xf32>
    %41 = arith.mulf %38, %40 : vector<24x1024xf32>
    %42 = arith.addf %37, %41 : vector<24x1024xf32>
    %c1009_i32 = arith.constant 1009 : i32
    %43 = tpu.dynamic_rotate %10 by %c1009_i32 dim 1 : vector<24x1024xf32>, i32 -> vector<24x1024xf32>
    %c6 = arith.constant 6 : index
    %c0_23 = arith.constant 0 : index
    %c0_24 = arith.constant 0 : index
    %44 = vector.load %arg4[%c6, %c0_23, %c0_24] : memref<9x24x1024xf32, #tpu.memory_space<vmem>>, vector<1x24x1024xf32>
    %45 = vector.shape_cast %44 : vector<1x24x1024xf32> to vector<24x1024xf32>
    %46 = arith.mulf %43, %45 : vector<24x1024xf32>
    %47 = arith.addf %42, %46 : vector<24x1024xf32>
    %c1008_i32 = arith.constant 1008 : i32
    %48 = tpu.dynamic_rotate %10 by %c1008_i32 dim 1 : vector<24x1024xf32>, i32 -> vector<24x1024xf32>
    %c7 = arith.constant 7 : index
    %c0_25 = arith.constant 0 : index
    %c0_26 = arith.constant 0 : index
    %49 = vector.load %arg4[%c7, %c0_25, %c0_26] : memref<9x24x1024xf32, #tpu.memory_space<vmem>>, vector<1x24x1024xf32>
    %50 = vector.shape_cast %49 : vector<1x24x1024xf32> to vector<24x1024xf32>
    %51 = arith.mulf %48, %50 : vector<24x1024xf32>
    %52 = arith.addf %47, %51 : vector<24x1024xf32>
    %c1007_i32 = arith.constant 1007 : i32
    %53 = tpu.dynamic_rotate %10 by %c1007_i32 dim 1 : vector<24x1024xf32>, i32 -> vector<24x1024xf32>
    %c8 = arith.constant 8 : index
    %c0_27 = arith.constant 0 : index
    %c0_28 = arith.constant 0 : index
    %54 = vector.load %arg4[%c8, %c0_27, %c0_28] : memref<9x24x1024xf32, #tpu.memory_space<vmem>>, vector<1x24x1024xf32>
    %55 = vector.shape_cast %54 : vector<1x24x1024xf32> to vector<24x1024xf32>
    %56 = arith.mulf %53, %55 : vector<24x1024xf32>
    %57 = arith.addf %52, %56 : vector<24x1024xf32>
    %cst_29 = arith.constant 0.000000e+00 : f32
    %cst_30 = arith.constant 6.000000e+00 : f32
    %58 = vector.broadcast %cst_29 : f32 to vector<24x1024xf32>
    %59 = arith.maximumf %58, %57 : vector<24x1024xf32>
    %60 = vector.broadcast %cst_30 : f32 to vector<24x1024xf32>
    %61 = arith.minimumf %60, %59 : vector<24x1024xf32>
    %c0_31 = arith.constant 0 : index
    %c0_32 = arith.constant 0 : index
    %62 = vector.load %arg6[%c0_31, %c0_32] : memref<4x24xf32, #tpu.memory_space<vmem>>, vector<4x24xf32>
    %cst_33 = arith.constant dense<0.000000e+00> : vector<4x1024xf32>
    %63 = tpu.matmul %62, %61, %cst_33 {dimension_numbers = #tpu.dot_dimension_numbers<[1], [0], [0], [1], [0, 0, 1, 1], [], []>} : vector<4x24xf32>, vector<24x1024xf32>, vector<4x1024xf32> -> vector<4x1024xf32>
    %c0_34 = arith.constant 0 : index
    %c0_35 = arith.constant 0 : index
    %64 = vector.load %arg7[%c0_34, %c0_35] : memref<4x1xf32, #tpu.memory_space<vmem>>, vector<4x1xf32>
    %65 = vector.broadcast %64 : vector<4x1xf32> to vector<4x1024xf32>
    %66 = arith.addf %63, %65 : vector<4x1024xf32>
    %c0_36 = arith.constant 0 : index
    %c0_37 = arith.constant 0 : index
    %c0_38 = arith.constant 0 : index
    %67 = vector.load %arg1[%c0_36, %c0_37, %c0_38] : memref<1x4x1024xf32, #tpu.memory_space<vmem>>, vector<1x4x1024xf32>
    %68 = vector.shape_cast %67 : vector<1x4x1024xf32> to vector<4x1024xf32>
    %69 = arith.addf %66, %68 : vector<4x1024xf32>
    %c0_39 = arith.constant 0 : index
    %c0_40 = arith.constant 0 : index
    %c0_41 = arith.constant 0 : index
    %70 = vector.load %arg8[%c0_39, %c0_40, %c0_41] : memref<1x4x1024xf32, #tpu.memory_space<vmem>>, vector<1x4x1024xf32>
    %71 = vector.shape_cast %70 : vector<1x4x1024xf32> to vector<4x1024xf32>
    %72 = vector.shape_cast %69 : vector<4x1024xf32> to vector<1x4x1024xf32>
    tpu.vector_store %arg8[%c0_39, %c0_40, %c0_41], %72 {strides = array<i32>} : memref<1x4x1024xf32, #tpu.memory_space<vmem>>, vector<1x4x1024xf32>,
    return
  }
  func.func @transform_0(%arg0: i32) -> (i32, i32, i32) {
    %c0_i32 = arith.constant 0 : i32
    %c0_i32_0 = arith.constant 0 : i32
    %c0_i32_1 = arith.constant 0 : i32
    return %arg0, %c0_i32, %c0_i32_0 : i32, i32, i32
  }
  func.func @transform_1(%arg0: i32) -> (i32, i32) {
    %c0_i32 = arith.constant 0 : i32
    %c0_i32_0 = arith.constant 0 : i32
    %c0_i32_1 = arith.constant 0 : i32
    return %c0_i32, %c0_i32_0 : i32, i32
  }
  func.func @transform_2(%arg0: i32) -> (i32, i32) {
    %c0_i32 = arith.constant 0 : i32
    %c0_i32_0 = arith.constant 0 : i32
    %c0_i32_1 = arith.constant 0 : i32
    return %c0_i32, %c0_i32_0 : i32, i32
  }
  func.func @transform_3(%arg0: i32) -> (i32, i32, i32) {
    %c0_i32 = arith.constant 0 : i32
    %c0_i32_0 = arith.constant 0 : i32
    %c0_i32_1 = arith.constant 0 : i32
    %c0_i32_2 = arith.constant 0 : i32
    return %c0_i32, %c0_i32_0, %c0_i32_1 : i32, i32, i32
  }
  func.func @transform_4(%arg0: i32) -> (i32, i32) {
    %c0_i32 = arith.constant 0 : i32
    %c0_i32_0 = arith.constant 0 : i32
    %c0_i32_1 = arith.constant 0 : i32
    return %c0_i32, %c0_i32_0 : i32, i32
  }
  func.func @transform_5(%arg0: i32) -> (i32, i32) {
    %c0_i32 = arith.constant 0 : i32
    %c0_i32_0 = arith.constant 0 : i32
    %c0_i32_1 = arith.constant 0 : i32
    return %c0_i32, %c0_i32_0 : i32, i32
  }
  func.func @transform_6(%arg0: i32) -> (i32, i32) {
    %c0_i32 = arith.constant 0 : i32
    %c0_i32_0 = arith.constant 0 : i32
    %c0_i32_1 = arith.constant 0 : i32
    return %c0_i32, %c0_i32_0 : i32, i32
  }
  func.func @transform_7(%arg0: i32) -> (i32, i32, i32) {
    %c0_i32 = arith.constant 0 : i32
    %c0_i32_0 = arith.constant 0 : i32
    %c0_i32_1 = arith.constant 0 : i32
    return %arg0, %c0_i32, %c0_i32_0 : i32, i32, i32
  }
}

</mosaic_0001>

<bundles_post_ra>
// kernel: tpu_custom_call.1
= control target key start
LH: loop header
LB: loop body
LE: loop exit
PB: predicated region body
PF: predicated region fallthrough
CT: control target
= control target key end

     0   :  { %12 = vsyncpa [#allocation3], 0  ;;  %s4739_s0 = inlined_call_operand.vmem [shape: f32[2,4,1024], index: 0, kind: input, shape index: {}]   ;;  %s4740_s1 = inlined_call_operand.vmem [shape: f32[24,4], index: 1, kind: input, shape index: {}]   ;;  %s4741_s2 = inlined_call_operand.vmem [shape: f32[24,1], index: 2, kind: input, shape index: {}]   ;;  %s4742_s3 = inlined_call_operand.hbm [shape: f32[9,24,1024], index: 3, kind: input, shape index: {}]   ;;  %s4743_s4 = inlined_call_operand.vmem [shape: f32[24,1], index: 4, kind: input, shape index: {}]   ;;  %s4744_s5 = inlined_call_operand.vmem [shape: f32[4,24], index: 5, kind: input, shape index: {}]   ;;  %s4745_s6 = inlined_call_operand.vmem [shape: f32[4,1], index: 6, kind: input, shape index: {}]   ;;  %s4746_s7 = inlined_call_operand.hbm [shape: f32[2,4,1024], index: 7, kind: output, shape index: {}]  }
   0x1   :  { %13 = vsyncpa [#allocation4], 0 }
   0x2   :  { %15 = vsyncpa [#allocation4 + $0x1], 0  ;;  %s2731_s24 = smov 0   ;;  %s2733_s25 = smov 0  }
   0x3   :  { %s2735_s26 = smov 0   ;;  %s2737_s27 = smov 0  }
   0x4 LB: > { %s2752_s28 = sadd.s32 4294967295, %s2675_s27   ;;  %s2453_s29 = sadd.s32 4294967294, %s2675_s27   ;;  %s2675_s27 = sphi %s2737_s27, %s5209_s27   ;;  %s2671_s26 = sphi %s2735_s26, %s5208_s26   ;;  %s2667_s25 = sphi %s2733_s25, %s5207_s25   ;;  %s2663_s24 = sphi %s2731_s24, %s5206_s24  }
   0x5   : > { %s2756_s30 = sadd.s32 1, %s2675_s27   ;;  %s180_s8 = sadd.s32 1, %s2671_s26 }
   0x6   : > { %s177_s9 = ssub.s32 %s2675_s27, %s2756_s30  ;;  %p190_p0 = scmp.ne.s32.totalorder %s2671_s26, %s2667_s25 }
   0x7   : > { %p178_p1 = scmp.eq.s32.totalorder %s177_s9, 0  ;;  %p191_p2 = scmp.eq.s32.totalorder %s2752_s28, 1 }
   0x8   : > { %p196_p3 = scmp.ne.s32.totalorder %s2667_s25, %s2663_s24  ;;  %p197_p4 = scmp.eq.s32.totalorder %s2453_s29, 1 }
   0x9   : > { %s2767_s10 = scalar_select %p178_p1, %s2671_s26, %s180_s8  }
   0xa   : > { %p2769_p5 = por %p191_p2, %p190_p0  ;;  %p2773_p6 = por %p197_p4, %p196_p3 }
   0xb   : > { %p2454_p7 = scmp.ge.s32.totalorder %s2675_s27, 1  ;;  %p204_p8 = scmp.lt.s32.totalorder %s2675_s27, 3 }
   0xc   : > { %s4879_s11 = scalar_select %p2769_p5, 1, 0 }
   0xd   : > { %s4880_s12 = scalar_select %p2773_p6, 1, 0 }
   0xe   : > { %p4747_p9 = scmp.eq.s32.totalorder %s2752_s28, 0  ;;  %p2780_p10 = pnand %p2454_p7, %p204_p8 }
   0xf   : > { %s2677_s14 = smov [#allocation2]   ;;  %s2581_s19 = scalar_lea.hbm %s4742_s3, 27648 }
  0x10   : > { %s4881_s13 = scalar_select %p2780_p10, 1, 0 }
  0x11   : > { %s222_s15 = sshll.u32 %s2677_s14, 4  ;;  %p2515_p11 = pneg %p2780_p10  ;;  %s223_s15 = int_to_ptr.vmem [resolvable:$true] %s222_s15 }
  0x12   : > { %p2582_p13 = scmp.ne.s32.totalorder %s4742_s3, %s2581_s19  ;;  %p2588_p3 = scmp.lt.u32.totalorder %s2581_s19, %s4742_s3 }
  0x13   : > { %p2788_p12 = pnand %p4747_p9, %p2515_p11 }
  0x15   : > { %p2583_p0 = pneg %p2788_p12 }
  0x17   : > { %p2584_p1 = pnand %p2583_p0, %p2582_p13 }
  0x19   : > { %p2585_p2 = pneg %p2584_p1 }
  0x1b   : > { %p2590_p4 = pnand %p2588_p3, %p2585_p2 }
  0x1d   : > { %2593 = shalt.err (!%p2590_p4)
}
  0x1e   : > { %s2594_s29 = scalar_lea.vmem %s223_s15, 27648  ;;  %p2602_p9 = scmp.lt.s32.totalorder %s223_s15, %s223_s15 }
  0x1f   : > { %p2595_p7 = scmp.ne.s32.totalorder %s223_s15, %s2594_s29  ;;  %p2603_p6 = scmp.lt.s32.totalorder %s2594_s29, %s2594_s29 }
  0x21   : > { %p2597_p8 = pnand %p2595_p7, %p2583_p0  ;;  %p2604_p5 = por %p2603_p6, %p2602_p9 }
  0x23   : > { %p2598_p11 = pneg %p2597_p8 }
  0x25   : > { %p2605_p10 = pnand %p2604_p5, %p2598_p11 }
  0x27   : > { %2608 = shalt.err (!%p2605_p10)
}
  0x28   : > { %s2678_s8 = smov 1024   ;;  %s2679_s9 = smov 64  }
  0x29   : > { %2518 = dma.hbm_to_vmem [thread:$0]  (!%p2788_p12), %s4742_s3, 27648, %s223_s15, [#allocation3], %s2678_s8, %s2678_s8, %s2679_s9  }
  0x2a   : > { %p4883_p13 = scmp.ne.s32.totalorder %s4881_s13, 0 }
  0x2c   : > { %255 = sbr.rel (%p4883_p13) target bundleno = 1024 (0x400), region = 48 }
  0x33   : > { %p4884_p1 = scmp.eq.s32.totalorder %s2752_s28, 0 }
  0x35   : > { %2654 = dma.done.wait (%p4884_p1), [#allocation3], 27648   ;;  %p4885_p0 = pmov %p4884_p1 }
  0x36   : > { %p287_p5 = scmp.lt.s32.totalorder %s2752_s28, 1  ;;  %v4750_v0 = vmov 0.0   ;;  %v2681_v1 = vmov 0   ;;  %vm335_vm0 = vcmask 1043456   ;;  %v292_v7 = vld [vmem:[%s4740_s1] sm:$0xff]  ;;  %vm325_vm1 = vcmask 31744  }
  0x37   : > { %2656 = vsyncadd (%p4885_p0), [#allocation3], 4294939648  ;;  %416 = vmatprep.mubr.f32.mxu0 %v4750_v0  ;;  %499 = vmatprep.mubr.f32.mxu1 %v4750_v0  ;;  %v293_v11 = vld [vmem:[%s4740_s1 + $0x8] sm:$0xff]  ;;  %v299_v12 = vld [vmem:[%s4741_s2] sm:$0xff]  ;;  %s2682_s8 = smov 15   ;;  %s2683_s9 = smov 17  }
  0x38   : > { %s288_s16 = scalar_select %p287_p5, %s2752_s28, 1  ;;  %2571 = vset.pattern.permute.xlu0 %v2681_v1  ;;  %2572 = vset.pattern.permute.xlu1 %v2681_v1  ;;  %v301_v13 = vld [vmem:[%s4741_s2 + $0x10] sm:$0xff]  ;;  %v300_v15 = vld [vmem:[%s4741_s2 + $0x8] sm:$0xff]  ;;  %v732_v16 = vld [vmem:[%s4743_s4] sm:$0xff]  ;;  %vm2047_vm10 = vcmask 195584  }
  0x39   : > { %v294_v14 = vld [vmem:[%s4740_s1 + $0x10] sm:$0xff]  ;;  %304 = vperm.xlu0 %2571, %v299_v12   ;;  %314 = vperm.xlu1 %2572, %v301_v13   ;;  %v733_v17 = vld [vmem:[%s4743_s4 + $0x8] sm:$0xff]  ;;  %s2684_s14 = smov 1   ;;  %s2685_s17 = smov 16  }
  0x3a   : > { %s2491_s13 = sshll.u32 %s288_s16, 5  ;;  %v734_v18 = vld [vmem:[%s4743_s4 + $0x10] sm:$0xff]  ;;  %s2686_s16 = smov 127  }
  0x3b   : > { %s2821_s19 = scalar_lea.vmem %s4739_s0, %s2491_s13  ;;  %s2687_s13 = smov 113  }
  0x3c   : > { %v295_v2 = vld [vmem:[%s2821_s19] sm:$0xff]  ;;  %v296_v3 = vld [vmem:[%s2821_s19 + $0x8] sm:$0xff]  ;;  %v297_v6 = vld [vmem:[%s2821_s19 + $0x10] sm:$0xff]  ;;  %s2688_s15 = smov 112   ;;  %s2689_s18 = smov 111  }
  0x3d   : > { %v2825_v4 = vcombine.high %v295_v2, %v295_v2  ;;  %v2827_v5 = vcombine.high %v296_v3, %v296_v3  ;;  %v298_v8 = vld [vmem:[%s2821_s19 + $0x18] sm:$0xff]  ;;  %v2838_v9 = vcombine.high %v297_v6, %v297_v6  ;;  %309 = vperm.xlu0 %2571, %v300_v15   ;;  %737 = vperm.xlu1 %2572, %v732_v16   ;;  %s284_s29 = sand.u32 1, %s2667_s25   ;;  %p5204_p9 = scmp.ne.s32.totalorder %s4879_s11, 0 }
  0x3e   : > { %v2840_v10 = vcombine.high %v298_v8, %v298_v8 }
  0x3f   : > { %4886 = vst [vmem:[#allocation8_spill] sm:$0xff] %v2825_v4  ;;  %4887 = vst [vmem:[#allocation9_spill] sm:$0xff] %v2827_v5  ;;  %2462 = vmatprep.subr.msk.mxu0 %vm335_vm0, %v2825_v4  ;;  %2467 = vmatprep.subr.msk.mxu1 %vm335_vm0, %v2827_v5 }
  0x40   : > { %4888 = vst [vmem:[#allocation10_spill] sm:$0xff] %v2838_v9  ;;  %4889 = vst [vmem:[#allocation11_spill] sm:$0xff] %v2840_v10  ;;  %2463 = vmatpush1.msk.msra.mxu0 %vm335_vm0, %v295_v2  ;;  %2468 = vmatpush1.msk.msra.mxu1 %vm335_vm0, %v296_v3 }
  0x41   : > { %2464 = vmatmul.mubr.msk.f32.vlgmr.msra.gmra.mrb[0].mxu0 %vm325_vm1, %v292_v7  ;;  %2469 = vmatmul.mubr.msk.f32.vlgmr.msra.gmra.mrb[0].mxu1 %vm325_vm1, %v292_v7 }
  0x42   : > { %422 = vmatprep.mubr.f32.mxu0 %v4750_v0  ;;  %505 = vmatprep.mubr.f32.mxu1 %v4750_v0 }
  0x43   : > { %2472 = vmatprep.subr.msk.mxu0 %vm335_vm0, %v2838_v9  ;;  %2477 = vmatprep.subr.msk.mxu1 %vm335_vm0, %v2840_v10 }
  0x44   : > { %2473 = vmatpush1.msk.msra.mxu0 %vm335_vm0, %v297_v6  ;;  %2478 = vmatpush1.msk.msra.mxu1 %vm335_vm0, %v298_v8 }
  0x45   : > { %2465 = vmatmul.mubr.msk.f32.gmra.mrb[2].mxu0 %vm325_vm1, %v293_v11  ;;  %2470 = vmatmul.mubr.msk.f32.gmra.mrb[2].mxu1 %vm325_vm1, %v293_v11 }
  0x46   : > { %428 = vmatprep.mubr.f32.mxu0 %v4750_v0  ;;  %511 = vmatprep.mubr.f32.mxu1 %v4750_v0 }
  0x47   : > { %742 = vperm.xlu0 %2571, %v733_v17   ;;  %747 = vperm.xlu1 %2572, %v734_v18  }
  0x49   : > { %2466 = vmatmul.mubr.msk.f32.gmra.mrb[4].mxu0 %vm325_vm1, %v294_v14  ;;  %2471 = vmatmul.mubr.msk.f32.gmra.mrb[4].mxu1 %vm325_vm1, %v294_v14 }
  0x4a   : > { %582 = vmatprep.mubr.f32.mxu0 %v4750_v0  ;;  %665 = vmatprep.mubr.f32.mxu1 %v4750_v0 }
  0x4d   : > { %2474 = vmatmul.mubr.msk.f32.vlgmr.msra.gmra.mrb[6].mxu0 %vm325_vm1, %v292_v7  ;;  %2479 = vmatmul.mubr.msk.f32.vlgmr.msra.gmra.mrb[6].mxu1 %vm325_vm1, %v292_v7 }
  0x4e   : > { %588 = vmatprep.mubr.f32.mxu0 %v4750_v0  ;;  %671 = vmatprep.mubr.f32.mxu1 %v4750_v0 }
  0x51   : > { %2475 = vmatmul.mubr.msk.f32.gmra.mrb[8].mxu0 %vm325_vm1, %v293_v11  ;;  %2480 = vmatmul.mubr.msk.f32.gmra.mrb[8].mxu1 %vm325_vm1, %v293_v11 }
  0x52   : > { %594 = vmatprep.mubr.f32.mxu0 %v4750_v0  ;;  %677 = vmatprep.mubr.f32.mxu1 %v4750_v0 }
  0x55   : > { %2476 = vmatmul.mubr.msk.f32.gmra.mrb[10].mxu0 %vm325_vm1, %v294_v14  ;;  %2481 = vmatmul.mubr.msk.f32.gmra.mrb[10].mxu1 %vm325_vm1, %v294_v14 }
  0x56   : > { %2186 = vmatprep.mubr.f32.mxu1 %v4750_v0  ;;  %2115 = vmatprep.mubr.f32.mxu0 %v4750_v0 }
  0xb8   : > { %v2898_v19 = vpop.permute.xlu0 %304  ;;  %v3064_v8 = vpop.permute.xlu1 %314 }
  0xbc   : > { %v2988_v56 = vpop.permute.xlu0 %309  ;;  %v3072_v12 = vpop.permute.xlu1 %737 }
  0xbd   : > { %4890 = vst [vmem:[#allocation12_spill] sm:$0xff] %v3072_v12 }
  0xc6   : > { %v3084_v15 = vpop.permute.xlu0 %742 }
 0x114   : > { %v418_v20 = vpop.f32.mrb[0].mxu0  ;;  %v501_v21 = vpop.f32.mrb[0].mxu1 }
 0x115   : > { %v419_v22 = vadd.f32 %v418_v20, %v2898_v19  ;;  %v502_v23 = vadd.f32 %v501_v21, %v2898_v19  ;;  %v420_v24 = vpop.f32.mrb[1].mxu0  ;;  %v503_v25 = vpop.f32.mrb[1].mxu1 }
 0x116   : > { %v421_v48 = vadd.f32 %v420_v24, %v2898_v19  ;;  %v504_v52 = vadd.f32 %v503_v25, %v2898_v19  ;;  %v3090_v20 = vpop.permute.xlu1 %747 }
 0x117   : > { %v684_v26 = vmax.f32 %v419_v22, 0.0  ;;  %v686_v30 = vmax.f32 %v502_v23, 0.0  ;;  %4891 = vst [vmem:[#allocation13_spill] sm:$0xff] %v3090_v20 }
 0x118   : > { %v424_v27 = vpop.f32.mrb[2].mxu0  ;;  %v507_v28 = vpop.f32.mrb[2].mxu1  ;;  %v685_v51 = vmax.f32 %v421_v48, 0.0  ;;  %v687_v54 = vmax.f32 %v504_v52, 0.0 }
 0x119   : > { %v2902_v29 = vmin.f32 %v684_v26, 6.0  ;;  %v2904_v31 = vpop.f32.mrb[3].mxu0  ;;  %v2906_v32 = vpop.f32.mrb[3].mxu1  ;;  %v2916_v35 = vmin.f32 %v686_v30, 6.0  ;;  %v425_v57 = vadd.f32 %v424_v27, %v2988_v56  ;;  %v508_v59 = vadd.f32 %v507_v28, %v2988_v56 }
 0x11a   : > { %v2968_v53 = vmin.f32 %v685_v51, 6.0  ;;  %v2974_v55 = vmin.f32 %v687_v54, 6.0  ;;  %v427_v63 = vadd.f32 %v2904_v31, %v2988_v56  ;;  %v510_v2 = vadd.f32 %v2906_v32, %v2988_v56 }
 0x11b   : > { %1043 = vrot.lane.b32.xlu1 %v2902_v29, %s2682_s8  ;;  %750 = vrot.lane.b32.xlu0 %v2902_v29, %s2683_s9  ;;  %v692_v58 = vmax.f32 %v425_v57, 0.0  ;;  %v694_v61 = vmax.f32 %v508_v59, 0.0 }
 0x11c   : > { %v2912_v33 = vpop.f32.mrb[4].mxu0  ;;  %v2914_v34 = vpop.f32.mrb[4].mxu1  ;;  %v693_v1 = vmax.f32 %v427_v63, 0.0  ;;  %v695_v6 = vmax.f32 %v510_v2, 0.0 }
 0x11d   : > { %v2918_v36 = vpop.f32.mrb[5].mxu0  ;;  %v2920_v37 = vpop.f32.mrb[5].mxu1  ;;  %v3000_v60 = vmin.f32 %v692_v58, 6.0  ;;  %v3006_v62 = vmin.f32 %v694_v61, 6.0  ;;  %v431_v11 = vadd.f32 %v2912_v33, %v3064_v8  ;;  %v514_v13 = vadd.f32 %v2914_v34, %v3064_v8 }
 0x11e   : > { %v3032_v3 = vmin.f32 %v693_v1, 6.0  ;;  %v3038_v7 = vmin.f32 %v695_v6, 6.0  ;;  %v433_v16 = vadd.f32 %v2918_v36, %v3064_v8  ;;  %v516_v21 = vadd.f32 %v2920_v37, %v3064_v8 }
 0x11f   : > { %1055 = vrot.lane.b32.xlu1 %v2916_v35, %s2682_s8  ;;  %762 = vrot.lane.b32.xlu0 %v2916_v35, %s2683_s9  ;;  %v700_v14 = vmax.f32 %v431_v11, 0.0  ;;  %v702_v17 = vmax.f32 %v514_v13, 0.0 }
 0x120   : > { %v2926_v38 = vpop.f32.mrb[6].mxu0  ;;  %v2928_v39 = vpop.f32.mrb[6].mxu1  ;;  %v701_v22 = vmax.f32 %v433_v16, 0.0  ;;  %v703_v26 = vmax.f32 %v516_v21, 0.0 }
 0x121   : > { %v2930_v40 = vpop.f32.mrb[7].mxu0  ;;  %v2932_v41 = vpop.f32.mrb[7].mxu1  ;;  %v3088_v18 = vmin.f32 %v700_v14, 6.0  ;;  %v3098_v23 = vmin.f32 %v702_v17, 6.0  ;;  %v585_v51 = vadd.f32 %v2926_v38, %v2898_v19  ;;  %v668_v58 = vadd.f32 %v2928_v39, %v2898_v19 }
 0x122   : > { %v3108_v27 = vmin.f32 %v701_v22, 6.0  ;;  %v3118_v31 = vmin.f32 %v703_v26, 6.0  ;;  %v587_v6 = vadd.f32 %v2930_v40, %v2898_v19  ;;  %v670_v16 = vadd.f32 %v2932_v41, %v2898_v19 }
 0x123   : > { %1189 = vrot.lane.b32.xlu1 %v2902_v29, %s2684_s14  ;;  %897 = vrot.lane.b32.xlu0 %v2902_v29, %s2685_s17  ;;  %4892 = vst [vmem:[#allocation14_spill] sm:$0xff] %v3098_v23  ;;  %v688_v57 = vmax.f32 %v585_v51, 0.0  ;;  %v690_v63 = vmax.f32 %v668_v58, 0.0 }
 0x124   : > { %v2938_v42 = vpop.f32.mrb[8].mxu0  ;;  %v2940_v43 = vpop.f32.mrb[8].mxu1  ;;  %4894 = vst [vmem:[#allocation16_spill] sm:$0xff] %v3108_v27  ;;  %4896 = vst [vmem:[#allocation18_spill] sm:$0xff] %v3118_v31  ;;  %v689_v14 = vmax.f32 %v587_v6, 0.0  ;;  %v691_v22 = vmax.f32 %v670_v16, 0.0 }
 0x125   : > { %v2942_v44 = vpop.f32.mrb[9].mxu0  ;;  %v2944_v45 = vpop.f32.mrb[9].mxu1  ;;  %v3164_v38 = vmin.f32 %v688_v57, 6.0  ;;  %v3174_v39 = vmin.f32 %v690_v63, 6.0  ;;  %v591_v16 = vadd.f32 %v2938_v42, %v2988_v56  ;;  %v674_v10 = vadd.f32 %v2940_v43, %v2988_v56 }
 0x126   : > { %v3196_v40 = vmin.f32 %v689_v14, 6.0  ;;  %v3206_v19 = vmin.f32 %v691_v22, 6.0 }
 0x127   : > { %1201 = vrot.lane.b32.xlu1 %v2916_v35, %s2684_s14  ;;  %909 = vrot.lane.b32.xlu0 %v2916_v35, %s2685_s17  ;;  %4905 = vst [vmem:[#allocation27_spill] sm:$0xff] %v3164_v38  ;;  %4908 = vst [vmem:[#allocation30_spill] sm:$0xff] %v3174_v39  ;;  %v696_v9 = vmax.f32 %v591_v16, 0.0 }
 0x128   : > { %v2950_v46 = vpop.f32.mrb[10].mxu0  ;;  %v2952_v47 = vpop.f32.mrb[10].mxu1  ;;  %4913 = vst [vmem:[#allocation35_spill] sm:$0xff] %v3206_v19 }
 0x129   : > { %v2955_v49 = vpop.f32.mrb[11].mxu0  ;;  %v2957_v50 = vpop.f32.mrb[11].mxu1  ;;  %v3252_v42 = vmin.f32 %v696_v9, 6.0 }
 0x12b   : > { %1420 = vrot.lane.b32.xlu1 %v2916_v35, %s2686_s16  ;;  %1408 = vrot.lane.b32.xlu0 %v2902_v29, %s2686_s16 }
 0x12f   : > { %1554 = vrot.lane.b32.xlu1 %v2902_v29, %s2687_s13  ;;  %1566 = vrot.lane.b32.xlu0 %v2916_v35, %s2687_s13 }
 0x133   : > { %756 = vrot.lane.b32.xlu1 %v2968_v53, %s2683_s9  ;;  %1712 = vrot.lane.b32.xlu0 %v2916_v35, %s2688_s15 }
 0x137   : > { %768 = vrot.lane.b32.xlu1 %v2974_v55, %s2683_s9  ;;  %1700 = vrot.lane.b32.xlu0 %v2902_v29, %s2688_s15 }
 0x13b   : > { %903 = vrot.lane.b32.xlu1 %v2968_v53, %s2685_s17  ;;  %1560 = vrot.lane.b32.xlu0 %v2968_v53, %s2687_s13 }
 0x13f   : > { %915 = vrot.lane.b32.xlu1 %v2974_v55, %s2685_s17  ;;  %1572 = vrot.lane.b32.xlu0 %v2974_v55, %s2687_s13 }
 0x143   : > { %1049 = vrot.lane.b32.xlu1 %v2968_v53, %s2682_s8  ;;  %1706 = vrot.lane.b32.xlu0 %v2968_v53, %s2688_s15 }
 0x147   : > { %1061 = vrot.lane.b32.xlu1 %v2974_v55, %s2682_s8  ;;  %1718 = vrot.lane.b32.xlu0 %v2974_v55, %s2688_s15 }
 0x14b   : > { %1195 = vrot.lane.b32.xlu1 %v2968_v53, %s2684_s14  ;;  %1045 = vrot.lane.b32.xlu0 %v3000_v60, %s2682_s8 }
 0x14f   : > { %1207 = vrot.lane.b32.xlu1 %v2974_v55, %s2684_s14  ;;  %1057 = vrot.lane.b32.xlu0 %v3006_v62, %s2682_s8 }
 0x153   : > { %1414 = vrot.lane.b32.xlu1 %v2968_v53, %s2686_s16  ;;  %1191 = vrot.lane.b32.xlu0 %v3000_v60, %s2684_s14 }
 0x157   : > { %1426 = vrot.lane.b32.xlu1 %v2974_v55, %s2686_s16  ;;  %1203 = vrot.lane.b32.xlu0 %v3006_v62, %s2684_s14 }
 0x15b   : > { %752 = vrot.lane.b32.xlu1 %v3000_v60, %s2683_s9  ;;  %1422 = vrot.lane.b32.xlu0 %v3006_v62, %s2686_s16 }
 0x15f   : > { %764 = vrot.lane.b32.xlu1 %v3006_v62, %s2683_s9  ;;  %1556 = vrot.lane.b32.xlu0 %v3000_v60, %s2687_s13 }
 0x163   : > { %899 = vrot.lane.b32.xlu1 %v3000_v60, %s2685_s17  ;;  %758 = vrot.lane.b32.xlu0 %v3032_v3, %s2683_s9 }
 0x167   : > { %911 = vrot.lane.b32.xlu1 %v3006_v62, %s2685_s17  ;;  %770 = vrot.lane.b32.xlu0 %v3038_v7, %s2683_s9 }
 0x16b   : > { %1410 = vrot.lane.b32.xlu1 %v3000_v60, %s2686_s16  ;;  %905 = vrot.lane.b32.xlu0 %v3032_v3, %s2685_s17 }
 0x16f   : > { %1568 = vrot.lane.b32.xlu1 %v3006_v62, %s2687_s13  ;;  %917 = vrot.lane.b32.xlu0 %v3038_v7, %s2685_s17 }
 0x173   : > { %1714 = vrot.lane.b32.xlu1 %v3006_v62, %s2688_s15  ;;  %1051 = vrot.lane.b32.xlu0 %v3032_v3, %s2682_s8 }
 0x177   : > { %1702 = vrot.lane.b32.xlu1 %v3000_v60, %s2688_s15  ;;  %1063 = vrot.lane.b32.xlu0 %v3038_v7, %s2682_s8 }
 0x17b   : > { %1562 = vrot.lane.b32.xlu1 %v3032_v3, %s2687_s13  ;;  %1197 = vrot.lane.b32.xlu0 %v3032_v3, %s2684_s14 }
 0x17f   : > { %1574 = vrot.lane.b32.xlu1 %v3038_v7, %s2687_s13  ;;  %1209 = vrot.lane.b32.xlu0 %v3038_v7, %s2684_s14 }
 0x183   : > { %1708 = vrot.lane.b32.xlu1 %v3032_v3, %s2688_s15  ;;  %1416 = vrot.lane.b32.xlu0 %v3032_v3, %s2686_s16 }
 0x187   : > { %1720 = vrot.lane.b32.xlu1 %v3038_v7, %s2688_s15  ;;  %1428 = vrot.lane.b32.xlu0 %v3038_v7, %s2686_s16 }
 0x18b   : > { %1047 = vrot.lane.b32.xlu1 %v3088_v18, %s2682_s8  ;;  %754 = vrot.lane.b32.xlu0 %v3088_v18, %s2683_s9 }
 0x18d   : > { %v3100_v24 = vpop.permute.xlu1 %1043  ;;  %v3102_v25 = vpop.permute.xlu0 %750 }
 0x18e   : > { %4893 = vst [vmem:[#allocation15_spill] sm:$0xff] %v3100_v24  ;;  %v838_v24 = vld [vmem:[#allocation2 + $0x68] sm:$0xff] }
 0x18f   : > { %1059 = vrot.lane.b32.xlu1 %v3098_v23, %s2682_s8  ;;  %766 = vrot.lane.b32.xlu0 %v3098_v23, %s2683_s9 }
 0x191   : > { %v3110_v28 = vpop.permute.xlu1 %1055  ;;  %v3112_v30 = vpop.permute.xlu0 %762 }
 0x192   : > { %4895 = vst [vmem:[#allocation17_spill] sm:$0xff] %v3110_v28  ;;  %v1337_v28 = vld [vmem:[#allocation2 + $0x308] sm:$0xff] }
 0x193   : > { %760 = vrot.lane.b32.xlu1 %v3108_v27, %s2683_s9  ;;  %901 = vrot.lane.b32.xlu0 %v3088_v18, %s2685_s17 }
 0x195   : > { %v3120_v32 = vpop.permute.xlu1 %1189  ;;  %v3122_v33 = vpop.permute.xlu0 %897 }
 0x196   : > { %4897 = vst [vmem:[#allocation19_spill] sm:$0xff] %v3120_v32  ;;  %4898 = vst [vmem:[#allocation20_spill] sm:$0xff] %v3122_v33 }
 0x197   : > { %772 = vrot.lane.b32.xlu1 %v3118_v31, %s2683_s9  ;;  %913 = vrot.lane.b32.xlu0 %v3098_v23, %s2685_s17 }
 0x199   : > { %v3128_v34 = vpop.permute.xlu1 %1201  ;;  %v3130_v36 = vpop.permute.xlu0 %909 }
 0x19a   : > { %4899 = vst [vmem:[#allocation21_spill] sm:$0xff] %v3128_v34  ;;  %v1129_v34 = vld [vmem:[#allocation2 + $0x1e0] sm:$0xff] }
 0x19b   : > { %907 = vrot.lane.b32.xlu1 %v3108_v27, %s2685_s17  ;;  %1193 = vrot.lane.b32.xlu0 %v3088_v18, %s2684_s14 }
 0x19d   : > { %v3136_v37 = vpop.permute.xlu1 %1420  ;;  %v3138_v48 = vpop.permute.xlu0 %1408 }
 0x19e   : > { %4900 = vst [vmem:[#allocation22_spill] sm:$0xff] %v3136_v37  ;;  %4901 = vst [vmem:[#allocation23_spill] sm:$0xff] %v3138_v48  ;;  %v698_v48 = vmax.f32 %v674_v10, 0.0 }
 0x19f   : > { %919 = vrot.lane.b32.xlu1 %v3118_v31, %s2685_s17  ;;  %1205 = vrot.lane.b32.xlu0 %v3098_v23, %s2684_s14 }
 0x1a0   : > { %v3262_v43 = vmin.f32 %v698_v48, 6.0 }
 0x1a1   : > { %v3146_v52 = vpop.permute.xlu1 %1554  ;;  %v3148_v54 = vpop.permute.xlu0 %1566 }
 0x1a2   : > { %4902 = vst [vmem:[#allocation24_spill] sm:$0xff] %v3146_v52  ;;  %4903 = vst [vmem:[#allocation25_spill] sm:$0xff] %v3148_v54  ;;  %v1339_v54 = vld [vmem:[#allocation2 + $0x318] sm:$0xff] }
 0x1a3   : > { %1199 = vrot.lane.b32.xlu1 %v3108_v27, %s2684_s14  ;;  %1053 = vrot.lane.b32.xlu0 %v3108_v27, %s2682_s8 }
 0x1a5   : > { %v3156_v59 = vpop.permute.xlu1 %756  ;;  %v3158_v61 = vpop.permute.xlu0 %1712 }
 0x1a6   : > { %4904 = vst [vmem:[#allocation26_spill] sm:$0xff] %v3158_v61 }
 0x1a7   : > { %1211 = vrot.lane.b32.xlu1 %v3118_v31, %s2684_s14  ;;  %1065 = vrot.lane.b32.xlu0 %v3118_v31, %s2682_s8 }
 0x1a9   : > { %v3166_v1 = vpop.permute.xlu1 %768  ;;  %v3168_v2 = vpop.permute.xlu0 %1700 }
 0x1aa   : > { %4906 = vst [vmem:[#allocation28_spill] sm:$0xff] %v3166_v1  ;;  %4907 = vst [vmem:[#allocation29_spill] sm:$0xff] %v3168_v2 }
 0x1ab   : > { %1067 = vrot.lane.b32.xlu1 %v3164_v38, %s2682_s8  ;;  %774 = vrot.lane.b32.xlu0 %v3164_v38, %s2683_s9 }
 0x1ad   : > { %v3178_v11 = vpop.permute.xlu1 %903  ;;  %v3180_v13 = vpop.permute.xlu0 %1560 }
 0x1af   : > { %1079 = vrot.lane.b32.xlu1 %v3174_v39, %s2682_s8  ;;  %786 = vrot.lane.b32.xlu0 %v3174_v39, %s2683_s9 }
 0x1b1   : > { %v3188_v17 = vpop.permute.xlu1 %915  ;;  %v3190_v21 = vpop.permute.xlu0 %1572 }
 0x1b2   : > { %4909 = vst [vmem:[#allocation31_spill] sm:$0xff] %v3188_v17  ;;  %4910 = vst [vmem:[#allocation32_spill] sm:$0xff] %v3190_v21 }
 0x1b3   : > { %1432 = vrot.lane.b32.xlu1 %v3164_v38, %s2686_s16  ;;  %921 = vrot.lane.b32.xlu0 %v3164_v38, %s2685_s17 }
 0x1b5   : > { %v3198_v26 = vpop.permute.xlu1 %1049  ;;  %v3200_v51 = vpop.permute.xlu0 %1706 }
 0x1b6   : > { %4911 = vst [vmem:[#allocation33_spill] sm:$0xff] %v3198_v26  ;;  %4912 = vst [vmem:[#allocation34_spill] sm:$0xff] %v3200_v51  ;;  %v3603_v26 = vmul.f32 %v1337_v28, %v2968_v53 }
 0x1b7   : > { %780 = vrot.lane.b32.xlu1 %v3196_v40, %s2683_s9  ;;  %933 = vrot.lane.b32.xlu0 %v3174_v39, %s2685_s17 }
 0x1b9   : > { %v3208_v41 = vpop.permute.xlu1 %1061  ;;  %v3210_v57 = vpop.permute.xlu0 %1718 }
 0x1ba   : > { %4914 = vst [vmem:[#allocation36_spill] sm:$0xff] %v3208_v41  ;;  %4915 = vst [vmem:[#allocation37_spill] sm:$0xff] %v3210_v57 }
 0x1bb   : > { %792 = vrot.lane.b32.xlu1 %v3206_v19, %s2683_s9  ;;  %1213 = vrot.lane.b32.xlu0 %v3164_v38, %s2684_s14 }
 0x1bd   : > { %v3216_v58 = vpop.permute.xlu1 %1195  ;;  %v3218_v63 = vpop.permute.xlu0 %1045 }
 0x1be   : > { %4916 = vst [vmem:[#allocation38_spill] sm:$0xff] %v3216_v58 }
 0x1bf   : > { %939 = vrot.lane.b32.xlu1 %v3206_v19, %s2685_s17  ;;  %1225 = vrot.lane.b32.xlu0 %v3174_v39, %s2684_s14 }
 0x1c1   : > { %v3224_v6 = vpop.permute.xlu1 %1207  ;;  %v3226_v14 = vpop.permute.xlu0 %1057 }
 0x1c2   : > { %4917 = vst [vmem:[#allocation39_spill] sm:$0xff] %v3224_v6  ;;  %4918 = vst [vmem:[#allocation40_spill] sm:$0xff] %v3226_v14 }
 0x1c3   : > { %1085 = vrot.lane.b32.xlu1 %v3206_v19, %s2682_s8  ;;  %1578 = vrot.lane.b32.xlu0 %v3164_v38, %s2687_s13 }
 0x1c5   : > { %v3234_v22 = vpop.permute.xlu1 %1414  ;;  %v3236_v0 = vpop.permute.xlu0 %1191 }
 0x1c6   : > { %4919 = vst [vmem:[#allocation41_spill] sm:$0xff] %v3234_v22  ;;  %4920 = vst [vmem:[#allocation42_spill] sm:$0xff] %v3236_v0 }
 0x1c7   : > { %1231 = vrot.lane.b32.xlu1 %v3206_v19, %s2684_s14  ;;  %1724 = vrot.lane.b32.xlu0 %v3164_v38, %s2688_s15 }
 0x1c9   : > { %v3244_v4 = vpop.permute.xlu1 %1426  ;;  %v3246_v5 = vpop.permute.xlu0 %1203 }
 0x1ca   : > { %4921 = vst [vmem:[#allocation43_spill] sm:$0xff] %v3244_v4  ;;  %4922 = vst [vmem:[#allocation44_spill] sm:$0xff] %v3246_v5  ;;  %v676_v4 = vadd.f32 %v2944_v45, %v2988_v56 }
 0x1cb   : > { %1073 = vrot.lane.b32.xlu1 %v3196_v40, %s2682_s8  ;;  %927 = vrot.lane.b32.xlu0 %v3196_v40, %s2685_s17 }
 0x1cc   : > { %v699_v37 = vmax.f32 %v676_v4, 0.0 }
 0x1cd   : > { %v3254_v0 = vpop.permute.xlu1 %752  ;;  %v3256_v14 = vpop.permute.xlu0 %1422 }
 0x1ce   : > { %4923 = vst [vmem:[#allocation45_spill] sm:$0xff] %v3254_v0  ;;  %4924 = vst [vmem:[#allocation46_spill] sm:$0xff] %v3256_v14  ;;  %v593_v14 = vadd.f32 %v2942_v44, %v2988_v56 }
 0x1cf   : > { %776 = vrot.lane.b32.xlu1 %v3252_v42, %s2683_s9  ;;  %1219 = vrot.lane.b32.xlu0 %v3196_v40, %s2684_s14 }
 0x1d1   : > { %v3264_v16 = vpop.permute.xlu1 %764  ;;  %v3266_v5 = vpop.permute.xlu0 %1556 }
 0x1d2   : > { %4925 = vst [vmem:[#allocation47_spill] sm:$0xff] %v3264_v16  ;;  %4926 = vst [vmem:[#allocation48_spill] sm:$0xff] %v3266_v5  ;;  %v697_v16 = vmax.f32 %v593_v14, 0.0  ;;  %v3306_v14 = vmin.f32 %v699_v37, 6.0 }
 0x1d3   : > { %788 = vrot.lane.b32.xlu1 %v3262_v43, %s2683_s9  ;;  %1069 = vrot.lane.b32.xlu0 %v3252_v42, %s2682_s8 }
 0x1d4   : > { %v3296_v22 = vmin.f32 %v697_v16, 6.0 }
 0x1d5   : > { %v3272_v9 = vpop.permute.xlu1 %899  ;;  %v3274_v10 = vpop.permute.xlu0 %758 }
 0x1d6   : > { %4927 = vst [vmem:[#allocation49_spill] sm:$0xff] %v3272_v9  ;;  %4928 = vst [vmem:[#allocation50_spill] sm:$0xff] %v3274_v10 }
 0x1d7   : > { %923 = vrot.lane.b32.xlu1 %v3252_v42, %s2685_s17  ;;  %1081 = vrot.lane.b32.xlu0 %v3262_v43, %s2682_s8 }
 0x1d9   : > { %v3282_v48 = vpop.permute.xlu1 %911  ;;  %v3284_v5 = vpop.permute.xlu0 %770 }
 0x1da   : > { %4929 = vst [vmem:[#allocation51_spill] sm:$0xff] %v3282_v48  ;;  %4930 = vst [vmem:[#allocation52_spill] sm:$0xff] %v3284_v5  ;;  %v680_v48 = vadd.f32 %v2952_v47, %v3064_v8  ;;  %v682_v47 = vadd.f32 %v2957_v50, %v3064_v8 }
 0x1db   : > { %935 = vrot.lane.b32.xlu1 %v3262_v43, %s2685_s17  ;;  %1434 = vrot.lane.b32.xlu0 %v3252_v42, %s2686_s16 }
 0x1dd   : > { %v3292_v44 = vpop.permute.xlu1 %1410  ;;  %v3294_v10 = vpop.permute.xlu0 %905 }
 0x1de   : > { %4931 = vst [vmem:[#allocation53_spill] sm:$0xff] %v3292_v44  ;;  %4932 = vst [vmem:[#allocation54_spill] sm:$0xff] %v3294_v10 }
 0x1df   : > { %1215 = vrot.lane.b32.xlu1 %v3252_v42, %s2684_s14  ;;  %782 = vrot.lane.b32.xlu0 %v3296_v22, %s2683_s9 }
 0x1e1   : > { %v3302_v45 = vpop.permute.xlu1 %1568  ;;  %v3304_v56 = vpop.permute.xlu0 %917 }
 0x1e2   : > { %4933 = vst [vmem:[#allocation55_spill] sm:$0xff] %v3302_v45  ;;  %4934 = vst [vmem:[#allocation56_spill] sm:$0xff] %v3304_v56 }
 0x1e3   : > { %1227 = vrot.lane.b32.xlu1 %v3262_v43, %s2684_s14  ;;  %794 = vrot.lane.b32.xlu0 %v3306_v14, %s2683_s9 }
 0x1e5   : > { %v3312_v16 = vpop.permute.xlu1 %1714  ;;  %v3314_v4 = vpop.permute.xlu0 %1051 }
 0x1e6   : > { %4935 = vst [vmem:[#allocation57_spill] sm:$0xff] %v3312_v16  ;;  %4936 = vst [vmem:[#allocation58_spill] sm:$0xff] %v3314_v4  ;;  %v597_v16 = vadd.f32 %v2950_v46, %v3064_v8 }
 0x1e7   : > { %1580 = vrot.lane.b32.xlu1 %v3252_v42, %s2687_s13  ;;  %941 = vrot.lane.b32.xlu0 %v3306_v14, %s2685_s17 }
 0x1e9   : > { %v3320_v44 = vpop.permute.xlu1 %1702  ;;  %v3322_v37 = vpop.permute.xlu0 %1063 }
 0x1ea   : > { %4937 = vst [vmem:[#allocation59_spill] sm:$0xff] %v3320_v44  ;;  %4938 = vst [vmem:[#allocation60_spill] sm:$0xff] %v3322_v37  ;;  %v704_v44 = vmax.f32 %v597_v16, 0.0 }
 0x1eb   : > { %1726 = vrot.lane.b32.xlu1 %v3252_v42, %s2688_s15  ;;  %1087 = vrot.lane.b32.xlu0 %v3306_v14, %s2682_s8 }
 0x1ec   : > { %v3348_v46 = vmin.f32 %v704_v44, 6.0 }
 0x1ed   : > { %v3330_v45 = vpop.permute.xlu1 %1562  ;;  %v3332_v4 = vpop.permute.xlu0 %1197 }
 0x1ee   : > { %4939 = vst [vmem:[#allocation61_spill] sm:$0xff] %v3330_v45  ;;  %4940 = vst [vmem:[#allocation62_spill] sm:$0xff] %v3332_v4  ;;  %v706_v45 = vmax.f32 %v680_v48, 0.0  ;;  %v599_v4 = vadd.f32 %v2955_v49, %v3064_v8  ;;  %v707_v49 = vmax.f32 %v682_v47, 0.0 }
 0x1ef   : > { %929 = vrot.lane.b32.xlu1 %v3296_v22, %s2685_s17  ;;  %1233 = vrot.lane.b32.xlu0 %v3306_v14, %s2684_s14  ;;  %4943 = vst [vmem:[#allocation65_spill] sm:$0xff] %v3348_v46 }
 0x1f0   : > { %v705_v44 = vmax.f32 %v599_v4, 0.0 }
 0x1f1   : > { %v3340_v10 = vpop.permute.xlu1 %1574  ;;  %v3342_v57 = vpop.permute.xlu0 %1209 }
 0x1f2   : > { %4941 = vst [vmem:[#allocation63_spill] sm:$0xff] %v3340_v10  ;;  %4942 = vst [vmem:[#allocation64_spill] sm:$0xff] %v3342_v57  ;;  %v3362_v10 = vmin.f32 %v706_v45, 6.0  ;;  %v3372_v50 = vmin.f32 %v705_v44, 6.0  ;;  %v3378_v45 = vmin.f32 %v707_v49, 6.0 }
 0x1f3   : > { %1221 = vrot.lane.b32.xlu1 %v3296_v22, %s2684_s14  ;;  %1075 = vrot.lane.b32.xlu0 %v3296_v22, %s2682_s8 }
 0x1f4   : > { %4946 = vst [vmem:[#allocation68_spill] sm:$0xff] %v3362_v10  ;;  %4949 = vst [vmem:[#allocation71_spill] sm:$0xff] %v3372_v50 }
 0x1f5   : > { %v3352_v16 = vpop.permute.xlu1 %1708  ;;  %v3354_v6 = vpop.permute.xlu0 %1416  ;;  %4952 = vst [vmem:[#allocation74_spill] sm:$0xff] %v3378_v45 }
 0x1f6   : > { %4944 = vst [vmem:[#allocation66_spill] sm:$0xff] %v3352_v16  ;;  %4945 = vst [vmem:[#allocation67_spill] sm:$0xff] %v3354_v6 }
 0x1f7   : > { %925 = vrot.lane.b32.xlu1 %v3348_v46, %s2685_s17  ;;  %778 = vrot.lane.b32.xlu0 %v3348_v46, %s2683_s9 }
 0x1f9   : > { %v3364_v48 = vpop.permute.xlu1 %1720  ;;  %v3366_v2 = vpop.permute.xlu0 %1428 }
 0x1fa   : > { %4947 = vst [vmem:[#allocation69_spill] sm:$0xff] %v3364_v48  ;;  %4948 = vst [vmem:[#allocation70_spill] sm:$0xff] %v3366_v2 }
 0x1fb   : > { %937 = vrot.lane.b32.xlu1 %v3362_v10, %s2685_s17  ;;  %790 = vrot.lane.b32.xlu0 %v3362_v10, %s2683_s9 }
 0x1fd   : > { %v3374_v8 = vpop.permute.xlu1 %1047  ;;  %v3376_v16 = vpop.permute.xlu0 %754 }
 0x1fe   : > { %4950 = vst [vmem:[#allocation72_spill] sm:$0xff] %v3374_v8  ;;  %4951 = vst [vmem:[#allocation73_spill] sm:$0xff] %v3376_v16 }
 0x1ff   : > { %784 = vrot.lane.b32.xlu1 %v3372_v50, %s2683_s9  ;;  %943 = vrot.lane.b32.xlu0 %v3378_v45, %s2685_s17 }
 0x201   : > { %v3384_v4 = vpop.permute.xlu1 %1059  ;;  %v3386_v47 = vpop.permute.xlu0 %766 }
 0x202   : > { %4953 = vst [vmem:[#allocation75_spill] sm:$0xff] %v3384_v4  ;;  %4954 = vst [vmem:[#allocation76_spill] sm:$0xff] %v3386_v47 }
 0x203   : > { %796 = vrot.lane.b32.xlu1 %v3378_v45, %s2683_s9  ;;  %1235 = vrot.lane.b32.xlu0 %v3378_v45, %s2684_s14 }
 0x205   : > { %v3392_v44 = vpop.permute.xlu1 %760  ;;  %v3394_v49 = vpop.permute.xlu0 %901 }
 0x206   : > { %4955 = vst [vmem:[#allocation77_spill] sm:$0xff] %v3392_v44  ;;  %4956 = vst [vmem:[#allocation78_spill] sm:$0xff] %v3394_v49 }
 0x207   : > { %1089 = vrot.lane.b32.xlu1 %v3378_v45, %s2682_s8  ;;  %931 = vrot.lane.b32.xlu0 %v3372_v50, %s2685_s17 }
 0x209   : > { %v3400_v48 = vpop.permute.xlu1 %772  ;;  %v3402_v4 = vpop.permute.xlu0 %913 }
 0x20a   : > { %4957 = vst [vmem:[#allocation79_spill] sm:$0xff] %v3400_v48  ;;  %4958 = vst [vmem:[#allocation80_spill] sm:$0xff] %v3402_v4  ;;  %v1132_v48 = vld [vmem:[#allocation2 + $0x1f8] sm:$0xff] }
 0x20b   : > { %1077 = vrot.lane.b32.xlu1 %v3372_v50, %s2682_s8  ;;  %1071 = vrot.lane.b32.xlu0 %v3348_v46, %s2682_s8 }
 0x20d   : > { %v3408_v47 = vpop.permute.xlu1 %907  ;;  %v3410_v44 = vpop.permute.xlu0 %1193 }
 0x20e   : > { %4959 = vst [vmem:[#allocation81_spill] sm:$0xff] %v3408_v47  ;;  %4960 = vst [vmem:[#allocation82_spill] sm:$0xff] %v3410_v44 }
 0x20f   : > { %1418 = vrot.lane.b32.xlu1 %v3108_v27, %s2686_s16  ;;  %1083 = vrot.lane.b32.xlu0 %v3362_v10, %s2682_s8  ;;  %s2459_s8 = sshll.u32 %s284_s29, 5 }
 0x210   : > { %s4678_s9 = scalar_lea.vmem [#allocation5], %s2459_s8 }
 0x211   : > { %v3416_v2 = vpop.permute.xlu1 %919  ;;  %v3418_v6 = vpop.permute.xlu0 %1205  ;;  %s2382_s17 = sshll.u32 %s4678_s9, 4  ;;  %s4695_s17 = int_to_ptr.vmem [resolvable:$true] %s2382_s17 }
 0x212   : > { %4961 = vst [vmem:[#allocation83_spill] sm:$0xff] %v3416_v2  ;;  %4962 = vst [vmem:[#allocation84_spill] sm:$0xff] %v3418_v6 }
 0x213   : > { %1430 = vrot.lane.b32.xlu1 %v3118_v31, %s2686_s16  ;;  %1424 = vrot.lane.b32.xlu0 %v3098_v23, %s2686_s16 }
 0x215   : > { %v3424_v4 = vpop.permute.xlu1 %1199  ;;  %v3426_v47 = vpop.permute.xlu0 %1053 }
 0x216   : > { %4963 = vst [vmem:[#allocation85_spill] sm:$0xff] %v3424_v4  ;;  %4964 = vst [vmem:[#allocation86_spill] sm:$0xff] %v3426_v47 }
 0x217   : > { %1438 = vrot.lane.b32.xlu1 %v3196_v40, %s2686_s16  ;;  %1436 = vrot.lane.b32.xlu0 %v3348_v46, %s2686_s16 }
 0x219   : > { %v3432_v8 = vpop.permute.xlu1 %1211  ;;  %v3434_v44 = vpop.permute.xlu0 %1065 }
 0x21a   : > { %4965 = vst [vmem:[#allocation87_spill] sm:$0xff] %v3432_v8  ;;  %4966 = vst [vmem:[#allocation88_spill] sm:$0xff] %v3434_v44 }
 0x21b   : > { %1444 = vrot.lane.b32.xlu1 %v3174_v39, %s2686_s16  ;;  %1440 = vrot.lane.b32.xlu0 %v3296_v22, %s2686_s16 }
 0x21d   : > { %v3440_v6 = vpop.permute.xlu1 %1067  ;;  %v3442_v4 = vpop.permute.xlu0 %774 }
 0x21e   : > { %4967 = vst [vmem:[#allocation89_spill] sm:$0xff] %v3440_v6  ;;  %4968 = vst [vmem:[#allocation90_spill] sm:$0xff] %v3442_v4 }
 0x21f   : > { %1450 = vrot.lane.b32.xlu1 %v3206_v19, %s2686_s16  ;;  %1446 = vrot.lane.b32.xlu0 %v3262_v43, %s2686_s16 }
 0x221   : > { %v3448_v47 = vpop.permute.xlu1 %1079  ;;  %v3450_v8 = vpop.permute.xlu0 %786 }
 0x222   : > { %4969 = vst [vmem:[#allocation91_spill] sm:$0xff] %v3448_v47  ;;  %4970 = vst [vmem:[#allocation92_spill] sm:$0xff] %v3450_v8 }
 0x223   : > { %1852 = vrot.lane.b32.xlu1 %v2968_v53, %s2689_s18  ;;  %1452 = vrot.lane.b32.xlu0 %v3306_v14, %s2686_s16 }
 0x225   : > { %v3456_v6 = vpop.permute.xlu1 %1432  ;;  %v3458_v4 = vpop.permute.xlu0 %921 }
 0x226   : > { %4971 = vst [vmem:[#allocation93_spill] sm:$0xff] %v3456_v6  ;;  %4972 = vst [vmem:[#allocation94_spill] sm:$0xff] %v3458_v4 }
 0x227   : > { %1858 = vrot.lane.b32.xlu1 %v2916_v35, %s2689_s18  ;;  %1854 = vrot.lane.b32.xlu0 %v3032_v3, %s2689_s18 }
 0x229   : > { %v3464_v47 = vpop.permute.xlu1 %780  ;;  %v3466_v8 = vpop.permute.xlu0 %933 }
 0x22a   : > { %4973 = vst [vmem:[#allocation95_spill] sm:$0xff] %v3464_v47  ;;  %4974 = vst [vmem:[#allocation96_spill] sm:$0xff] %v3466_v8 }
 0x22b   : > { %1864 = vrot.lane.b32.xlu1 %v2974_v55, %s2689_s18  ;;  %1860 = vrot.lane.b32.xlu0 %v3006_v62, %s2689_s18 }
 0x22d   : > { %v3472_v44 = vpop.permute.xlu1 %792  ;;  %v3474_v6 = vpop.permute.xlu0 %1213 }
 0x22e   : > { %4975 = vst [vmem:[#allocation97_spill] sm:$0xff] %v3472_v44  ;;  %4976 = vst [vmem:[#allocation98_spill] sm:$0xff] %v3474_v6 }
 0x22f   : > { %1870 = vrot.lane.b32.xlu1 %v3164_v38, %s2689_s18  ;;  %1866 = vrot.lane.b32.xlu0 %v3038_v7, %s2689_s18 }
 0x231   : > { %v3480_v4 = vpop.permute.xlu1 %939  ;;  %v3482_v47 = vpop.permute.xlu0 %1225 }
 0x232   : > { %4977 = vst [vmem:[#allocation99_spill] sm:$0xff] %v3480_v4  ;;  %4978 = vst [vmem:[#allocation100_spill] sm:$0xff] %v3482_v47  ;;  %v798_v47 = vlaneseq }
 0x233   : > { %1412 = vrot.lane.b32.xlu1 %v3088_v18, %s2686_s16  ;;  %1872 = vrot.lane.b32.xlu0 %v3252_v42, %s2689_s18 }
 0x235   : > { %v3488_v8 = vpop.permute.xlu1 %1085  ;;  %v3490_v44 = vpop.permute.xlu0 %1578 }
 0x236   : > { %4979 = vst [vmem:[#allocation101_spill] sm:$0xff] %v3488_v8  ;;  %4980 = vst [vmem:[#allocation102_spill] sm:$0xff] %v3490_v44 }
 0x237   : > { %1848 = vrot.lane.b32.xlu1 %v3000_v60, %s2689_s18  ;;  %1846 = vrot.lane.b32.xlu0 %v2902_v29, %s2689_s18 }
 0x239   : > { %v3496_v6 = vpop.permute.xlu1 %1231  ;;  %v3498_v38 = vpop.permute.xlu0 %1724 }
 0x23a   : > { %4981 = vst [vmem:[#allocation103_spill] sm:$0xff] %v3496_v6  ;;  %4982 = vst [vmem:[#allocation104_spill] sm:$0xff] %v3498_v38  ;;  %v3512_v6 = vand.u32 127, %v798_v47  ;;  %v983_v47 = vld [vmem:[#allocation2 + $0x120] sm:$0xff] }
 0x23b   : > { %1223 = vrot.lane.b32.xlu1 %v3372_v50, %s2684_s14  ;;  %1217 = vrot.lane.b32.xlu0 %v3348_v46, %s2684_s14 }
 0x23c   : > { %vm800_vm2 = vcmp.lt.s32.totalorder %v3512_v6, 17  ;;  %vm945_vm3 = vcmp.lt.s32.totalorder %v3512_v6, 16  ;;  %vm1091_vm4 = vcmp.lt.s32.totalorder %v3512_v6, 15  ;;  %vm1237_vm5 = vcmp.lt.s32.totalorder %v3512_v6, 1 }
 0x23d   : > { %v3504_v8 = vpop.permute.xlu1 %1073  ;;  %v3506_v44 = vpop.permute.xlu0 %927  ;;  %vm1602_vm6 = vcmp.lt.s32.totalorder %v3512_v6, 113  ;;  %vm1748_vm7 = vcmp.lt.s32.totalorder %v3512_v6, 112  ;;  %vm1456_vm8 = vcmp.lt.s32.totalorder %v3512_v6, 127  ;;  %vm1894_vm9 = vcmp.lt.s32.totalorder %v3512_v6, 111 }
 0x23e   : > { %4983 = vst [vmem:[#allocation105_spill] sm:$0xff] %v3504_v8  ;;  %4984 = vst [vmem:[#allocation106_spill] sm:$0xff] %v3506_v44  ;;  %v837_v44 = vld [vmem:[#allocation2 + $0x60] sm:$0xff] }
 0x23f   : > { %1564 = vrot.lane.b32.xlu1 %v3108_v27, %s2687_s13  ;;  %1229 = vrot.lane.b32.xlu0 %v3362_v10, %s2684_s14  ;;  %s2492_s14 = sshll.u32 %s2752_s28, 9  ;;  %s2609_s28 = scalar_lea.vmem %s4695_s17, 512 }
 0x240   : > { %p2610_p6 = scmp.ne.s32.totalorder %s4695_s17, %s2609_s28 }
 0x241   : > { %v777_v38 = vpop.permute.xlu1 %776  ;;  %v3514_v4 = vpop.permute.xlu0 %1219 }
 0x242   : > { %4985 = vst [vmem:[#allocation107_spill] sm:$0xff] %v3514_v4  ;;  %v811_v16 = vsel %vm800_vm2, %v3284_v5, %v777_v38  ;;  %p2611_p10 = pnand %p2610_p6, %p5204_p9 }
 0x243   : > { %1576 = vrot.lane.b32.xlu1 %v3118_v31, %s2687_s13  ;;  %1570 = vrot.lane.b32.xlu0 %v3098_v23, %s2687_s13  ;;  %v861_v4 = vmul.f32 %v837_v44, %v811_v16 }
 0x244   : > { %p2612_p12 = pneg %p2611_p10 }
 0x245   : > { %v789_v8 = vpop.permute.xlu1 %788  ;;  %v3524_v49 = vpop.permute.xlu0 %1069  ;;  %v885_v16 = vadd.f32 %v861_v4, %v3084_v15 }
 0x247   : > { %1584 = vrot.lane.b32.xlu1 %v3196_v40, %s2687_s13  ;;  %1582 = vrot.lane.b32.xlu0 %v3348_v46, %s2687_s13 }
 0x249   : > { %v3531_v51 = vpop.permute.xlu1 %923  ;;  %v3537_v5 = vpop.permute.xlu0 %1081 }
 0x24a   : > { %v956_v61 = vsel %vm945_vm3, %v3304_v56, %v3531_v51  ;;  %v1102_v56 = vsel %vm1091_vm4, %v3322_v37, %v3524_v49 }
 0x24b   : > { %v1007_v10 = vmul.f32 %v983_v47, %v956_v61  ;;  %1590 = vrot.lane.b32.xlu1 %v3174_v39, %s2687_s13  ;;  %1586 = vrot.lane.b32.xlu0 %v3296_v22, %s2687_s13  ;;  %v1275_v47 = vld [vmem:[#allocation2 + $0x2a0] sm:$0xff]  ;;  %v1153_v4 = vmul.f32 %v1129_v34, %v1102_v56  ;;  %v840_v56 = vld [vmem:[#allocation2 + $0x78] sm:$0xff] }
 0x24c   : > { %v833_v34 = vld [vmem:[#allocation2 + $0x40] sm:$0xff] }
 0x24d   : > { %v3545_v44 = vpop.permute.xlu1 %935  ;;  %v3551_v45 = vpop.permute.xlu0 %1434  ;;  %v1031_v61 = vadd.f32 %v1007_v10, %v885_v16 }
 0x24e   : > { %4986 = vst [vmem:[#allocation108_spill] sm:$0xff] %v3551_v45 }
 0x24f   : > { %1596 = vrot.lane.b32.xlu1 %v3206_v19, %s2687_s13  ;;  %1592 = vrot.lane.b32.xlu0 %v3262_v43, %s2687_s13  ;;  %v1177_v45 = vadd.f32 %v1153_v4, %v1031_v61  ;;  %v1338_v61 = vld [vmem:[#allocation2 + $0x310] sm:$0xff] }
 0x251   : > { %v3558_v21 = vpop.permute.xlu1 %1215  ;;  %v783_v20 = vpop.permute.xlu0 %782 }
 0x252   : > { %v1248_v37 = vsel %vm1237_vm5, %v3342_v57, %v3558_v21  ;;  %v986_v57 = vld [vmem:[#allocation2 + $0x138] sm:$0xff] }
 0x253   : > { %v1299_v10 = vmul.f32 %v1275_v47, %v1248_v37  ;;  %1558 = vrot.lane.b32.xlu1 %v3088_v18, %s2687_s13  ;;  %1598 = vrot.lane.b32.xlu0 %v3306_v14, %s2687_s13 }
 0x255   : > { %v3568_v16 = vadd.f32 %v1299_v10, %v1177_v45  ;;  %v3570_v32 = vpop.permute.xlu1 %1227  ;;  %v795_v58 = vpop.permute.xlu0 %794  ;;  %v1336_v45 = vld [vmem:[#allocation2 + $0x300] sm:$0xff] }
 0x256   : > { %v802_v41 = vsel %vm800_vm2, %v789_v8, %v795_v58  ;;  %v823_v37 = vsel %vm800_vm2, %v795_v58, %v3254_v0  ;;  %v808_v58 = vsel %vm800_vm2, %v777_v38, %v783_v20  ;;  %v1344_v38 = vld [vmem:[#allocation2 + $0x340] sm:$0xff] }
 0x257   : > { %4987 = vst [vmem:[#allocation109_spill] sm:$0xff] %v3568_v16  ;;  %1716 = vrot.lane.b32.xlu1 %v3098_v23, %s2688_s15  ;;  %v857_v47 = vmul.f32 %v833_v34, %v823_v37  ;;  %v864_v4 = vmul.f32 %v840_v56, %v802_v41  ;;  %1710 = vrot.lane.b32.xlu0 %v3108_v27, %s2688_s15  ;;  %v979_v16 = vld [vmem:[#allocation2 + $0x100] sm:$0xff]  ;;  %v1346_v34 = vld [vmem:[#allocation2 + $0x350] sm:$0xff]  ;;  %v1347_v27 = vld [vmem:[#allocation2 + $0x358] sm:$0xff] }
 0x258   : > { %v3586_v23 = vmul.f32 %v1338_v61, %v2916_v35  ;;  %v805_v41 = vsel %vm800_vm2, %v783_v20, %v789_v8  ;;  %v839_v35 = vld [vmem:[#allocation2 + $0x70] sm:$0xff]  ;;  %v3617_v53 = vmul.f32 %v1344_v38, %v3000_v60 }
 0x259   : > { %v3581_v10 = vpop.permute.xlu1 %1580  ;;  %v942_v0 = vpop.permute.xlu0 %941  ;;  %v881_v61 = vadd.f32 %v857_v47, %v3084_v15  ;;  %v1125_v47 = vld [vmem:[#allocation2 + $0x1c0] sm:$0xff]  ;;  %v827_v38 = vld [vmem:[#allocation2 + $0x10] sm:$0xff] }
 0x25a   : > { %4988 = vst [vmem:[#allocation110_spill] sm:$0xff] %v3581_v10  ;;  %4989 = vst [vmem:[#allocation111_spill] sm:$0xff] %v3586_v23  ;;  %v947_v56 = vsel %vm945_vm3, %v3545_v44, %v942_v0  ;;  %v968_v37 = vsel %vm945_vm3, %v942_v0, %v3272_v9  ;;  %v1345_v10 = vld [vmem:[#allocation2 + $0x348] sm:$0xff]  ;;  %v888_v23 = vadd.f32 %v864_v4, %v3084_v15  ;;  %v1348_v4 = vld [vmem:[#allocation2 + $0x360] sm:$0xff] }
 0x25b   : > { %1728 = vrot.lane.b32.xlu1 %v3348_v46, %s2688_s15  ;;  %v1003_v20 = vmul.f32 %v979_v16, %v968_v37  ;;  %v1010_v8 = vmul.f32 %v986_v57, %v947_v56  ;;  %1722 = vrot.lane.b32.xlu0 %v3118_v31, %s2688_s15  ;;  %v3606_v0 = vmul.f32 %v1339_v54, %v2974_v55  ;;  %v985_v54 = vld [vmem:[#allocation2 + $0x130] sm:$0xff] }
 0x25c   : > { %v3609_v9 = vmul.f32 %v1336_v45, %v2902_v29  ;;  %v862_v46 = vmul.f32 %v838_v24, %v808_v58  ;;  %v3614_v57 = vmul.f32 %v1346_v34, %v3006_v62  ;;  %4993 = vst [vmem:[#allocation115_spill] sm:$0xff] %v3617_v53  ;;  %v3620_v55 = vmul.f32 %v1345_v10, %v3032_v3  ;;  %v984_v3 = vld [vmem:[#allocation2 + $0x128] sm:$0xff]  ;;  %v1278_v34 = vld [vmem:[#allocation2 + $0x2b8] sm:$0xff] }
 0x25d   : > { %v3611_v50 = vpop.permute.xlu1 %1726  ;;  %v1027_v16 = vadd.f32 %v1003_v20, %v881_v61  ;;  %v1034_v56 = vadd.f32 %v1010_v8, %v888_v23  ;;  %v1088_v37 = vpop.permute.xlu0 %1087  ;;  %v863_v29 = vmul.f32 %v839_v35, %v805_v41  ;;  %v3631_v62 = vmul.f32 %v1347_v27, %v3038_v7  ;;  %v826_v10 = vld [vmem:[#allocation2 + $0x8] sm:$0xff]  ;;  %v828_v35 = vld [vmem:[#allocation2 + $0x18] sm:$0xff] }
 0x25e   : > { %4990 = vst [vmem:[#allocation112_spill] sm:$0xff] %v3609_v9  ;;  %4991 = vst [vmem:[#allocation113_spill] sm:$0xff] %v3611_v50  ;;  %v1093_v24 = vsel %vm1091_vm4, %v3537_v5, %v1088_v37  ;;  %v1114_v28 = vsel %vm1091_vm4, %v1088_v37, %v3218_v63  ;;  %v3636_v45 = vmul.f32 %v1348_v4, %v3252_v42  ;;  %v1349_v41 = vld [vmem:[#allocation2 + $0x368] sm:$0xff]  ;;  %v1119_v50 = vld [vmem:[#allocation2 + $0x190] sm:$0xff] }
 0x25f   : > { %4992 = vst [vmem:[#allocation114_spill] sm:$0xff] %v3614_v57  ;;  %1732 = vrot.lane.b32.xlu1 %v3296_v22, %s2688_s15  ;;  %4994 = vst [vmem:[#allocation116_spill] sm:$0xff] %v3631_v62  ;;  %v1149_v60 = vmul.f32 %v1125_v47, %v1114_v28  ;;  %v1156_v23 = vmul.f32 %v1132_v48, %v1093_v24  ;;  %1730 = vrot.lane.b32.xlu0 %v3196_v40, %s2688_s15  ;;  %v1352_v24 = vld [vmem:[#allocation2 + $0x380] sm:$0xff]  ;;  %v5010_v9 = vld [vmem:[#allocation17_spill] sm:$0xff] }
 0x260   : > { %4995 = vst [vmem:[#allocation117_spill] sm:$0xff] %v3636_v45  ;;  %v816_v58 = vsel %vm800_vm2, %v3156_v59, %v3112_v30  ;;  %v819_v7 = vsel %vm800_vm2, %v3102_v25, %v3156_v59  ;;  %v813_v27 = vsel %vm800_vm2, %v3112_v30, %v3166_v1  ;;  %v886_v48 = vadd.f32 %v862_v46, %v3084_v15  ;;  %v1138_v57 = vld [vmem:[#allocation2 + $0x228] sm:$0xff] }
 0x261   : > { %v930_v42 = vpop.permute.xlu1 %929  ;;  %v3651_v61 = vadd.f32 %v1149_v60, %v1027_v16  ;;  %v1180_v20 = vadd.f32 %v1156_v23, %v1034_v56  ;;  %v3659_v47 = vpop.permute.xlu0 %1233  ;;  %v887_v30 = vadd.f32 %v863_v29, %v3084_v15  ;;  %v1350_v56 = vld [vmem:[#allocation2 + $0x370] sm:$0xff]  ;;  %v1351_v29 = vld [vmem:[#allocation2 + $0x378] sm:$0xff]  ;;  %v851_v28 = vmul.f32 %v827_v38, %v816_v58  ;;  %v1276_v58 = vld [vmem:[#allocation2 + $0x2a8] sm:$0xff] }
 0x262   : > { %v950_v8 = vsel %vm945_vm3, %v930_v42, %v3545_v44  ;;  %v953_v59 = vsel %vm945_vm3, %v3531_v51, %v930_v42  ;;  %4997 = vst [vmem:[#allocation119_spill] sm:$0xff] %v3659_v47  ;;  %v1239_v16 = vsel %vm1237_vm5, %v3570_v32, %v3659_v47  ;;  %v850_v44 = vmul.f32 %v826_v10, %v819_v7  ;;  %v1130_v42 = vld [vmem:[#allocation2 + $0x1e8] sm:$0xff]  ;;  %v1137_v47 = vld [vmem:[#allocation2 + $0x220] sm:$0xff] }
 0x263   : > { %4996 = vst [vmem:[#allocation118_spill] sm:$0xff] %v3651_v61  ;;  %v1008_v46 = vmul.f32 %v984_v3, %v953_v59  ;;  %v1009_v4 = vmul.f32 %v985_v54, %v950_v8  ;;  %1738 = vrot.lane.b32.xlu1 %v3262_v43, %s2688_s15  ;;  %v1302_v37 = vmul.f32 %v1278_v34, %v1239_v16  ;;  %v1131_v8 = vld [vmem:[#allocation2 + $0x1f0] sm:$0xff] }
 0x264   : > { %1736 = vrot.lane.b32.xlu0 %v3174_v39, %s2688_s15  ;;  %v3672_v51 = vmul.f32 %v1349_v41, %v3296_v22  ;;  %v852_v60 = vmul.f32 %v828_v35, %v813_v27  ;;  %v3683_v41 = vmul.f32 %v1350_v56, %v3262_v43  ;;  %v1277_v27 = vld [vmem:[#allocation2 + $0x2b0] sm:$0xff]  ;;  %v874_v35 = vadd.f32 %v850_v44, %v3072_v12  ;;  %v845_v56 = vld [vmem:[#allocation2 + $0xa0] sm:$0xff]  ;;  %v972_v44 = vld [vmem:[#allocation2 + $0xc8] sm:$0xff] }
 0x265   : > { %v1032_v23 = vadd.f32 %v1008_v46, %v886_v48  ;;  %v1033_v3 = vadd.f32 %v1009_v4, %v887_v30  ;;  %v1222_v54 = vpop.permute.xlu1 %1221  ;;  %v3674_v59 = vadd.f32 %v1302_v37, %v1180_v20  ;;  %v1076_v34 = vpop.permute.xlu0 %1075  ;;  %v961_v46 = vsel %vm945_vm3, %v3178_v11, %v3130_v36  ;;  %v973_v37 = vld [vmem:[#allocation2 + $0xd0] sm:$0xff] }
 0x266   : > { %4998 = vst [vmem:[#allocation120_spill] sm:$0xff] %v3672_v51  ;;  %v1242_v10 = vsel %vm1237_vm5, %v1222_v54, %v3570_v32  ;;  %v1245_v7 = vsel %vm1237_vm5, %v3558_v21, %v1222_v54  ;;  %5000 = vst [vmem:[#allocation122_spill] sm:$0xff] %v3683_v41  ;;  %v1096_v48 = vsel %vm1091_vm4, %v1076_v34, %v3537_v5  ;;  %v846_v51 = vld [vmem:[#allocation2 + $0xa8] sm:$0xff] }
 0x267   : > { %4999 = vst [vmem:[#allocation121_spill] sm:$0xff] %v3674_v59  ;;  %v1099_v38 = vsel %vm1091_vm4, %v3524_v49, %v1076_v34  ;;  %1744 = vrot.lane.b32.xlu1 %v3306_v14, %s2688_s15  ;;  %v3694_v32 = vmul.f32 %v1351_v29, %v3306_v14  ;;  %v3697_v21 = vmul.f32 %v1352_v24, %v3088_v18  ;;  %v1628_v34 = vld [vmem:[#allocation2 + $0x480] sm:$0xff] }
 0x268   : > { %v1154_v20 = vmul.f32 %v1130_v42, %v1099_v38  ;;  %v1155_v30 = vmul.f32 %v1131_v8, %v1096_v48  ;;  %1742 = vrot.lane.b32.xlu0 %v3206_v19, %s2688_s15  ;;  %v875_v5 = vadd.f32 %v851_v28, %v3072_v12  ;;  %v3705_v49 = vadd.f32 %v852_v60, %v3072_v12  ;;  %v991_v8 = vld [vmem:[#allocation2 + $0x160] sm:$0xff]  ;;  %v5005_v48 = vld [vmem:[#allocation33_spill] sm:$0xff]  ;;  %v5006_v38 = vld [vmem:[#allocation15_spill] sm:$0xff] }
 0x269   : > { %5001 = vst [vmem:[#allocation123_spill] sm:$0xff] %v3694_v32  ;;  %5002 = vst [vmem:[#allocation124_spill] sm:$0xff] %v3697_v21  ;;  %v964_v4 = vsel %vm945_vm3, %v3122_v33, %v3178_v11  ;;  %v3715_v16 = vpop.permute.xlu1 %925  ;;  %v1300_v29 = vmul.f32 %v1276_v58, %v1245_v7  ;;  %v1301_v24 = vmul.f32 %v1277_v27, %v1242_v10  ;;  %v779_v54 = vpop.permute.xlu0 %778  ;;  %v5003_v10 = vld [vmem:[#allocation79_spill] sm:$0xff]  ;;  %v1118_v27 = vld [vmem:[#allocation2 + $0x188] sm:$0xff] }
 0x26a   : > { %v1178_v28 = vadd.f32 %v1154_v20, %v1032_v23  ;;  %v1179_v60 = vadd.f32 %v1155_v30, %v1033_v3  ;;  %v1621_v42 = vsel %vm1602_vm6, %v3146_v52, %v3180_v13  ;;  %v958_v11 = vsel %vm945_vm3, %v3130_v36, %v3188_v17  ;;  %v5004_v3 = vld [vmem:[#allocation71_spill] sm:$0xff]  ;;  %v1630_v32 = vld [vmem:[#allocation2 + $0x490] sm:$0xff]  ;;  %v5016_v59 = vld [vmem:[#allocation32_spill] sm:$0xff] }
 0x26b   : > { %v957_v7 = vsel %vm945_vm3, %v3416_v2, %v3715_v16  ;;  %v812_v23 = vsel %vm800_vm2, %v5003_v10, %v779_v54  ;;  %1442 = vrot.lane.b32.xlu1 %v5004_v3, %s2686_s16  ;;  %v974_v58 = vld [vmem:[#allocation2 + $0xd8] sm:$0xff]  ;;  %v1110_v36 = vsel %vm1091_vm4, %v5006_v38, %v5005_v48  ;;  %v996_v17 = vmul.f32 %v972_v44, %v964_v4  ;;  %v1629_v2 = vld [vmem:[#allocation2 + $0x488] sm:$0xff]  ;;  %v5012_v44 = vld [vmem:[#allocation38_spill] sm:$0xff] }
 0x26c   : > { %v3739_v20 = vadd.f32 %v1300_v29, %v1178_v28  ;;  %v3741_v30 = vadd.f32 %v1301_v24, %v1179_v60  ;;  %v869_v52 = vmul.f32 %v845_v56, %v812_v23  ;;  %1704 = vrot.lane.b32.xlu0 %v3088_v18, %s2688_s15  ;;  %v997_v1 = vmul.f32 %v973_v37, %v961_v46  ;;  %v5009_v10 = vld [vmem:[#allocation25_spill] sm:$0xff]  ;;  %v1120_v56 = vld [vmem:[#allocation2 + $0x198] sm:$0xff]  ;;  %v5011_v28 = vld [vmem:[#allocation36_spill] sm:$0xff] }
 0x26d   : > { %v1618_v21 = vsel %vm1602_vm6, %v3180_v13, %v5009_v10  ;;  %v1107_v29 = vsel %vm1091_vm4, %v5005_v48, %v5010_v9  ;;  %v3753_v24 = vpop.permute.xlu1 %937  ;;  %v1104_v46 = vsel %vm1091_vm4, %v5010_v9, %v5011_v28  ;;  %v1264_v4 = vld [vmem:[#allocation2 + $0x248] sm:$0xff]  ;;  %v5013_v37 = vld [vmem:[#allocation19_spill] sm:$0xff]  ;;  %v1015_v60 = vmul.f32 %v991_v8, %v957_v7  ;;  %v791_v62 = vpop.permute.xlu0 %790  ;;  %v5017_v28 = vld [vmem:[#allocation74_spill] sm:$0xff] }
 0x26e   : > { %5007 = vst [vmem:[#allocation33_spill] sm:$0xff] %v3739_v20  ;;  %5008 = vst [vmem:[#allocation125_spill] sm:$0xff] %v3741_v30  ;;  %v1256_v13 = vsel %vm1237_vm5, %v5013_v37, %v5012_v44  ;;  %v5014_v23 = vld [vmem:[#allocation13_spill] sm:$0xff]  ;;  %v3764_v61 = vmul.f32 %v1628_v34, %v1621_v42  ;;  %v998_v48 = vmul.f32 %v974_v58, %v958_v11  ;;  %v1265_v8 = vld [vmem:[#allocation2 + $0x250] sm:$0xff] }
 0x26f   : > { %v893_v53 = vadd.f32 %v869_v52, %v5014_v23  ;;  %v1615_v41 = vsel %vm1602_vm6, %v5009_v10, %v5016_v59  ;;  %v1142_v9 = vmul.f32 %v1118_v27, %v1110_v36  ;;  %1454 = vrot.lane.b32.xlu1 %v5017_v28, %s2686_s16  ;;  %v3772_v30 = vmul.f32 %v1629_v2, %v1618_v21  ;;  %v5018_v7 = vld [vmem:[#allocation21_spill] sm:$0xff]  ;;  %v5019_v42 = vld [vmem:[#allocation68_spill] sm:$0xff]  ;;  %v5020_v58 = vld [vmem:[#allocation26_spill] sm:$0xff] }
 0x270   : > { %5015 = vst [vmem:[#allocation25_spill] sm:$0xff] %v3764_v61  ;;  %v1143_v12 = vmul.f32 %v1119_v50, %v1107_v29  ;;  %v1253_v52 = vsel %vm1237_vm5, %v5012_v44, %v5018_v7  ;;  %1448 = vrot.lane.b32.xlu0 %v5019_v42, %s2686_s16  ;;  %v1020_v34 = vadd.f32 %v996_v17, %v874_v35  ;;  %v1775_v10 = vld [vmem:[#allocation2 + $0x548] sm:$0xff]  ;;  %v5021_v27 = vld [vmem:[#allocation34_spill] sm:$0xff]  ;;  %v5034_v38 = vld [vmem:[#allocation43_spill] sm:$0xff] }
 0x271   : > { %v3780_v11 = vadd.f32 %v1015_v60, %v893_v53  ;;  %v1764_v2 = vsel %vm1748_vm7, %v5021_v27, %v5020_v58  ;;  %v1144_v21 = vmul.f32 %v1120_v56, %v1104_v46  ;;  %v1288_v50 = vmul.f32 %v1264_v4, %v1256_v13  ;;  %v785_v36 = vpop.permute.xlu1 %784  ;;  %v944_v60 = vpop.permute.xlu0 %943  ;;  %v5025_v46 = vld [vmem:[#allocation39_spill] sm:$0xff]  ;;  %v5026_v13 = vld [vmem:[#allocation16_spill] sm:$0xff] }
 0x272   : > { %v1021_v29 = vadd.f32 %v997_v1, %v875_v5  ;;  %v3786_v61 = vmul.f32 %v1630_v32, %v1615_v41  ;;  %v806_v44 = vsel %vm800_vm2, %v785_v36, %v791_v62  ;;  %v809_v53 = vsel %vm800_vm2, %v779_v54, %v785_v36  ;;  %v5022_v1 = vld [vmem:[#allocation14_spill] sm:$0xff]  ;;  %v5023_v32 = vld [vmem:[#allocation29_spill] sm:$0xff] }
 0x273   : > { %v1022_v17 = vadd.f32 %v998_v48, %v3705_v49  ;;  %v1166_v35 = vadd.f32 %v1142_v9, %v1020_v34  ;;  %v1289_v59 = vmul.f32 %v1265_v8, %v1253_v52  ;;  %v948_v56 = vsel %vm945_vm3, %v3753_v24, %v944_v60  ;;  %1862 = vrot.lane.b32.xlu1 %v5022_v1, %s2689_s18  ;;  %v1266_v49 = vld [vmem:[#allocation2 + $0x258] sm:$0xff]  ;;  %v841_v48 = vld [vmem:[#allocation2 + $0x80] sm:$0xff]  ;;  %v5027_v8 = vld [vmem:[#allocation37_spill] sm:$0xff] }
 0x274   : > { %v1167_v41 = vadd.f32 %v1143_v12, %v1021_v29  ;;  %v3802_v5 = vsel %vm1748_vm7, %v5023_v32, %v5021_v27  ;;  %v3804_v54 = vmul.f32 %v1775_v10, %v1764_v2  ;;  %v1250_v4 = vsel %vm1237_vm5, %v5018_v7, %v5025_v46  ;;  %1856 = vrot.lane.b32.xlu0 %v5026_v13, %s2689_s18  ;;  %v848_v9 = vld [vmem:[#allocation2 + $0xb8] sm:$0xff]  ;;  %v1483_v10 = vld [vmem:[#allocation2 + $0x3c8] sm:$0xff]  ;;  %v5028_v27 = vld [vmem:[#allocation22_spill] sm:$0xff] }
 0x275   : > { %5024 = vst [vmem:[#allocation17_spill] sm:$0xff] %v3802_v5  ;;  %v3812_v12 = vadd.f32 %v1144_v21, %v1022_v17  ;;  %v3818_v52 = vsel %vm1748_vm7, %v5020_v58, %v5027_v8  ;;  %v1312_v34 = vadd.f32 %v1288_v50, %v1166_v35  ;;  %v5029_v2 = vld [vmem:[#allocation41_spill] sm:$0xff]  ;;  %v847_v36 = vld [vmem:[#allocation2 + $0xb0] sm:$0xff]  ;;  %v797_v29 = vpop.permute.xlu1 %796  ;;  %v870_v32 = vmul.f32 %v846_v51, %v809_v53  ;;  %v987_v46 = vld [vmem:[#allocation2 + $0x140] sm:$0xff]  ;;  %v3832_v35 = vpop.permute.xlu0 %1235 }
 0x276   : > { %v1472_v7 = vsel %vm1456_vm8, %v5029_v2, %v5028_v27  ;;  %v5030_v1 = vld [vmem:[#allocation78_spill] sm:$0xff]  ;;  %v803_v17 = vsel %vm800_vm2, %v791_v62, %v797_v29  ;;  %v5031_v58 = vld [vmem:[#allocation73_spill] sm:$0xff]  ;;  %5032 = vst [vmem:[#allocation38_spill] sm:$0xff] %v3832_v35  ;;  %v1313_v13 = vadd.f32 %v1289_v59, %v1167_v41  ;;  %v1290_v5 = vmul.f32 %v1266_v49, %v1250_v4  ;;  %v994_v8 = vld [vmem:[#allocation2 + $0x178] sm:$0xff] }
 0x277   : > { %v969_v21 = vsel %vm945_vm3, %v944_v60, %v5030_v1  ;;  %v824_v50 = vsel %vm800_vm2, %v797_v29, %v5031_v58  ;;  %v872_v37 = vmul.f32 %v848_v9, %v803_v17  ;;  %v5033_v51 = vld [vmem:[#allocation65_spill] sm:$0xff]  ;;  %v1507_v53 = vmul.f32 %v1483_v10, %v1472_v7  ;;  %v5035_v60 = vld [vmem:[#allocation47_spill] sm:$0xff]  ;;  %v5036_v1 = vld [vmem:[#allocation50_spill] sm:$0xff] }
 0x278   : > { %v865_v20 = vmul.f32 %v841_v48, %v824_v50  ;;  %1874 = vrot.lane.b32.xlu1 %v5033_v51, %s2689_s18  ;;  %v1469_v62 = vsel %vm1456_vm8, %v5028_v27, %v5034_v38  ;;  %v817_v29 = vsel %vm800_vm2, %v5036_v1, %v5035_v60  ;;  %v871_v58 = vmul.f32 %v847_v36, %v806_v44  ;;  %v1133_v59 = vld [vmem:[#allocation2 + $0x200] sm:$0xff]  ;;  %v5037_v41 = vld [vmem:[#allocation45_spill] sm:$0xff]  ;;  %v993_v7 = vld [vmem:[#allocation2 + $0x170] sm:$0xff] }
 0x279   : > { %1868 = vrot.lane.b32.xlu0 %v3118_v31, %s2689_s18  ;;  %v820_v49 = vsel %vm800_vm2, %v5037_v41, %v5036_v1  ;;  %v1011_v4 = vmul.f32 %v987_v46, %v969_v21  ;;  %v896_v9 = vadd.f32 %v872_v37, %v5014_v23  ;;  %v3852_v10 = vpop.permute.xlu1 %1089  ;;  %v992_v27 = vld [vmem:[#allocation2 + $0x168] sm:$0xff]  ;;  %v1484_v17 = vld [vmem:[#allocation2 + $0x3d0] sm:$0xff]  ;;  %v894_v36 = vadd.f32 %v870_v32, %v5014_v23  ;;  %v1279_v51 = vld [vmem:[#allocation2 + $0x2c0] sm:$0xff]  ;;  %v932_v37 = vpop.permute.xlu0 %931 }
 0x27a   : > { %v889_v48 = vadd.f32 %v865_v20, %v5014_v23  ;;  %v834_v44 = vld [vmem:[#allocation2 + $0x48] sm:$0xff]  ;;  %v1018_v50 = vmul.f32 %v994_v8, %v948_v56  ;;  %v5038_v31 = vld [vmem:[#allocation82_spill] sm:$0xff]  ;;  %v5039_v46 = vld [vmem:[#allocation72_spill] sm:$0xff]  ;;  %v951_v38 = vsel %vm945_vm3, %v932_v37, %v3753_v24  ;;  %v954_v56 = vsel %vm945_vm3, %v3715_v16, %v932_v37 }
 0x27b   : > { %v1261_v1 = vsel %vm1237_vm5, %v3832_v35, %v5038_v31  ;;  %v1115_v20 = vsel %vm1091_vm4, %v3852_v10, %v5039_v46  ;;  %v835_v32 = vld [vmem:[#allocation2 + $0x50] sm:$0xff]  ;;  %v895_v8 = vadd.f32 %v871_v58, %v5014_v23  ;;  %v1016_v31 = vmul.f32 %v992_v27, %v954_v56  ;;  %v5040_v37 = vld [vmem:[#allocation111_spill] sm:$0xff] }
 0x27c   : > { %v1035_v21 = vadd.f32 %v1011_v4, %v889_v48  ;;  %v1157_v41 = vmul.f32 %v1133_v59, %v1115_v20  ;;  %1878 = vrot.lane.b32.xlu1 %v3296_v22, %s2689_s18  ;;  %v1017_v35 = vmul.f32 %v993_v7, %v951_v38  ;;  %v1042_v59 = vadd.f32 %v1018_v50, %v896_v9  ;;  %v5045_v50 = vld [vmem:[#allocation51_spill] sm:$0xff] }
 0x27d   : > { %1876 = vrot.lane.b32.xlu0 %v3196_v40, %s2689_s18  ;;  %v1508_v4 = vmul.f32 %v1484_v17, %v1469_v62  ;;  %v858_v48 = vmul.f32 %v834_v44, %v820_v49  ;;  %v1303_v20 = vmul.f32 %v1279_v51, %v1261_v1  ;;  %v1078_v46 = vpop.permute.xlu1 %1077  ;;  %v1385_v16 = vadd.f32 %v3603_v26, %v1312_v34  ;;  %v1072_v58 = vpop.permute.xlu0 %1071  ;;  %v5041_v62 = vld [vmem:[#allocation88_spill] sm:$0xff]  ;;  %v980_v17 = vld [vmem:[#allocation2 + $0x108] sm:$0xff]  ;;  %v5043_v44 = vld [vmem:[#allocation54_spill] sm:$0xff] }
 0x27e   : > { %v1181_v24 = vadd.f32 %v1157_v41, %v1035_v21  ;;  %v1386_v22 = vadd.f32 %v5040_v37, %v1313_v13  ;;  %v1040_v45 = vadd.f32 %v1016_v31, %v894_v36  ;;  %v1041_v33 = vadd.f32 %v1017_v35, %v895_v8  ;;  %v5042_v49 = vld [vmem:[#allocation52_spill] sm:$0xff]  ;;  %v981_v36 = vld [vmem:[#allocation2 + $0x110] sm:$0xff]  ;;  %v982_v21 = vld [vmem:[#allocation2 + $0x118] sm:$0xff] }
 0x27f   : > { %v859_v27 = vmul.f32 %v835_v32, %v817_v29  ;;  %v1100_v9 = vsel %vm1091_vm4, %v1072_v58, %v1078_v46  ;;  %v1103_v51 = vsel %vm1091_vm4, %v5041_v62, %v1072_v58  ;;  %v3886_v26 = vadd.f32 %v1290_v5, %v3812_v12  ;;  %v5046_v41 = vld [vmem:[#allocation56_spill] sm:$0xff] }
 0x280   : > { %v3876_v38 = vadd.f32 %v1303_v20, %v1181_v24  ;;  %1884 = vrot.lane.b32.xlu1 %v3262_v43, %s2689_s18  ;;  %v1531_v13 = vadd.f32 %v1507_v53, %v1385_v16  ;;  %v1161_v31 = vmul.f32 %v1137_v47, %v1103_v51  ;;  %v1162_v34 = vmul.f32 %v1138_v57, %v1100_v9  ;;  %v5044_v43 = vld [vmem:[#allocation49_spill] sm:$0xff]  ;;  %v1139_v57 = vld [vmem:[#allocation2 + $0x230] sm:$0xff]  ;;  %v1140_v47 = vld [vmem:[#allocation2 + $0x238] sm:$0xff] }
 0x281   : > { %1882 = vrot.lane.b32.xlu0 %v3174_v39, %s2689_s18  ;;  %v1532_v35 = vadd.f32 %v1508_v4, %v1386_v22  ;;  %v882_v29 = vadd.f32 %v858_v48, %v3084_v15  ;;  %v814_v7 = vsel %vm800_vm2, %v5035_v60, %v5042_v49  ;;  %v965_v5 = vsel %vm945_vm3, %v5044_v43, %v5043_v44  ;;  %v3899_v12 = vpop.permute.xlu1 %1418  ;;  %v836_v53 = vld [vmem:[#allocation2 + $0x58] sm:$0xff]  ;;  %v1084_v8 = vpop.permute.xlu0 %1083  ;;  %v1126_v48 = vld [vmem:[#allocation2 + $0x1c8] sm:$0xff]  ;;  %v5047_v20 = vld [vmem:[#allocation58_spill] sm:$0xff] }
 0x282   : > { %v962_v1 = vsel %vm945_vm3, %v5043_v44, %v5045_v50  ;;  %v959_v60 = vsel %vm945_vm3, %v5045_v50, %v5046_v41  ;;  %v3910_v56 = vadd.f32 %v1161_v31, %v3780_v11  ;;  %v3912_v32 = vadd.f32 %v1162_v34, %v1040_v45  ;;  %v1127_v11 = vld [vmem:[#allocation2 + $0x1d0] sm:$0xff]  ;;  %v5048_v22 = vld [vmem:[#allocation40_spill] sm:$0xff]  ;;  %v1272_v31 = vld [vmem:[#allocation2 + $0x288] sm:$0xff] }
 0x283   : > { %v883_v4 = vadd.f32 %v859_v27, %v3084_v15  ;;  %v1111_v24 = vsel %vm1091_vm4, %v3218_v63, %v5047_v20  ;;  %v1094_v16 = vsel %vm1091_vm4, %v1084_v8, %v3852_v10  ;;  %v1097_v37 = vsel %vm1091_vm4, %v1078_v46, %v1084_v8  ;;  %v5049_v46 = vld [vmem:[#allocation62_spill] sm:$0xff]  ;;  %v5052_v43 = vld [vmem:[#allocation44_spill] sm:$0xff]  ;;  %v1128_v50 = vld [vmem:[#allocation2 + $0x1d8] sm:$0xff] }
 0x284   : > { %1890 = vrot.lane.b32.xlu1 %v3306_v14, %s2689_s18  ;;  %v1004_v45 = vmul.f32 %v980_v17, %v965_v5  ;;  %v1108_v58 = vsel %vm1091_vm4, %v5047_v20, %v5048_v22  ;;  %v1163_v27 = vmul.f32 %v1139_v57, %v1097_v37  ;;  %v1164_v9 = vmul.f32 %v1140_v47, %v1094_v16  ;;  %v5050_v34 = vld [vmem:[#allocation42_spill] sm:$0xff]  ;;  %v5090_v39 = vld [vmem:[#allocation43_spill] sm:$0xff] }
 0x285   : > { %1888 = vrot.lane.b32.xlu0 %v3206_v19, %s2689_s18  ;;  %v860_v63 = vmul.f32 %v836_v53, %v814_v7  ;;  %v1005_v10 = vmul.f32 %v981_v36, %v962_v1  ;;  %v1006_v51 = vmul.f32 %v982_v21, %v959_v60  ;;  %v1257_v14 = vsel %vm1237_vm5, %v5050_v34, %v5049_v46  ;;  %v3936_v49 = vpop.permute.xlu1 %1430  ;;  %v1273_v44 = vld [vmem:[#allocation2 + $0x290] sm:$0xff]  ;;  %v1425_v47 = vpop.permute.xlu0 %1424  ;;  %v5053_v1 = vld [vmem:[#allocation60_spill] sm:$0xff]  ;;  %v5056_v60 = vld [vmem:[#allocation23_spill] sm:$0xff] }
 0x286   : > { %5051 = vst [vmem:[#allocation13_spill] sm:$0xff] %v3936_v49  ;;  %v1150_v17 = vmul.f32 %v1126_v48, %v1111_v24  ;;  %v1254_v5 = vsel %vm1237_vm5, %v5049_v46, %v5052_v43  ;;  %v3942_v57 = vadd.f32 %v1163_v27, %v1041_v33  ;;  %v3944_v7 = vadd.f32 %v1164_v9, %v1042_v59  ;;  %v1776_v53 = vld [vmem:[#allocation2 + $0x550] sm:$0xff]  ;;  %v1482_v59 = vld [vmem:[#allocation2 + $0x3c0] sm:$0xff]  ;;  %v5089_v19 = vld [vmem:[#allocation93_spill] sm:$0xff] }
 0x287   : > { %v1151_v36 = vmul.f32 %v1127_v11, %v1108_v58  ;;  %v1105_v21 = vsel %vm1091_vm4, %v5048_v22, %v5053_v1  ;;  %v3953_v41 = vsel %vm1456_vm8, %v1425_v47, %v3936_v49  ;;  %v3958_v33 = vsel %vm1456_vm8, %v3899_v12, %v1425_v47  ;;  %v5058_v47 = vld [vmem:[#allocation64_spill] sm:$0xff]  ;;  %v1491_v1 = vld [vmem:[#allocation2 + $0x408] sm:$0xff] }
 0x288   : > { %5054 = vst [vmem:[#allocation74_spill] sm:$0xff] %v3953_v41  ;;  %5055 = vst [vmem:[#allocation21_spill] sm:$0xff] %v3958_v33  ;;  %1588 = vrot.lane.b32.xlu1 %v5004_v3, %s2687_s13  ;;  %v1475_v8 = vsel %vm1456_vm8, %v5056_v60, %v5029_v2  ;;  %v1677_v48 = vadd.f32 %v3772_v30, %v1531_v13  ;;  %v1028_v20 = vadd.f32 %v1004_v45, %v882_v29  ;;  %v1274_v2 = vld [vmem:[#allocation2 + $0x298] sm:$0xff]  ;;  %v1637_v29 = vld [vmem:[#allocation2 + $0x4c8] sm:$0xff] }
 0x289   : > { %v1296_v24 = vmul.f32 %v1272_v31, %v1257_v14  ;;  %1850 = vrot.lane.b32.xlu0 %v3088_v18, %s2689_s18  ;;  %v1678_v16 = vadd.f32 %v3786_v61, %v1532_v35  ;;  %v884_v37 = vadd.f32 %v860_v63, %v3084_v15  ;;  %v1029_v11 = vadd.f32 %v1005_v10, %v883_v4  ;;  %v3971_v58 = vpop.permute.xlu1 %1438  ;;  %v3978_v13 = vpop.permute.xlu0 %1436  ;;  %v5060_v4 = vld [vmem:[#allocation55_spill] sm:$0xff]  ;;  %v5061_v45 = vld [vmem:[#allocation61_spill] sm:$0xff]  ;;  %v5062_v10 = vld [vmem:[#allocation48_spill] sm:$0xff] }
 0x28a   : > { %v1297_v22 = vmul.f32 %v1273_v44, %v1254_v5  ;;  %5057 = vst [vmem:[#allocation26_spill] sm:$0xff] %v3971_v58  ;;  %v1800_v27 = vmul.f32 %v1776_v53, %v3818_v52  ;;  %v1174_v9 = vadd.f32 %v1150_v17, %v1028_v20  ;;  %v1152_v46 = vmul.f32 %v1128_v50, %v1105_v21  ;;  %v1636_v52 = vld [vmem:[#allocation2 + $0x4c0] sm:$0xff]  ;;  %v1638_v14 = vld [vmem:[#allocation2 + $0x4d0] sm:$0xff]  ;;  %v5063_v17 = vld [vmem:[#allocation63_spill] sm:$0xff] }
 0x28b   : > { %v1251_v30 = vsel %vm1237_vm5, %v5052_v43, %v5058_v47  ;;  %5059 = vst [vmem:[#allocation34_spill] sm:$0xff] %v3978_v13  ;;  %v3980_v18 = vmul.f32 %v1482_v59, %v1475_v8  ;;  %v1030_v61 = vadd.f32 %v1006_v51, %v884_v37  ;;  %v1175_v15 = vadd.f32 %v1151_v36, %v1029_v11  ;;  %v1494_v5 = vld [vmem:[#allocation2 + $0x420] sm:$0xff]  ;;  %v5064_v21 = vld [vmem:[#allocation46_spill] sm:$0xff]  ;;  %v5065_v59 = vld [vmem:[#allocation67_spill] sm:$0xff] }
 0x28c   : > { %v3984_v35 = vadd.f32 %v3606_v0, %v3886_v26  ;;  %1600 = vrot.lane.b32.xlu1 %v5017_v28, %s2687_s13  ;;  %v1619_v63 = vsel %vm1602_vm6, %v5061_v45, %v5060_v4  ;;  %v1622_v51 = vsel %vm1602_vm6, %v5062_v10, %v5061_v45  ;;  %v1320_v31 = vadd.f32 %v1296_v24, %v1174_v9  ;;  %v825_v20 = vld [vmem:[#allocation2] sm:$0xff]  ;;  %v5066_v24 = vld [vmem:[#allocation97_spill] sm:$0xff]  ;;  %v5070_v47 = vld [vmem:[#allocation99_spill] sm:$0xff] }
 0x28d   : > { %v1616_v0 = vsel %vm1602_vm6, %v5060_v4, %v5063_v17  ;;  %1594 = vrot.lane.b32.xlu0 %v5019_v42, %s2687_s13  ;;  %v1321_v26 = vadd.f32 %v1297_v22, %v1175_v15  ;;  %v1298_v44 = vmul.f32 %v1274_v2, %v1251_v30  ;;  %v1445_v43 = vpop.permute.xlu1 %1444  ;;  %v4003_v53 = vadd.f32 %v3804_v54, %v1677_v48  ;;  %v1441_v48 = vpop.permute.xlu0 %1440  ;;  %v5069_v2 = vld [vmem:[#allocation20_spill] sm:$0xff]  ;;  %v5072_v15 = vld [vmem:[#allocation117_spill] sm:$0xff]  ;;  %v5075_v10 = vld [vmem:[#allocation70_spill] sm:$0xff] }
 0x28e   : > { %v4005_v36 = vadd.f32 %v1800_v27, %v1678_v16  ;;  %v1176_v50 = vadd.f32 %v1152_v46, %v1030_v61  ;;  %v1473_v8 = vsel %vm1456_vm8, %v5065_v59, %v5064_v21  ;;  %v822_v37 = vsel %vm800_vm2, %v5066_v24, %v3102_v25  ;;  %v5068_v27 = vld [vmem:[#allocation108_spill] sm:$0xff]  ;;  %v5071_v61 = vld [vmem:[#allocation109_spill] sm:$0xff]  ;;  %v1497_v13 = vld [vmem:[#allocation2 + $0x438] sm:$0xff] }
 0x28f   : > { %v4018_v54 = vsel %vm1456_vm8, %v3971_v58, %v1445_v43  ;;  %v4020_v16 = vmul.f32 %v1636_v52, %v1622_v51  ;;  %v4022_v11 = vmul.f32 %v1637_v29, %v1619_v63  ;;  %v4024_v22 = vmul.f32 %v1638_v14, %v1616_v0  ;;  %v971_v46 = vld [vmem:[#allocation2 + $0xc0] sm:$0xff]  ;;  %v5073_v63 = vld [vmem:[#allocation114_spill] sm:$0xff]  ;;  %v1485_v58 = vld [vmem:[#allocation2 + $0x3d8] sm:$0xff] }
 0x290   : > { %5067 = vst [vmem:[#allocation22_spill] sm:$0xff] %v4018_v54  ;;  %v1464_v9 = vsel %vm1456_vm8, %v5068_v27, %v1441_v48  ;;  %1740 = vrot.lane.b32.xlu1 %v5019_v42, %s2688_s15  ;;  %v1393_v25 = vadd.f32 %v3620_v55, %v1320_v31  ;;  %v967_v30 = vsel %vm945_vm3, %v5070_v47, %v5069_v2  ;;  %v1495_v31 = vld [vmem:[#allocation2 + $0x428] sm:$0xff]  ;;  %v1492_v0 = vld [vmem:[#allocation2 + $0x410] sm:$0xff]  ;;  %v5087_v54 = vld [vmem:[#allocation120_spill] sm:$0xff] }
 0x291   : > { %v1396_v52 = vadd.f32 %v5072_v15, %v5071_v61  ;;  %v1518_v29 = vmul.f32 %v1494_v5, %v1464_v9  ;;  %1734 = vrot.lane.b32.xlu0 %v5004_v3, %s2688_s15  ;;  %v4040_v4 = vadd.f32 %v1298_v44, %v1176_v50  ;;  %v1515_v45 = vmul.f32 %v1491_v1, %v1473_v8  ;;  %v4043_v55 = vpop.permute.xlu1 %1450  ;;  %v1271_v61 = vld [vmem:[#allocation2 + $0x280] sm:$0xff]  ;;  %v5076_v5 = vld [vmem:[#allocation119_spill] sm:$0xff]  ;;  %v1447_v1 = vpop.permute.xlu0 %1446  ;;  %v5079_v8 = vld [vmem:[#allocation57_spill] sm:$0xff] }
 0x292   : > { %v1394_v51 = vadd.f32 %v5073_v63, %v1321_v26  ;;  %v849_v14 = vmul.f32 %v825_v20, %v822_v37  ;;  %5074 = vst [vmem:[#allocation41_spill] sm:$0xff] %v4043_v55  ;;  %v1470_v2 = vsel %vm1456_vm8, %v5064_v21, %v5075_v10  ;;  %v1260_v44 = vsel %vm1237_vm5, %v5076_v5, %v5050_v34  ;;  %v5080_v20 = vld [vmem:[#allocation66_spill] sm:$0xff]  ;;  %v1117_v9 = vld [vmem:[#allocation2 + $0x180] sm:$0xff]  ;;  %v5081_v15 = vld [vmem:[#allocation15_spill] sm:$0xff] }
 0x293   : > { %v4053_v50 = vadd.f32 %v1518_v29, %v1396_v52  ;;  %v4058_v26 = vsel %vm1456_vm8, %v1445_v43, %v4043_v55  ;;  %v1765_v37 = vsel %vm1748_vm7, %v5080_v20, %v5079_v8  ;;  %v995_v21 = vmul.f32 %v971_v46, %v967_v30  ;;  %v5082_v63 = vld [vmem:[#allocation101_spill] sm:$0xff]  ;;  %v1263_v5 = vld [vmem:[#allocation2 + $0x240] sm:$0xff]  ;;  %v5085_v46 = vld [vmem:[#allocation103_spill] sm:$0xff] }
 0x294   : > { %5078 = vst [vmem:[#allocation50_spill] sm:$0xff] %v4058_v26  ;;  %v1113_v34 = vsel %vm1091_vm4, %v5082_v63, %v5081_v15  ;;  %v1461_v52 = vsel %vm1456_vm8, %v1441_v48, %v1447_v1  ;;  %1880 = vrot.lane.b32.xlu1 %v5004_v3, %s2689_s18  ;;  %v5083_v43 = vld [vmem:[#allocation53_spill] sm:$0xff]  ;;  %v1539_v48 = vadd.f32 %v1515_v45, %v1393_v25  ;;  %v5088_v60 = vld [vmem:[#allocation12_spill] sm:$0xff] }
 0x295   : > { %5077 = vst [vmem:[#allocation47_spill] sm:$0xff] %v4053_v50  ;;  %v1476_v29 = vsel %vm1456_vm8, %v5083_v43, %v5065_v59  ;;  %v5084_v50 = vld [vmem:[#allocation19_spill] sm:$0xff]  ;;  %v5086_v26 = vld [vmem:[#allocation33_spill] sm:$0xff]  ;;  %v1519_v55 = vmul.f32 %v1495_v31, %v1461_v52  ;;  %1746 = vrot.lane.b32.xlu0 %v5017_v28, %s2688_s15  ;;  %v1516_v3 = vmul.f32 %v1492_v0, %v1470_v2  ;;  %v4085_v49 = vpop.permute.xlu1 %1852  ;;  %v1496_v59 = vld [vmem:[#allocation2 + $0x430] sm:$0xff]  ;;  %s4693_s15 = scalar_lea.hbm %s4746_s7, %s2492_s14 }
 0x296   : > { %v1259_v30 = vsel %vm1237_vm5, %v5085_v46, %v5084_v50  ;;  %v1397_v15 = vadd.f32 %v5087_v54, %v5086_v26  ;;  %v873_v41 = vadd.f32 %v849_v14, %v5088_v60  ;;  %v1295_v33 = vmul.f32 %v1271_v61, %v1260_v44  ;;  %v1453_v26 = vpop.permute.xlu0 %1452  ;;  %v1783_v2 = vld [vmem:[#allocation2 + $0x588] sm:$0xff]  ;;  %v5093_v61 = vld [vmem:[#allocation122_spill] sm:$0xff] }
 0x297   : > { %v1466_v50 = vsel %vm1456_vm8, %v5090_v39, %v5089_v19  ;;  %v1141_v54 = vmul.f32 %v1117_v9, %v1113_v34  ;;  %v1287_v45 = vmul.f32 %v1263_v5, %v1259_v30  ;;  %v1458_v14 = vsel %vm1456_vm8, %v1447_v1, %v1453_v26  ;;  %v5092_v39 = vld [vmem:[#allocation125_spill] sm:$0xff]  ;;  %v5095_v9 = vld [vmem:[#allocation123_spill] sm:$0xff] }
 0x298   : > { %v4091_v31 = vadd.f32 %v1519_v55, %v1397_v15  ;;  %v1019_v25 = vadd.f32 %v995_v21, %v873_v41  ;;  %v1479_v0 = vsel %vm1456_vm8, %v1453_v26, %v5083_v43  ;;  %1892 = vrot.lane.b32.xlu1 %v5017_v28, %s2689_s18  ;;  %v1398_v55 = vadd.f32 %v5093_v61, %v5092_v39  ;;  %v5094_v44 = vld [vmem:[#allocation121_spill] sm:$0xff]  ;;  %v1631_v30 = vld [vmem:[#allocation2 + $0x498] sm:$0xff]  ;;  %v5096_v43 = vld [vmem:[#allocation102_spill] sm:$0xff] }
 0x299   : > { %v1399_v34 = vadd.f32 %v5095_v9, %v5094_v44  ;;  %v1520_v52 = vmul.f32 %v1496_v59, %v1458_v14  ;;  %v1521_v41 = vmul.f32 %v1497_v13, %v1479_v0  ;;  %1886 = vrot.lane.b32.xlu0 %v5019_v42, %s2689_s18  ;;  %v1921_v1 = vld [vmem:[#allocation2 + $0x608] sm:$0xff]  ;;  %v1540_v21 = vadd.f32 %v1516_v3, %v1394_v51  ;;  %v5097_v15 = vld [vmem:[#allocation32_spill] sm:$0xff]  ;;  %v1859_v39 = vpop.permute.xlu1 %1858  ;;  %s2690_s18 = smov [#allocation5]  }
 0x29a   : > { %5091 = vst [vmem:[#allocation45_spill] sm:$0xff] %v4091_v31  ;;  %v1509_v5 = vmul.f32 %v1485_v58, %v1466_v50  ;;  %v1612_v26 = vsel %vm1602_vm6, %v5097_v15, %v5096_v43  ;;  %v5098_v31 = vld [vmem:[#allocation118_spill] sm:$0xff]  ;;  %v2041_v59 = vld [vmem:[%s4745_s6] sm:$0xf]  ;;  %v1165_v14 = vadd.f32 %v1141_v54, %v1019_v25  ;;  %v1910_v3 = vsel %vm1894_vm9, %v4085_v49, %v1859_v39  ;;  %v4122_v58 = vpop.permute.xlu0 %1854  ;;  %v1777_v50 = vld [vmem:[#allocation2 + $0x558] sm:$0xff]  ;;  %s2613_s20 = sshll.u32 %s2690_s18, 4  ;;  %s2614_s20 = int_to_ptr.vmem [resolvable:$false] %s2613_s20 }
 0x29b   : > { %v1319_v19 = vadd.f32 %v1295_v33, %v5098_v31  ;;  %v1490_v13 = vld [vmem:[#allocation2 + $0x400] sm:$0xff]  ;;  %v4115_v0 = vadd.f32 %v1520_v52, %v1398_v55  ;;  %v4117_v61 = vadd.f32 %v1521_v41, %v1399_v34  ;;  %v1807_v51 = vmul.f32 %v1783_v2, %v1765_v37  ;;  %v5102_v44 = vld [vmem:[#allocation37_spill] sm:$0xff]  ;;  %v1784_v25 = vld [vmem:[#allocation2 + $0x590] sm:$0xff]  ;;  %s2615_s21 = scalar_lea.vmem %s2614_s20, 1024  ;;  %p2616_p2 = scmp.lt.s32.totalorder %s4695_s17, %s2614_s20 }
 0x29c   : > { %v1685_v33 = vadd.f32 %v4022_v11, %v1539_v48  ;;  %v5101_v31 = vld [vmem:[#allocation104_spill] sm:$0xff]  ;;  %v1945_v54 = vmul.f32 %v1921_v1, %v1910_v3  ;;  %v5103_v55 = vld [vmem:[#allocation69_spill] sm:$0xff]  ;;  %v1655_v52 = vmul.f32 %v1631_v30, %v1612_v26  ;;  %v1311_v41 = vadd.f32 %v1287_v45, %v1165_v14  ;;  %v1493_v15 = vld [vmem:[#allocation2 + $0x418] sm:$0xff]  ;;  %p2617_p3 = scmp.lt.s32.totalorder %s2615_s21, %s2609_s28 }
 0x29d   : > { %5099 = vst [vmem:[#allocation111_spill] sm:$0xff] %v4115_v0  ;;  %5100 = vst [vmem:[#allocation88_spill] sm:$0xff] %v4117_v61  ;;  %v1758_v9 = vsel %vm1748_vm7, %v5102_v44, %v5101_v31  ;;  %v1762_v34 = vsel %vm1748_vm7, %v5079_v8, %v5103_v55  ;;  %v1467_v11 = vsel %vm1456_vm8, %v5075_v10, %v5068_v27  ;;  %2044 = vperm.xlu0 %2571, %v2041_v59   ;;  %v5104_v48 = vld [vmem:[#allocation116_spill] sm:$0xff]  ;;  %v5105_v1 = vld [vmem:[#allocation115_spill] sm:$0xff]  ;;  %v1865_v42 = vpop.permute.xlu1 %1864 }
 0x29e   : > { %v1514_v37 = vmul.f32 %v1490_v13, %v1476_v29  ;;  %v1395_v2 = vadd.f32 %v5104_v48, %v4040_v4  ;;  %v1392_v3 = vadd.f32 %v5105_v1, %v1319_v19  ;;  %v1969_v44 = vadd.f32 %v1945_v54, %v4003_v53  ;;  %v1929_v61 = vld [vmem:[#allocation2 + $0x648] sm:$0xff]  ;;  %v1639_v26 = vld [vmem:[#allocation2 + $0x4d8] sm:$0xff]  ;;  %v5106_v14 = vld [vmem:[#allocation110_spill] sm:$0xff]  ;;  %v1861_v27 = vpop.permute.xlu0 %1860  ;;  %p2618_p4 = por %p2617_p3, %p2616_p2 }
 0x29f   : > { %v1686_v8 = vadd.f32 %v4024_v22, %v1540_v21  ;;  %v1533_v45 = vadd.f32 %v1509_v5, %v3984_v35  ;;  %v1801_v30 = vmul.f32 %v1777_v50, %v1758_v9  ;;  %v1613_v10 = vsel %vm1602_vm6, %v5063_v17, %v5106_v14  ;;  %v5107_v13 = vld [vmem:[#allocation112_spill] sm:$0xff]  ;;  %v1922_v21 = vld [vmem:[#allocation2 + $0x610] sm:$0xff]  ;;  %v1923_v50 = vld [vmem:[#allocation2 + $0x618] sm:$0xff] }
 0x2a0   : > { %v1808_v29 = vmul.f32 %v1784_v25, %v1762_v34  ;;  %v1517_v4 = vmul.f32 %v1493_v15, %v1467_v11  ;;  %v1831_v59 = vadd.f32 %v1807_v51, %v1685_v33  ;;  %v1911_v19 = vsel %vm1894_vm9, %v4122_v58, %v1861_v27  ;;  %v1785_v54 = vld [vmem:[#allocation2 + $0x598] sm:$0xff]  ;;  %v5108_v17 = vld [vmem:[#allocation113_spill] sm:$0xff]  ;;  %v5151_v31 = vld [vmem:[#allocation36_spill] sm:$0xff]  ;;  %p2619_p7 = pnand %p2618_p4, %p2612_p12 }
 0x2a1   : > { %v1679_v53 = vadd.f32 %v1655_v52, %v1533_v45  ;;  %v1384_v22 = vadd.f32 %v5107_v13, %v1311_v41  ;;  %v1907_v35 = vsel %vm1894_vm9, %v1859_v39, %v1865_v42  ;;  %v1953_v5 = vmul.f32 %v1929_v61, %v1911_v19  ;;  %v4157_v34 = vpop.permute.xlu1 %1870  ;;  %v1930_v52 = vld [vmem:[#allocation2 + $0x650] sm:$0xff]  ;;  %v1782_v19 = vld [vmem:[#allocation2 + $0x580] sm:$0xff]  ;;  %v1136_v0 = vld [vmem:[#allocation2 + $0x218] sm:$0xff] }
 0x2a2   : > { %v1663_v9 = vmul.f32 %v1639_v26, %v1613_v10  ;;  %v1759_v51 = vsel %vm1748_vm7, %v5103_v55, %v5108_v17  ;;  %v1538_v33 = vadd.f32 %v1514_v37, %v1392_v3  ;;  %v1993_v25 = vmax.f32 %v1969_v44, 0.0  ;;  %5109 = vst [vmem:[#allocation52_spill] sm:$0xff] %v4157_v34  ;;  %v1867_v11 = vpop.permute.xlu0 %1866  ;;  %v1498_v10 = vld [vmem:[#allocation2 + $0x440] sm:$0xff]  ;;  %v976_v17 = vld [vmem:[#allocation2 + $0xe8] sm:$0xff] }
 0x2a3   : > { %v1825_v15 = vadd.f32 %v1801_v30, %v1679_v53  ;;  %v1977_v41 = vadd.f32 %v1953_v5, %v1831_v59  ;;  %v1904_v39 = vsel %vm1894_vm9, %v1865_v42, %v4157_v34  ;;  %v1832_v61 = vadd.f32 %v1808_v29, %v1686_v8  ;;  %v5110_v30 = vld [vmem:[#allocation59_spill] sm:$0xff] }
 0x2a4   : > { %v1541_v48 = vadd.f32 %v1517_v4, %v1395_v2  ;;  %v1946_v1 = vmul.f32 %v1922_v21, %v1907_v35  ;;  %v1947_v45 = vmul.f32 %v1923_v50, %v1904_v39  ;;  %v1908_v26 = vsel %vm1894_vm9, %v1861_v27, %v1867_v11  ;;  %v1931_v2 = vld [vmem:[#allocation2 + $0x658] sm:$0xff]  ;;  %v1774_v21 = vld [vmem:[#allocation2 + $0x540] sm:$0xff] }
 0x2a5   : > { %v1530_v55 = vadd.f32 %v3980_v18, %v1384_v22  ;;  %v1809_v37 = vmul.f32 %v1785_v54, %v1759_v51  ;;  %v2001_v3 = vmax.f32 %v1977_v41, 0.0  ;;  %v1954_v44 = vmul.f32 %v1930_v52, %v1908_v26  ;;  %v4169_v29 = vpop.permute.xlu1 %1412  ;;  %v5113_v35 = vld [vmem:[#allocation124_spill] sm:$0xff]  ;;  %v5144_v34 = vld [vmem:[#allocation31_spill] sm:$0xff] }
 0x2a6   : > { %v1768_v59 = vsel %vm1748_vm7, %v5110_v30, %v5080_v20  ;;  %v1687_v42 = vadd.f32 %v1663_v9, %v1541_v48  ;;  %v2017_v8 = vmin.f32 %v1993_v25, 6.0  ;;  %5111 = vst [vmem:[#allocation54_spill] sm:$0xff] %v4169_v29  ;;  %v1684_v4 = vadd.f32 %v4020_v16, %v1538_v33  ;;  %v4176_v22 = vpop.permute.xlu0 %1872  ;;  %v1928_v51 = vld [vmem:[#allocation2 + $0x640] sm:$0xff]  ;;  %v5114_v25 = vld [vmem:[#allocation25_spill] sm:$0xff] }
 0x2a7   : > { %v2025_v27 = vmin.f32 %v2001_v3, 6.0  ;;  %v1971_v53 = vadd.f32 %v1947_v45, %v1825_v15  ;;  %v1978_v18 = vadd.f32 %v1954_v44, %v1832_v61  ;;  %v1477_v13 = vsel %vm1456_vm8, %v4169_v29, %v3899_v12  ;;  %5112 = vst [vmem:[#allocation49_spill] sm:$0xff] %v4176_v22  ;;  %v5116_v61 = vld [vmem:[#allocation17_spill] sm:$0xff] }
 0x2a8   : > { %v1970_v20 = vadd.f32 %v1946_v1, %v4005_v36  ;;  %v1400_v5 = vadd.f32 %v5113_v35, %v3876_v38  ;;  %v1522_v50 = vmul.f32 %v1498_v10, %v1477_v13  ;;  %v1905_v16 = vsel %vm1894_vm9, %v1867_v11, %v4176_v22  ;;  %v1920_v36 = vld [vmem:[#allocation2 + $0x600] sm:$0xff]  ;;  %v5118_v35 = vld [vmem:[#allocation87_spill] sm:$0xff] }
 0x2a9   : > { %v1833_v9 = vadd.f32 %v1809_v37, %v1687_v42  ;;  %v1955_v54 = vmul.f32 %v1931_v2, %v1905_v16  ;;  %v2493_v33 = vpack.c.bf16 %v2025_v27, %v2017_v8  ;;  %v1676_v52 = vadd.f32 %v5114_v25, %v1530_v55  ;;  %v4187_v39 = vpop.permute.xlu1 %1848  ;;  %v1284_v27 = vld [vmem:[#allocation2 + $0x2e8] sm:$0xff]  ;;  %v1286_v25 = vld [vmem:[#allocation2 + $0x2f8] sm:$0xff] }
 0x2aa   : > { %v1806_v12 = vmul.f32 %v1782_v19, %v1768_v59  ;;  %v2002_v15 = vmax.f32 %v1978_v18, 0.0  ;;  %v4185_v41 = vadd.f32 %v1522_v50, %v1400_v5  ;;  %5115 = vst [vmem:[#allocation51_spill] sm:$0xff] %v4187_v39  ;;  %v1798_v38 = vmul.f32 %v1774_v21, %v5116_v61  ;;  %v4194_v45 = vpop.permute.xlu0 %1846  ;;  %v1283_v19 = vld [vmem:[#allocation2 + $0x2e0] sm:$0xff] }
 0x2ab   : > { %v1995_v48 = vmax.f32 %v1971_v53, 0.0  ;;  %v1979_v1 = vadd.f32 %v1955_v54, %v1833_v9  ;;  %v1914_v11 = vsel %vm1894_vm9, %v4187_v39, %v4122_v58  ;;  %2494 = vmatprep.subr.bf16.mxu0 %v2493_v33  ;;  %5117 = vst [vmem:[#allocation56_spill] sm:$0xff] %v4194_v45  ;;  %v1994_v26 = vmax.f32 %v1970_v20, 0.0  ;;  %v1285_v33 = vld [vmem:[#allocation2 + $0x2f0] sm:$0xff] }
 0x2ac   : > { %v1830_v55 = vadd.f32 %v1806_v12, %v1684_v4  ;;  %v1952_v37 = vmul.f32 %v1928_v51, %v1914_v11  ;;  %v1913_v3 = vsel %vm1894_vm9, %v4194_v45, %v4085_v49  ;;  %v1822_v10 = vadd.f32 %v1798_v38, %v1676_v52  ;;  %v5120_v38 = vld [vmem:[#allocation38_spill] sm:$0xff]  ;;  %v975_v45 = vld [vmem:[#allocation2 + $0xe0] sm:$0xff] }
 0x2ad   : > { %v2003_v44 = vmax.f32 %v1979_v1, 0.0  ;;  %v1944_v59 = vmul.f32 %v1920_v36, %v1913_v3  ;;  %v2026_v42 = vmin.f32 %v2002_v15, 6.0  ;;  %v1224_v2 = vpop.permute.xlu1 %1223  ;;  %v2019_v58 = vmin.f32 %v1995_v48, 6.0  ;;  %v5143_v39 = vld [vmem:[#allocation94_spill] sm:$0xff] }
 0x2ae   : > { %v1976_v8 = vadd.f32 %v1952_v37, %v1830_v55  ;;  %v1218_v13 = vpop.permute.xlu0 %1217  ;;  %v2018_v21 = vmin.f32 %v1994_v26, 6.0  ;;  %v955_v22 = vsel %vm945_vm3, %v5144_v34, %v5143_v39 }
 0x2af   : > { %v2027_v53 = vmin.f32 %v2003_v44, 6.0  ;;  %v1968_v18 = vadd.f32 %v1944_v59, %v1822_v10  ;;  %v1246_v20 = vsel %vm1237_vm5, %v1218_v13, %v1224_v2  ;;  %v1249_v49 = vsel %vm1237_vm5, %v5118_v35, %v1218_v13  ;;  %v842_v10 = vld [vmem:[#allocation2 + $0x88] sm:$0xff] }
 0x2b0   : > { %v2000_v4 = vmax.f32 %v1976_v8, 0.0  ;;  %v1307_v50 = vmul.f32 %v1283_v19, %v1249_v49  ;;  %v1308_v16 = vmul.f32 %v1284_v27, %v1246_v20  ;;  %v2499_v52 = vpack.c.bf16 %v2026_v42, %v2018_v21  ;;  %v5122_v59 = vld [vmem:[#allocation77_spill] sm:$0xff]  ;;  %v843_v19 = vld [vmem:[#allocation2 + $0x90] sm:$0xff]  ;;  %v5125_v27 = vld [vmem:[#allocation76_spill] sm:$0xff] }
 0x2b1   : > { %v1992_v5 = vmax.f32 %v1968_v18, 0.0  ;;  %v2497_v9 = vpack.c.bf16 %v2027_v53, %v2019_v58  ;;  %v4205_v51 = vpop.permute.xlu1 %1564  ;;  %v5123_v42 = vld [vmem:[#allocation73_spill] sm:$0xff]  ;;  %v5126_v58 = vld [vmem:[#allocation79_spill] sm:$0xff]  ;;  %v989_v21 = vld [vmem:[#allocation2 + $0x150] sm:$0xff] }
 0x2b2   : > { %v2024_v54 = vmin.f32 %v2000_v4, 6.0  ;;  %v4208_v15 = vadd.f32 %v1307_v50, %v3910_v56  ;;  %v4211_v36 = vadd.f32 %v1308_v16, %v3912_v32  ;;  %v1230_v61 = vpop.permute.xlu0 %1229  ;;  %v821_v8 = vsel %vm800_vm2, %v5123_v42, %v5122_v59  ;;  %v988_v13 = vld [vmem:[#allocation2 + $0x148] sm:$0xff]  ;;  %v5127_v4 = vld [vmem:[#allocation80_spill] sm:$0xff]  ;;  %v990_v16 = vld [vmem:[#allocation2 + $0x158] sm:$0xff] }
 0x2b3   : > { %v2016_v12 = vmin.f32 %v1992_v5, 6.0  ;;  %2498 = vmatprep.subr.bf16.mxu1 %v2497_v9  ;;  %v1240_v48 = vsel %vm1237_vm5, %v1230_v61, %v5120_v38  ;;  %v1243_v1 = vsel %vm1237_vm5, %v1224_v2, %v1230_v61  ;;  %v815_v53 = vsel %vm800_vm2, %v5125_v27, %v5126_v58  ;;  %v5128_v20 = vld [vmem:[#allocation81_spill] sm:$0xff]  ;;  %v5129_v5 = vld [vmem:[#allocation78_spill] sm:$0xff]  ;;  %v5130_v9 = vld [vmem:[#allocation83_spill] sm:$0xff] }
 0x2b4   : > { %5119 = vst [vmem:[#allocation58_spill] sm:$0xff] %v4211_v36  ;;  %2500 = vmatpush1.bf16.msra.mxu1 %v2499_v52  ;;  %v1309_v11 = vmul.f32 %v1285_v33, %v1243_v1  ;;  %v1310_v26 = vmul.f32 %v1286_v25, %v1240_v48  ;;  %v866_v18 = vmul.f32 %v842_v10, %v821_v8  ;;  %v1354_v61 = vld [vmem:[#allocation2 + $0x390] sm:$0xff]  ;;  %v1355_v38 = vld [vmem:[#allocation2 + $0x398] sm:$0xff]  ;;  %v1340_v8 = vld [vmem:[#allocation2 + $0x320] sm:$0xff] }
 0x2b5   : > { %v2495_v55 = vpack.c.bf16 %v2024_v54, %v2016_v12  ;;  %v4218_v37 = vpop.permute.xlu1 %1576  ;;  %v963_v49 = vsel %vm945_vm3, %v5128_v20, %v5127_v4  ;;  %v966_v50 = vsel %vm945_vm3, %v5129_v5, %v5128_v20  ;;  %v960_v54 = vsel %vm945_vm3, %v5127_v4, %v5130_v9  ;;  %v1353_v12 = vld [vmem:[#allocation2 + $0x388] sm:$0xff]  ;;  %v5131_v10 = vld [vmem:[#allocation86_spill] sm:$0xff]  ;;  %v5133_v58 = vld [vmem:[#allocation16_spill] sm:$0xff] }
 0x2b6   : > { %v4221_v56 = vadd.f32 %v1309_v11, %v3942_v57  ;;  %v4224_v32 = vadd.f32 %v1310_v26, %v3944_v7  ;;  %v4226_v3 = vpop.permute.xlu0 %1570  ;;  %v818_v57 = vsel %vm800_vm2, %v5122_v59, %v5125_v27  ;;  %v844_v7 = vld [vmem:[#allocation2 + $0x98] sm:$0xff]  ;;  %v1012_v1 = vmul.f32 %v988_v13, %v966_v50  ;;  %v5132_v59 = vld [vmem:[#allocation72_spill] sm:$0xff]  ;;  %v5136_v5 = vld [vmem:[#allocation85_spill] sm:$0xff] }
 0x2b7   : > { %2496 = vmatpush1.bf16.msra.mxu0 %v2495_v55  ;;  %v867_v25 = vmul.f32 %v843_v19, %v818_v57  ;;  %v868_v52 = vmul.f32 %v844_v7, %v815_v53  ;;  %v1013_v11 = vmul.f32 %v989_v21, %v963_v49  ;;  %v1014_v26 = vmul.f32 %v990_v16, %v960_v54  ;;  %v1134_v55 = vld [vmem:[#allocation2 + $0x208] sm:$0xff]  ;;  %v5134_v57 = vld [vmem:[#allocation14_spill] sm:$0xff]  ;;  %v829_v16 = vld [vmem:[#allocation2 + $0x20] sm:$0xff] }
 0x2b8   : > { %5121 = vst [vmem:[#allocation40_spill] sm:$0xff] %v4221_v56  ;;  %v1112_v42 = vsel %vm1091_vm4, %v5132_v59, %v5131_v10  ;;  %v890_v27 = vadd.f32 %v866_v18, %v5014_v23  ;;  %v4266_v19 = vmul.f32 %v1353_v12, %v5133_v58  ;;  %v4269_v7 = vmul.f32 %v1354_v61, %v5134_v57  ;;  %v5135_v53 = vld [vmem:[#allocation18_spill] sm:$0xff]  ;;  %v1280_v49 = vld [vmem:[#allocation2 + $0x2c8] sm:$0xff]  ;;  %v5139_v54 = vld [vmem:[#allocation28_spill] sm:$0xff] }
 0x2b9   : > { %v4228_v44 = vpop.permute.xlu1 %1584  ;;  %v4272_v4 = vmul.f32 %v1355_v38, %v5135_v53  ;;  %v891_v21 = vadd.f32 %v867_v25, %v5014_v23  ;;  %v892_v20 = vadd.f32 %v868_v52, %v5014_v23  ;;  %v5137_v50 = vld [vmem:[#allocation82_spill] sm:$0xff]  ;;  %v5140_v59 = vld [vmem:[#allocation84_spill] sm:$0xff]  ;;  %v5141_v52 = vld [vmem:[#allocation75_spill] sm:$0xff]  ;;  %v1158_v57 = vmul.f32 %v1134_v55, %v1112_v42 }
 0x2ba   : > { %v4234_v2 = vpop.permute.xlu0 %1582  ;;  %v1258_v18 = vsel %vm1237_vm5, %v5137_v50, %v5136_v5  ;;  %v5138_v9 = vld [vmem:[#allocation90_spill] sm:$0xff]  ;;  %v1255_v23 = vsel %vm1237_vm5, %v5136_v5, %v5140_v59  ;;  %v1109_v58 = vsel %vm1091_vm4, %v5131_v10, %v5141_v52  ;;  %v5142_v53 = vld [vmem:[#allocation27_spill] sm:$0xff]  ;;  %v1036_v56 = vadd.f32 %v1012_v1, %v890_v27  ;;  %v1644_v5 = vld [vmem:[#allocation2 + $0x500] sm:$0xff] }
 0x2bb   : > { %5124 = vst [vmem:[#allocation62_spill] sm:$0xff] %v4234_v2  ;;  %v810_v12 = vsel %vm800_vm2, %v5139_v54, %v5138_v9  ;;  %v1281_v38 = vld [vmem:[#allocation2 + $0x2d0] sm:$0xff]  ;;  %v4297_v50 = vmul.f32 %v1340_v8, %v5142_v53  ;;  %v1037_v54 = vadd.f32 %v1013_v11, %v891_v21  ;;  %v1038_v36 = vadd.f32 %v1014_v26, %v892_v20  ;;  %v5145_v8 = vld [vmem:[#allocation92_spill] sm:$0xff]  ;;  %v5146_v1 = vld [vmem:[#allocation95_spill] sm:$0xff] }
 0x2bc   : > { %v1135_v25 = vld [vmem:[#allocation2 + $0x210] sm:$0xff]  ;;  %v1304_v30 = vmul.f32 %v1280_v49, %v1258_v18  ;;  %v1106_v55 = vsel %vm1091_vm4, %v5141_v52, %v5041_v62  ;;  %v853_v10 = vmul.f32 %v829_v16, %v810_v12  ;;  %v804_v11 = vsel %vm800_vm2, %v5146_v1, %v5145_v8  ;;  %v830_v21 = vld [vmem:[#allocation2 + $0x28] sm:$0xff]  ;;  %v5148_v52 = vld [vmem:[#allocation96_spill] sm:$0xff] }
 0x2bd   : > { %v4256_v33 = vpop.permute.xlu1 %1590  ;;  %v831_v42 = vld [vmem:[#allocation2 + $0x30] sm:$0xff]  ;;  %v4313_v27 = vmul.f32 %v1281_v38, %v1255_v23  ;;  %v1159_v34 = vmul.f32 %v1135_v25, %v1109_v58  ;;  %v807_v20 = vsel %vm800_vm2, %v5138_v9, %v5146_v1  ;;  %v1182_v18 = vadd.f32 %v1158_v57, %v1036_v56  ;;  %v5150_v53 = vld [vmem:[#allocation89_spill] sm:$0xff] }
 0x2be   : > { %v4258_v48 = vpop.permute.xlu0 %1586  ;;  %v999_v16 = vmul.f32 %v975_v45, %v955_v22  ;;  %v977_v12 = vld [vmem:[#allocation2 + $0xf0] sm:$0xff]  ;;  %v1160_v58 = vmul.f32 %v1136_v0, %v1106_v55  ;;  %v1101_v9 = vsel %vm1091_vm4, %v5151_v31, %v5150_v53  ;;  %v855_v1 = vmul.f32 %v831_v42, %v804_v11  ;;  %v1121_v45 = vld [vmem:[#allocation2 + $0x1a0] sm:$0xff]  ;;  %v5154_v11 = vld [vmem:[#allocation39_spill] sm:$0xff] }
 0x2bf   : > { %v5149_v38 = vld [vmem:[#allocation106_spill] sm:$0xff]  ;;  %v877_v56 = vadd.f32 %v853_v10, %v5088_v60  ;;  %v854_v57 = vmul.f32 %v830_v21, %v807_v20  ;;  %v801_v0 = vsel %vm800_vm2, %v5145_v8, %v5066_v24  ;;  %v1183_v55 = vadd.f32 %v1159_v34, %v1037_v54  ;;  %v1267_v42 = vld [vmem:[#allocation2 + $0x260] sm:$0xff] }
 0x2c0   : > { %v949_v23 = vsel %vm945_vm3, %v5149_v38, %v5148_v52  ;;  %v952_v22 = vsel %vm945_vm3, %v5143_v39, %v5149_v38  ;;  %v1252_v39 = vsel %vm1237_vm5, %v5140_v59, %v5118_v35  ;;  %v5153_v10 = vld [vmem:[#allocation98_spill] sm:$0xff]  ;;  %v1328_v24 = vadd.f32 %v1304_v30, %v1182_v18  ;;  %v978_v38 = vld [vmem:[#allocation2 + $0xf8] sm:$0xff] }
 0x2c1   : > { %v4274_v13 = vpop.permute.xlu1 %1596  ;;  %v1247_v21 = vsel %vm1237_vm5, %v5154_v11, %v5153_v10  ;;  %v1001_v20 = vmul.f32 %v977_v12, %v949_v23  ;;  %v1023_v8 = vadd.f32 %v999_v16, %v877_v56  ;;  %v946_v54 = vsel %vm945_vm3, %v5148_v52, %v5070_v47  ;;  %v1124_v23 = vld [vmem:[#allocation2 + $0x1b8] sm:$0xff]  ;;  %v1123_v16 = vld [vmem:[#allocation2 + $0x1b0] sm:$0xff]  ;;  %v5156_v56 = vld [vmem:[#allocation105_spill] sm:$0xff] }
 0x2c2   : > { %v4286_v61 = vpop.permute.xlu0 %1592  ;;  %v1000_v34 = vmul.f32 %v976_v17, %v952_v22  ;;  %v1184_v35 = vadd.f32 %v1160_v58, %v1038_v36  ;;  %v1145_v59 = vmul.f32 %v1121_v45, %v1101_v9  ;;  %v878_v11 = vadd.f32 %v854_v57, %v5088_v60  ;;  %v5155_v30 = vld [vmem:[#allocation91_spill] sm:$0xff]  ;;  %v5158_v45 = vld [vmem:[#allocation100_spill] sm:$0xff] }
 0x2c3   : > { %v1291_v12 = vmul.f32 %v1267_v42, %v1247_v21  ;;  %v1092_v18 = vsel %vm1091_vm4, %v5155_v30, %v5082_v63  ;;  %v1095_v47 = vsel %vm1091_vm4, %v5156_v56, %v5155_v30  ;;  %v1002_v52 = vmul.f32 %v978_v38, %v946_v54  ;;  %v1270_v22 = vld [vmem:[#allocation2 + $0x278] sm:$0xff]  ;;  %v1269_v42 = vld [vmem:[#allocation2 + $0x270] sm:$0xff]  ;;  %v1268_v38 = vld [vmem:[#allocation2 + $0x268] sm:$0xff] }
 0x2c4   : > { %v1098_v58 = vsel %vm1091_vm4, %v5150_v53, %v5156_v56  ;;  %v1169_v63 = vadd.f32 %v1145_v59, %v1023_v8  ;;  %v1238_v57 = vsel %vm1237_vm5, %v5158_v45, %v5085_v46  ;;  %v1148_v53 = vmul.f32 %v1124_v23, %v1092_v18  ;;  %v1341_v54 = vld [vmem:[#allocation2 + $0x328] sm:$0xff]  ;;  %v1342_v59 = vld [vmem:[#allocation2 + $0x330] sm:$0xff]  ;;  %v1343_v30 = vld [vmem:[#allocation2 + $0x338] sm:$0xff] }
 0x2c5   : > { %v4311_v26 = vpop.permute.xlu1 %1558  ;;  %v1329_v46 = vadd.f32 %v4313_v27, %v1183_v55  ;;  %v1294_v23 = vmul.f32 %v1270_v22, %v1238_v57  ;;  %v1486_v57 = vld [vmem:[#allocation2 + $0x3e0] sm:$0xff] }
 0x2c6   : > { %5147 = vst [vmem:[#allocation42_spill] sm:$0xff] %v4311_v26  ;;  %v1623_v62 = vsel %vm1602_vm6, %v4311_v26, %v4205_v51  ;;  %v4323_v49 = vpop.permute.xlu0 %1598  ;;  %v832_v26 = vld [vmem:[#allocation2 + $0x38] sm:$0xff] }
 0x2c7   : > { %v1668_v25 = vmul.f32 %v1644_v5, %v1623_v62  ;;  %v1402_v22 = vadd.f32 %v4269_v7, %v1329_v46  ;;  %v1487_v7 = vld [vmem:[#allocation2 + $0x3e8] sm:$0xff] }
 0x2c9   : > { %v4343_v5 = vadd.f32 %v1668_v25, %v4185_v41  ;;  %v4345_v31 = vpop.permute.xlu1 %1716  ;;  %v1282_v41 = vld [vmem:[#allocation2 + $0x2d8] sm:$0xff]  ;;  %v879_v25 = vadd.f32 %v855_v1, %v5088_v60 }
 0x2ca   : > { %v4355_v62 = vpop.permute.xlu0 %1710  ;;  %v1306_v36 = vmul.f32 %v1282_v41, %v1252_v39  ;;  %v5159_v39 = vld [vmem:[#allocation107_spill] sm:$0xff] }
 0x2cb   : > { %5152 = vst [vmem:[#allocation44_spill] sm:$0xff] %v4343_v5  ;;  %v856_v5 = vmul.f32 %v832_v26, %v801_v0  ;;  %v1122_v26 = vld [vmem:[#allocation2 + $0x1a8] sm:$0xff]  ;;  %v1025_v9 = vadd.f32 %v1001_v20, %v879_v25  ;;  %v1024_v0 = vadd.f32 %v1000_v34, %v878_v11  ;;  %v1241_v21 = vsel %vm1237_vm5, %v5159_v39, %v5158_v45  ;;  %v1356_v45 = vld [vmem:[#allocation2 + $0x3a0] sm:$0xff] }
 0x2cc   : > { %v1147_v20 = vmul.f32 %v1123_v16, %v1095_v47  ;;  %v1244_v8 = vsel %vm1237_vm5, %v5153_v10, %v5159_v39  ;;  %v1330_v34 = vadd.f32 %v1306_v36, %v1184_v35  ;;  %v1315_v25 = vadd.f32 %v1291_v12, %v1169_v63  ;;  %v1499_v35 = vld [vmem:[#allocation2 + $0x448] sm:$0xff]  ;;  %v1500_v12 = vld [vmem:[#allocation2 + $0x450] sm:$0xff]  ;;  %v5161_v36 = vld [vmem:[#allocation35_spill] sm:$0xff] }
 0x2cd   : > { %v4371_v17 = vpop.permute.xlu1 %1728  ;;  %v880_v41 = vadd.f32 %v856_v5, %v5088_v60  ;;  %v1146_v11 = vmul.f32 %v1122_v26, %v1098_v58  ;;  %v1359_v60 = vld [vmem:[#allocation2 + $0x3b8] sm:$0xff]  ;;  %v1293_v16 = vmul.f32 %v1269_v42, %v1241_v21  ;;  %v1292_v10 = vmul.f32 %v1268_v38, %v1244_v8  ;;  %v5162_v58 = vld [vmem:[#allocation65_spill] sm:$0xff] }
 0x2ce   : > { %v4377_v1 = vpop.permute.xlu0 %1722  ;;  %v1171_v18 = vadd.f32 %v1147_v20, %v1025_v9  ;;  %v1365_v39 = vmul.f32 %v1341_v54, %v3196_v40  ;;  %v1367_v26 = vmul.f32 %v1343_v30, %v5161_v36  ;;  %v1380_v63 = vmul.f32 %v1356_v45, %v5162_v58  ;;  %v5164_v42 = vld [vmem:[#allocation93_spill] sm:$0xff]  ;;  %v1501_v38 = vld [vmem:[#allocation2 + $0x458] sm:$0xff] }
 0x2cf   : > { %5157 = vst [vmem:[#allocation60_spill] sm:$0xff] %v4377_v1  ;;  %v1026_v5 = vadd.f32 %v1002_v52, %v880_v41  ;;  %v1170_v29 = vadd.f32 %v1146_v11, %v1024_v0  ;;  %v5160_v1 = vld [vmem:[#allocation30_spill] sm:$0xff]  ;;  %v1383_v52 = vmul.f32 %v1359_v60, %v5017_v28  ;;  %v1401_v9 = vadd.f32 %v4266_v19, %v1328_v24  ;;  %v5166_v8 = vld [vmem:[#allocation13_spill] sm:$0xff]  ;;  %v1489_v30 = vld [vmem:[#allocation2 + $0x3f8] sm:$0xff] }
 0x2d0   : > { %v1366_v27 = vmul.f32 %v1342_v59, %v5160_v1  ;;  %v5163_v0 = vld [vmem:[#allocation26_spill] sm:$0xff]  ;;  %v1403_v1 = vadd.f32 %v4272_v4, %v1330_v34  ;;  %v1388_v20 = vadd.f32 %v4297_v50, %v1315_v25  ;;  %v5168_v59 = vld [vmem:[#allocation21_spill] sm:$0xff]  ;;  %v5170_v45 = vld [vmem:[#allocation23_spill] sm:$0xff]  ;;  %v1614_v58 = vsel %vm1602_vm6, %v4218_v37, %v4234_v2 }
 0x2d1   : > { %v4393_v56 = vpop.permute.xlu1 %1732  ;;  %v1172_v55 = vadd.f32 %v1148_v53, %v1026_v5  ;;  %v1463_v40 = vsel %vm1456_vm8, %v5164_v42, %v5163_v0  ;;  %v1317_v53 = vadd.f32 %v1293_v16, %v1171_v18  ;;  %v5165_v28 = vld [vmem:[#allocation34_spill] sm:$0xff]  ;;  %v1316_v54 = vadd.f32 %v1292_v10, %v1170_v29  ;;  %v5171_v60 = vld [vmem:[#allocation41_spill] sm:$0xff]  ;;  %v1632_v16 = vld [vmem:[#allocation2 + $0x4a0] sm:$0xff] }
 0x2d2   : > { %v4395_v47 = vpop.permute.xlu0 %1730  ;;  %v1468_v19 = vsel %vm1456_vm8, %v5166_v8, %v5165_v28  ;;  %v1523_v46 = vmul.f32 %v1499_v35, %v5168_v59  ;;  %v5169_v11 = vld [vmem:[#allocation74_spill] sm:$0xff]  ;;  %v1478_v50 = vsel %vm1456_vm8, %v5171_v60, %v5170_v45  ;;  %v1510_v25 = vmul.f32 %v1486_v57, %v1463_v40  ;;  %v1645_v5 = vld [vmem:[#allocation2 + $0x508] sm:$0xff]  ;;  %v1647_v36 = vld [vmem:[#allocation2 + $0x518] sm:$0xff] }
 0x2d3   : > { %v1318_v41 = vadd.f32 %v1294_v23, %v1172_v55  ;;  %v1524_v4 = vmul.f32 %v1500_v12, %v5169_v11  ;;  %v1488_v34 = vld [vmem:[#allocation2 + $0x3f0] sm:$0xff]  ;;  %v1617_v18 = vsel %vm1602_vm6, %v4226_v3, %v4218_v37  ;;  %v1620_v29 = vsel %vm1602_vm6, %v4205_v51, %v4226_v3  ;;  %v1633_v57 = vld [vmem:[#allocation2 + $0x4a8] sm:$0xff] }
 0x2d4   : > { %v1646_v23 = vld [vmem:[#allocation2 + $0x510] sm:$0xff]  ;;  %v1609_v10 = vsel %vm1602_vm6, %v5096_v43, %v4228_v44  ;;  %v1525_v55 = vmul.f32 %v1501_v38, %v1468_v19  ;;  %v1606_v51 = vsel %vm1602_vm6, %v4228_v44, %v4256_v33  ;;  %v1390_v0 = vadd.f32 %v1366_v27, %v1317_v53 }
 0x2d5   : > { %v4409_v21 = vpop.permute.xlu1 %1738  ;;  %v5172_v35 = vld [vmem:[#allocation22_spill] sm:$0xff]  ;;  %v1391_v42 = vadd.f32 %v1367_v26, %v1318_v41  ;;  %v1513_v38 = vmul.f32 %v1489_v30, %v1478_v50  ;;  %v1389_v19 = vadd.f32 %v1365_v39, %v1316_v54  ;;  %v1670_v59 = vmul.f32 %v1646_v23, %v1617_v18  ;;  %v1635_v50 = vld [vmem:[#allocation2 + $0x4b8] sm:$0xff]  ;;  %v5175_v18 = vld [vmem:[#allocation48_spill] sm:$0xff] }
 0x2d6   : > { %v4416_v24 = vpop.permute.xlu0 %1736  ;;  %v1511_v12 = vmul.f32 %v1487_v7, %v5172_v35  ;;  %v5173_v43 = vld [vmem:[#allocation50_spill] sm:$0xff]  ;;  %v1669_v7 = vmul.f32 %v1645_v5, %v1620_v29  ;;  %v1656_v11 = vmul.f32 %v1632_v16, %v1609_v10  ;;  %v1547_v37 = vadd.f32 %v1523_v46, %v1401_v9  ;;  %v1641_v5 = vld [vmem:[#allocation2 + $0x4e8] sm:$0xff]  ;;  %v1793_v16 = vld [vmem:[#allocation2 + $0x5d8] sm:$0xff] }
 0x2d7   : > { %5167 = vst [vmem:[#allocation64_spill] sm:$0xff] %v4416_v24  ;;  %v1512_v40 = vmul.f32 %v1488_v34, %v5173_v43  ;;  %v1548_v45 = vadd.f32 %v1524_v4, %v1402_v22  ;;  %v1671_v60 = vmul.f32 %v1647_v36, %v1614_v58  ;;  %v1657_v35 = vmul.f32 %v1633_v57, %v1606_v51  ;;  %v1640_v24 = vld [vmem:[#allocation2 + $0x4e0] sm:$0xff]  ;;  %v1634_v53 = vld [vmem:[#allocation2 + $0x4b0] sm:$0xff]  ;;  %v5178_v51 = vld [vmem:[#allocation113_spill] sm:$0xff] }
 0x2d8   : > { %v1534_v2 = vadd.f32 %v1510_v25, %v1388_v20  ;;  %v1549_v28 = vadd.f32 %v1525_v55, %v1403_v1  ;;  %v1535_v44 = vadd.f32 %v1511_v12, %v1389_v19  ;;  %v1610_v27 = vsel %vm1602_vm6, %v5106_v14, %v4258_v48  ;;  %v5174_v25 = vld [vmem:[#allocation24_spill] sm:$0xff]  ;;  %v1642_v23 = vld [vmem:[#allocation2 + $0x4f0] sm:$0xff] }
 0x2d9   : > { %v4445_v3 = vpop.permute.xlu1 %1744  ;;  %v1536_v41 = vadd.f32 %v1512_v40, %v1390_v0  ;;  %v1537_v39 = vadd.f32 %v1513_v38, %v1391_v42  ;;  %v1603_v9 = vsel %vm1602_vm6, %v4256_v33, %v4274_v13  ;;  %v4461_v22 = vadd.f32 %v1380_v63, %v4208_v15  ;;  %v1505_v15 = vld [vmem:[#allocation2 + $0x478] sm:$0xff]  ;;  %v1792_v29 = vld [vmem:[#allocation2 + $0x5d0] sm:$0xff]  ;;  %v5176_v10 = vld [vmem:[#allocation60_spill] sm:$0xff] }
 0x2da   : > { %v4448_v8 = vpop.permute.xlu0 %1742  ;;  %v1693_v20 = vadd.f32 %v1669_v7, %v1547_v37  ;;  %v1694_v54 = vadd.f32 %v1670_v59, %v1548_v45  ;;  %v4465_v46 = vadd.f32 %v1656_v11, %v1534_v2  ;;  %v1407_v14 = vadd.f32 %v1383_v52, %v4224_v32  ;;  %v1791_v52 = vld [vmem:[#allocation2 + $0x5c8] sm:$0xff]  ;;  %v5177_v12 = vld [vmem:[#allocation54_spill] sm:$0xff]  ;;  %v1786_v57 = vld [vmem:[#allocation2 + $0x5a0] sm:$0xff] }
 0x2db   : > { %v1695_v4 = vadd.f32 %v1671_v60, %v1549_v28  ;;  %v4468_v34 = vadd.f32 %v1657_v35, %v1535_v44  ;;  %v1664_v30 = vmul.f32 %v1640_v24, %v1610_v27  ;;  %v1624_v33 = vsel %vm1602_vm6, %v4274_v13, %v5174_v25  ;;  %v1643_v24 = vld [vmem:[#allocation2 + $0x4f8] sm:$0xff]  ;;  %v1778_v42 = vld [vmem:[#allocation2 + $0x560] sm:$0xff]  ;;  %v1787_v59 = vld [vmem:[#allocation2 + $0x5a8] sm:$0xff] }
 0x2dc   : > { %v1658_v63 = vmul.f32 %v1634_v53, %v1603_v9  ;;  %v1607_v2 = vsel %vm1602_vm6, %v4258_v48, %v4286_v61  ;;  %v1604_v32 = vsel %vm1602_vm6, %v4286_v61, %v4323_v49  ;;  %v1766_v13 = vsel %vm1748_vm7, %v4355_v62, %v4345_v31  ;;  %v5179_v43 = vld [vmem:[#allocation104_spill] sm:$0xff]  ;;  %v1937_v27 = vld [vmem:[#allocation2 + $0x688] sm:$0xff]  ;;  %v5180_v53 = vld [vmem:[#allocation47_spill] sm:$0xff] }
 0x2dd   : > { %v4454_v26 = vpop.permute.xlu1 %1442  ;;  %v1625_v48 = vsel %vm1602_vm6, %v4323_v49, %v5175_v18  ;;  %v1760_v61 = vsel %vm1748_vm7, %v5176_v10, %v4371_v17  ;;  %v1763_v55 = vsel %vm1748_vm7, %v4345_v31, %v5176_v10  ;;  %v1659_v49 = vmul.f32 %v1635_v50, %v1624_v33  ;;  %v1779_v33 = vld [vmem:[#allocation2 + $0x568] sm:$0xff] }
 0x2de   : > { %v4463_v1 = vpop.permute.xlu0 %1704  ;;  %v1756_v0 = vsel %vm1748_vm7, %v5178_v51, %v4393_v56  ;;  %v1755_v31 = vsel %vm1748_vm7, %v5179_v43, %v4395_v47  ;;  %v1665_v38 = vmul.f32 %v1641_v5, %v1607_v2  ;;  %v1666_v19 = vmul.f32 %v1642_v23, %v1604_v32  ;;  %v1780_v43 = vld [vmem:[#allocation2 + $0x570] sm:$0xff] }
 0x2df   : > { %v1815_v7 = vmul.f32 %v1791_v52, %v1766_v13  ;;  %v1753_v11 = vsel %vm1748_vm7, %v4393_v56, %v4409_v21  ;;  %v1667_v37 = vmul.f32 %v1643_v24, %v1625_v48  ;;  %v1816_v45 = vmul.f32 %v1792_v29, %v1763_v55  ;;  %v5183_v13 = vld [vmem:[#allocation111_spill] sm:$0xff]  ;;  %v5184_v29 = vld [vmem:[#allocation88_spill] sm:$0xff] }
 0x2e0   : > { %v1817_v60 = vmul.f32 %v1793_v16, %v1760_v61  ;;  %v1688_v9 = vadd.f32 %v1664_v30, %v5180_v53  ;;  %v1810_v50 = vmul.f32 %v1786_v57, %v1756_v0  ;;  %v1802_v25 = vmul.f32 %v1778_v42, %v1755_v31  ;;  %v5182_v30 = vld [vmem:[#allocation45_spill] sm:$0xff]  ;;  %v5185_v0 = vld [vmem:[#allocation59_spill] sm:$0xff]  ;;  %v1502_v53 = vld [vmem:[#allocation2 + $0x460] sm:$0xff] }
 0x2e1   : > { %v4486_v28 = vpop.permute.xlu1 %1454  ;;  %v4527_v56 = vadd.f32 %v1658_v63, %v1536_v41  ;;  %v4529_v23 = vadd.f32 %v1659_v49, %v1537_v39  ;;  %v1689_v52 = vadd.f32 %v1665_v38, %v5182_v30  ;;  %v1690_v24 = vadd.f32 %v1666_v19, %v5183_v13  ;;  %v1938_v39 = vld [vmem:[#allocation2 + $0x690] sm:$0xff]  ;;  %v1939_v63 = vld [vmem:[#allocation2 + $0x698] sm:$0xff]  ;;  %v1932_v38 = vld [vmem:[#allocation2 + $0x660] sm:$0xff] }
 0x2e2   : > { %v1480_v36 = vsel %vm1456_vm8, %v4486_v28, %v5177_v12  ;;  %v4504_v58 = vpop.permute.xlu0 %1448  ;;  %v1839_v18 = vadd.f32 %v1815_v7, %v1693_v20  ;;  %v1691_v16 = vadd.f32 %v1667_v37, %v5184_v29  ;;  %v1841_v10 = vadd.f32 %v1817_v60, %v1695_v4  ;;  %v1789_v42 = vld [vmem:[#allocation2 + $0x5b8] sm:$0xff] }
 0x2e3   : > { %v1529_v40 = vmul.f32 %v1505_v15, %v1480_v36  ;;  %v5181_v15 = vld [vmem:[#allocation64_spill] sm:$0xff]  ;;  %v1834_v55 = vadd.f32 %v1810_v50, %v1688_v9  ;;  %v1826_v12 = vadd.f32 %v1802_v25, %v4465_v46  ;;  %v1788_v36 = vld [vmem:[#allocation2 + $0x5b0] sm:$0xff]  ;;  %v1750_v49 = vsel %vm1748_vm7, %v4409_v21, %v4445_v3  ;;  %v5188_v25 = vld [vmem:[#allocation49_spill] sm:$0xff] }
 0x2e4   : > { %v1752_v5 = vsel %vm1748_vm7, %v4395_v47, %v5181_v15  ;;  %v1840_v47 = vadd.f32 %v1816_v45, %v1694_v54  ;;  %v1771_v54 = vsel %vm1748_vm7, %v4445_v3, %v5185_v0  ;;  %v1749_v21 = vsel %vm1748_vm7, %v5181_v15, %v4448_v8  ;;  %v5187_v45 = vld [vmem:[#allocation34_spill] sm:$0xff] }
 0x2e5   : > { %v4518_v35 = vadd.f32 %v1529_v40, %v1407_v14  ;;  %v1863_v44 = vpop.permute.xlu1 %1862  ;;  %v1811_v14 = vmul.f32 %v1787_v59, %v1753_v11  ;;  %v1803_v61 = vmul.f32 %v1779_v33, %v1752_v5  ;;  %v1812_v7 = vmul.f32 %v1788_v36, %v1750_v49  ;;  %v1781_v59 = vld [vmem:[#allocation2 + $0x578] sm:$0xff]  ;;  %v5186_v11 = vld [vmem:[#allocation29_spill] sm:$0xff]  ;;  %v1790_v49 = vld [vmem:[#allocation2 + $0x5c0] sm:$0xff] }
 0x2e6   : > { %v4525_v2 = vpop.permute.xlu0 %1856  ;;  %v1770_v37 = vsel %vm1748_vm7, %v4448_v8, %v5186_v11  ;;  %v1465_v60 = vsel %vm1456_vm8, %v5187_v45, %v4454_v26  ;;  %v1813_v5 = vmul.f32 %v1789_v42, %v1771_v54  ;;  %v5189_v8 = vld [vmem:[#allocation52_spill] sm:$0xff]  ;;  %v1925_v36 = vld [vmem:[#allocation2 + $0x628] sm:$0xff] }
 0x2e7   : > { %v1912_v32 = vsel %vm1894_vm9, %v4525_v2, %v1863_v44  ;;  %v1835_v51 = vadd.f32 %v1811_v14, %v1689_v52  ;;  %v1827_v3 = vadd.f32 %v1803_v61, %v4468_v34  ;;  %v1804_v14 = vmul.f32 %v1780_v43, %v1749_v21 }
 0x2e8   : > { %v1961_v48 = vmul.f32 %v1937_v27, %v1912_v32  ;;  %v1924_v27 = vld [vmem:[#allocation2 + $0x620] sm:$0xff]  ;;  %v1805_v52 = vmul.f32 %v1781_v59, %v1770_v37  ;;  %v1769_v61 = vsel %vm1748_vm7, %v4463_v1, %v4355_v62  ;;  %v1926_v37 = vld [vmem:[#allocation2 + $0x630] sm:$0xff] }
 0x2e9   : > { %v4583_v62 = vld [vmem:[%s4744_s5] sm:$0xf] }
 0x2ea   : > { %v4537_v41 = vpop.permute.xlu1 %1874  ;;  %v1985_v20 = vadd.f32 %v1961_v48, %v1839_v18  ;;  %v1933_v48 = vld [vmem:[#allocation2 + $0x668] sm:$0xff] }
 0x2eb   : > { %v1869_v57 = vpop.permute.xlu0 %1868 }
 0x2ec   : > { %v1906_v4 = vsel %vm1894_vm9, %v1869_v57, %v4537_v41  ;;  %v1909_v46 = vsel %vm1894_vm9, %v1863_v44, %v1869_v57  ;;  %v2009_v19 = vmax.f32 %v1985_v20, 0.0 }
 0x2ed   : > { %v1962_v31 = vmul.f32 %v1938_v39, %v1909_v46  ;;  %v1963_v40 = vmul.f32 %v1939_v63, %v1906_v4  ;;  %v1837_v46 = vadd.f32 %v1813_v5, %v1691_v16  ;;  %v1648_v5 = vld [vmem:[#allocation2 + $0x520] sm:$0xff] }
 0x2ee   : > { %v1879_v44 = vpop.permute.xlu1 %1878  ;;  %v2033_v15 = vmin.f32 %v2009_v19, 6.0  ;;  %v1814_v19 = vmul.f32 %v1790_v49, %v1769_v61  ;;  %v5194_v61 = vld [vmem:[#allocation62_spill] sm:$0xff] }
 0x2ef   : > { %v1986_v9 = vadd.f32 %v1962_v31, %v1840_v47  ;;  %v1987_v50 = vadd.f32 %v1963_v40, %v1841_v10  ;;  %v1902_v34 = vsel %vm1894_vm9, %v5188_v25, %v1879_v44  ;;  %v1877_v33 = vpop.permute.xlu0 %1876  ;;  %v1836_v47 = vadd.f32 %v1812_v7, %v1690_v24  ;;  %v1934_v40 = vld [vmem:[#allocation2 + $0x670] sm:$0xff] }
 0x2f0   : > { %v1956_v32 = vmul.f32 %v1932_v38, %v1902_v34  ;;  %v1901_v30 = vsel %vm1894_vm9, %v5189_v8, %v1877_v33  ;;  %2055 = vmatprep.subr.mxu0 %v2033_v15  ;;  %v1526_v10 = vmul.f32 %v1502_v53, %v1465_v60  ;;  %v1935_v38 = vld [vmem:[#allocation2 + $0x678] sm:$0xff]  ;;  %v5191_v25 = vmov 0.0   ;;  %v5192_v34 = vld [vmem:[#allocation56_spill] sm:$0xff] }
 0x2f1   : > { %v2010_v13 = vmax.f32 %v1986_v9, 0.0  ;;  %v1948_v18 = vmul.f32 %v1924_v27, %v1901_v30  ;;  %v2011_v29 = vmax.f32 %v1987_v50, 0.0 }
 0x2f2   : > { %v1980_v39 = vadd.f32 %v1956_v32, %v1834_v55  ;;  %v1885_v63 = vpop.permute.xlu1 %1884  ;;  %v1828_v55 = vadd.f32 %v1804_v14, %v4527_v56  ;;  %v1550_v16 = vadd.f32 %v1526_v10, %v4461_v22  ;;  %v1927_v22 = vld [vmem:[#allocation2 + $0x638] sm:$0xff] }
 0x2f3   : > { %v2034_v20 = vmin.f32 %v2010_v13, 6.0  ;;  %v1972_v57 = vadd.f32 %v1948_v18, %v1826_v12  ;;  %v1899_v0 = vsel %vm1894_vm9, %v1879_v44, %v1885_v63  ;;  %v1883_v54 = vpop.permute.xlu0 %1882  ;;  %v2035_v4 = vmin.f32 %v2011_v29, 6.0  ;;  %v5193_v18 = vld [vmem:[#allocation44_spill] sm:$0xff] }
 0x2f4   : > { %v2004_v42 = vmax.f32 %v1980_v39, 0.0  ;;  %v1957_v24 = vmul.f32 %v1933_v48, %v1899_v0  ;;  %v1898_v43 = vsel %vm1894_vm9, %v1877_v33, %v1883_v54  ;;  %v1829_v12 = vadd.f32 %v1805_v52, %v4529_v23  ;;  %v5190_v23 = vld [vmem:[#allocation51_spill] sm:$0xff]  ;;  %v1936_v0 = vld [vmem:[#allocation2 + $0x680] sm:$0xff] }
 0x2f5   : > { %v1996_v21 = vmax.f32 %v1972_v57, 0.0  ;;  %v1949_v31 = vmul.f32 %v1925_v36, %v1898_v43  ;;  %2126 = vmatprep.subr.mxu1 %v2035_v4  ;;  %v1838_v48 = vadd.f32 %v1814_v19, %v5193_v18  ;;  %v1358_v43 = vld [vmem:[#allocation2 + $0x3b0] sm:$0xff] }
 0x2f6   : > { %v4588_v7 = vmin.f32 %v2004_v42, 6.0  ;;  %v1981_v59 = vadd.f32 %v1957_v24, %v1835_v51  ;;  %2127 = vmatpush1.msra.mxu1 %v2034_v20  ;;  %v1891_v11 = vpop.permute.xlu1 %1890  ;;  %v1357_v24 = vld [vmem:[#allocation2 + $0x3a8] sm:$0xff]  ;;  %v1504_v19 = vld [vmem:[#allocation2 + $0x470] sm:$0xff] }
 0x2f7   : > { %v4590_v45 = vmin.f32 %v1996_v21, 6.0  ;;  %v1973_v60 = vadd.f32 %v1949_v31, %v1827_v3  ;;  %v1896_v56 = vsel %vm1894_vm9, %v1885_v63, %v1891_v11  ;;  %v1917_v44 = vsel %vm1894_vm9, %v1891_v11, %v5190_v23  ;;  %2483 = vmatmul.mubr.msk.f32.vlgmr.msra.gmra.mrb[12].mxu1 %vm2047_vm10, %v4583_v62  ;;  %v1889_v27 = vpop.permute.xlu0 %1888  ;;  %v5195_v11 = vld [vmem:[#allocation42_spill] sm:$0xff] }
 0x2f8   : > { %v2005_v53 = vmax.f32 %v1981_v59, 0.0  ;;  %v1958_v51 = vmul.f32 %v1934_v40, %v1896_v56  ;;  %v1959_v9 = vmul.f32 %v1935_v38, %v1917_v44  ;;  %v1895_v50 = vsel %vm1894_vm9, %v1883_v54, %v1889_v27  ;;  %2328 = vmatprep.mubr.f32.mxu1 %v5191_v25  ;;  %v1503_v38 = vld [vmem:[#allocation2 + $0x468] sm:$0xff]  ;;  %v5196_v44 = vld [vmem:[#allocation71_spill] sm:$0xff]  ;;  %v1650_v18 = vld [vmem:[#allocation2 + $0x530] sm:$0xff] }
 0x2f9   : > { %v1997_v3 = vmax.f32 %v1973_v60, 0.0  ;;  %v1916_v33 = vsel %vm1894_vm9, %v1889_v27, %v5192_v34  ;;  %v1950_v15 = vmul.f32 %v1926_v37, %v1895_v50  ;;  %v2503_v14 = vpack.c.bf16 %v4588_v7, %v4590_v45  ;;  %v1794_v34 = vld [vmem:[#allocation2 + $0x5e0] sm:$0xff] }
 0x2fa   : > { %v4607_v32 = vmin.f32 %v2005_v53, 6.0  ;;  %v1982_v8 = vadd.f32 %v1958_v51, %v1836_v47  ;;  %v1983_v30 = vadd.f32 %v1959_v9, %v1837_v46  ;;  %v1951_v52 = vmul.f32 %v1927_v22, %v1916_v33  ;;  %v1589_v13 = vpop.permute.xlu1 %1588  ;;  %v1651_v46 = vld [vmem:[#allocation2 + $0x538] sm:$0xff]  ;;  %v5198_v33 = vld [vmem:[#allocation58_spill] sm:$0xff] }
 0x2fb   : > { %v4610_v29 = vmin.f32 %v1997_v3, 6.0  ;;  %v1974_v10 = vadd.f32 %v1950_v15, %v1828_v55  ;;  %v1611_v39 = vsel %vm1602_vm6, %v5194_v61, %v1589_v13  ;;  %v4615_v63 = vpop.permute.xlu0 %1850  ;;  %v1459_v47 = vsel %vm1456_vm8, %v4504_v58, %v4486_v28 }
 0x2fc   : > { %v2006_v36 = vmax.f32 %v1982_v8, 0.0  ;;  %v2007_v49 = vmax.f32 %v1983_v30, 0.0  ;;  %v1975_v20 = vadd.f32 %v1951_v52, %v1829_v12  ;;  %v1672_v57 = vmul.f32 %v1648_v5, %v1611_v39  ;;  %v5199_v5 = vld [vmem:[#allocation40_spill] sm:$0xff]  ;;  %v1649_v52 = vld [vmem:[#allocation2 + $0x528] sm:$0xff] }
 0x2fd   : > { %v1998_v54 = vmax.f32 %v1974_v10, 0.0  ;;  %v1915_v4 = vsel %vm1894_vm9, %v4615_v63, %v4525_v2  ;;  %v2501_v42 = vpack.c.bf16 %v4607_v32, %v4610_v29  ;;  %v1462_v28 = vsel %vm1456_vm8, %v4454_v26, %v4504_v58  ;;  %v1795_v10 = vld [vmem:[#allocation2 + $0x5e8] sm:$0xff] }
 0x2fe   : > { %v2030_v55 = vmin.f32 %v2006_v36, 6.0  ;;  %v2031_v12 = vmin.f32 %v2007_v49, 6.0  ;;  %v1999_v21 = vmax.f32 %v1975_v20, 0.0  ;;  %v1696_v31 = vadd.f32 %v1672_v57, %v1550_v16  ;;  %v1601_v40 = vpop.permute.xlu1 %1600  ;;  %v5197_v16 = vld [vmem:[#allocation68_spill] sm:$0xff] }
 0x2ff   : > { %v2022_v59 = vmin.f32 %v1998_v54, 6.0  ;;  %v1960_v2 = vmul.f32 %v1936_v0, %v1915_v4  ;;  %v1626_v37 = vsel %vm1602_vm6, %v1601_v40, %v5195_v11  ;;  %v1595_v60 = vpop.permute.xlu0 %1594  ;;  %v1381_v22 = vmul.f32 %v1357_v24, %v5196_v44  ;;  %v1940_v49 = vld [vmem:[#allocation2 + $0x6a0] sm:$0xff]  ;;  %v1797_v54 = vld [vmem:[#allocation2 + $0x5f8] sm:$0xff] }
 0x300   : > { %v2023_v56 = vmin.f32 %v1999_v21, 6.0  ;;  %v1675_v23 = vmul.f32 %v1651_v46, %v1626_v37  ;;  %v1382_v27 = vmul.f32 %v1358_v43, %v5197_v16  ;;  %v1527_v9 = vmul.f32 %v1503_v38, %v1462_v28  ;;  %v1942_v28 = vld [vmem:[#allocation2 + $0x6b0] sm:$0xff] }
 0x301   : > { %v1984_v53 = vadd.f32 %v1960_v2, %v1838_v48  ;;  %v2507_v51 = vpack.c.bf16 %v2030_v55, %v2022_v59  ;;  %v1528_v50 = vmul.f32 %v1504_v19, %v1459_v47  ;;  %v1405_v15 = vadd.f32 %v1381_v22, %v5198_v33  ;;  %v1796_v47 = vld [vmem:[#allocation2 + $0x5f0] sm:$0xff] }
 0x302   : > { %v1699_v3 = vadd.f32 %v1675_v23, %v4518_v35  ;;  %v1741_v26 = vpop.permute.xlu1 %1740  ;;  %v2505_v58 = vpack.c.bf16 %v2031_v12, %v2023_v56  ;;  %v1406_v32 = vadd.f32 %v1382_v27, %v5199_v5  ;;  %v1605_v29 = vsel %vm1602_vm6, %v1595_v60, %v1601_v40  ;;  %v2577_v5 = vld [vmem:[%s2821_s19 + $0x8] sm:$0xff] }
 0x303   : > { %v2008_v8 = vmax.f32 %v1984_v53, 0.0  ;;  %v1735_v30 = vpop.permute.xlu0 %1734  ;;  %v1608_v48 = vsel %vm1602_vm6, %v1589_v13, %v1595_v60  ;;  %v1551_v20 = vadd.f32 %v1527_v9, %v1405_v15  ;;  %v1674_v13 = vmul.f32 %v1650_v18, %v1605_v29 }
 0x304   : > { %2506 = vmatprep.subr.bf16.mxu1 %v2505_v58  ;;  %v1754_v35 = vsel %vm1748_vm7, %v1735_v30, %v1741_v26  ;;  %v1757_v61 = vsel %vm1748_vm7, %v4371_v17, %v1735_v30  ;;  %v1552_v57 = vadd.f32 %v1528_v50, %v1406_v32  ;;  %v1673_v4 = vmul.f32 %v1649_v52, %v1608_v48 }
 0x305   : > { %v2032_v39 = vmin.f32 %v2008_v8, 6.0  ;;  %v1818_v36 = vmul.f32 %v1794_v34, %v1757_v61  ;;  %2508 = vmatpush1.bf16.msra.mxu1 %v2507_v51  ;;  %v1819_v46 = vmul.f32 %v1795_v10, %v1754_v35  ;;  %v5200_v8 = vld [vmem:[#allocation9_spill] sm:$0xff]  ;;  %v2578_v10 = vld [vmem:[%s2821_s19] sm:$0xff] }
 0x306   : > { %v1881_v0 = vpop.permute.xlu1 %1880  ;;  %v1697_v59 = vadd.f32 %v1673_v4, %v1551_v20  ;;  %v1698_v2 = vadd.f32 %v1674_v13, %v1552_v57  ;;  %v5201_v61 = vld [vmem:[#allocation8_spill] sm:$0xff]  ;;  %v2579_v13 = vld [vmem:[%s2821_s19 + $0x18] sm:$0xff] }
 0x307   : > { %2056 = vmatpush1.msra.mxu0 %v2032_v39  ;;  %v1903_v24 = vsel %vm1894_vm9, %v4537_v41, %v1881_v0  ;;  %v1747_v43 = vpop.permute.xlu0 %1746  ;;  %v1842_v21 = vadd.f32 %v1818_v36, %v1696_v31  ;;  %v1943_v41 = vld [vmem:[#allocation2 + $0x6b8] sm:$0xff] }
 0x308   : > { %2482 = vmatmul.mubr.msk.f32.vlgmr.msra.gmra.mrb[12].mxu0 %vm2047_vm10, %v4583_v62  ;;  %2502 = vmatprep.subr.bf16.mxu0 %v2501_v42  ;;  %v1964_v17 = vmul.f32 %v1940_v49, %v1903_v24  ;;  %v1751_v55 = vsel %vm1748_vm7, %v1741_v26, %v1747_v43  ;;  %v1772_v12 = vsel %vm1748_vm7, %v1747_v43, %v4463_v1  ;;  %v1941_v42 = vld [vmem:[#allocation2 + $0x6a8] sm:$0xff]  ;;  %v2580_v43 = vld [vmem:[%s2821_s19 + $0x10] sm:$0xff]  ;;  %s2368_s19 = scalar_lea.sflag [#allocation4], %s284_s29 }
 0x309   : > { %v1820_v40 = vmul.f32 %v1796_v47, %v1751_v55  ;;  %v1821_v38 = vmul.f32 %v1797_v54, %v1772_v12  ;;  %2504 = vmatpush1.bf16.msra.mxu0 %v2503_v14  ;;  %2257 = vmatprep.mubr.f32.mxu0 %v5191_v25  ;;  %v1843_v25 = vadd.f32 %v1819_v46, %v1697_v59  ;;  %v5202_v55 = vld [vmem:[#allocation11_spill] sm:$0xff] }
 0x30a   : > { %v1893_v19 = vpop.permute.xlu1 %1892  ;;  %v1988_v11 = vadd.f32 %v1964_v17, %v1842_v21  ;;  %v5203_v21 = vld [vmem:[#allocation10_spill] sm:$0xff] }
 0x30b   : > { %v1918_v1 = vsel %vm1894_vm9, %v1893_v19, %v4615_v63  ;;  %v1887_v31 = vpop.permute.xlu0 %1886  ;;  %v1845_v37 = vadd.f32 %v1821_v38, %v1699_v3  ;;  %v1844_v14 = vadd.f32 %v1820_v40, %v1698_v2 }
 0x30c   : > { %v1967_v60 = vmul.f32 %v1943_v41, %v1918_v1  ;;  %v1897_v7 = vsel %vm1894_vm9, %v1887_v31, %v1893_v19  ;;  %v1900_v45 = vsel %vm1894_vm9, %v1881_v0, %v1887_v31  ;;  %v2012_v27 = vmax.f32 %v1988_v11, 0.0 }
 0x30d   : > { %v1965_v56 = vmul.f32 %v1941_v42, %v1900_v45  ;;  %v1966_v23 = vmul.f32 %v1942_v28, %v1897_v7 }
 0x30e   : > { %v1991_v44 = vadd.f32 %v1967_v60, %v1845_v37  ;;  %v2036_v26 = vmin.f32 %v2012_v27, 6.0 }
 0x30f   : > { %v1989_v22 = vadd.f32 %v1965_v56, %v1843_v25  ;;  %v1990_v16 = vadd.f32 %v1966_v23, %v1844_v14 }
 0x310   : > { %v2015_v53 = vmax.f32 %v1991_v44, 0.0 }
 0x311   : > { %v2014_v63 = vmax.f32 %v1990_v16, 0.0  ;;  %v2013_v51 = vmax.f32 %v1989_v22, 0.0 }
 0x312   : > { %v2039_v9 = vmin.f32 %v2015_v53, 6.0 }
 0x313   : > { %v2038_v50 = vmin.f32 %v2014_v63, 6.0  ;;  %v2037_v3 = vmin.f32 %v2013_v51, 6.0 }
 0x314   : > { %2268 = vmatprep.subr.mxu1 %v2039_v9 }
 0x315   : > { %2197 = vmatprep.subr.mxu0 %v2037_v3  ;;  %2269 = vmatpush1.msra.mxu1 %v2038_v50 }
 0x316   : > { %2198 = vmatpush1.msra.mxu0 %v2036_v26  ;;  %2485 = vmatmul.mubr.msk.f32.vlgmr.msra.gmra.mrb[14].mxu1 %vm2047_vm10, %v4583_v62 }
 0x317   : > { %2484 = vmatmul.mubr.msk.f32.vlgmr.msra.gmra.mrb[14].mxu0 %vm2047_vm10, %v4583_v62 }
 0x31c   : > { %v2045_v6 = vpop.permute.xlu0 %2044 }
 0x3ca   : > { %v2188_v58 = vpop.f32.mrb[12].mxu1 }
 0x3cb   : > { %v2189_v34 = vadd.f32 %v2188_v58, %v2045_v6  ;;  %v2190_v33 = vpop.f32.mrb[13].mxu1 }
 0x3cc   : > { %v2191_v15 = vadd.f32 %v2190_v33, %v2045_v6 }
 0x3cd   : > { %v2341_v32 = vadd.f32 %v2577_v5, %v2189_v34 }
 0x3ce   : > { %v2342_v30 = vadd.f32 %v2191_v15, %v5200_v8 }
 0x3d0   : > { %v2356_v52 = vcombine.low %v2341_v32, %v2342_v30 }
 0x3d2   : > { %2364 = vst [vmem:[%s4678_s9 + $0x8] sm:$0xff] %v2356_v52 }
 0x3db   : > { %v2117_v62 = vpop.f32.mrb[12].mxu0 }
 0x3dc   : > { %v2118_v18 = vadd.f32 %v2117_v62, %v2045_v6  ;;  %v2119_v29 = vpop.f32.mrb[13].mxu0 }
 0x3dd   : > { %v2120_v48 = vadd.f32 %v2119_v29, %v2045_v6 }
 0x3de   : > { %v2339_v35 = vadd.f32 %v2578_v10, %v2118_v18 }
 0x3df   : > { %v2340_v39 = vadd.f32 %v2120_v48, %v5201_v61 }
 0x3e1   : > { %v2355_v36 = vcombine.low %v2339_v35, %v2340_v39 }
 0x3e3   : > { %2363 = vst [vmem:[%s4678_s9] sm:$0xff] %v2355_v36 }
 0x3e9   : > { %v2330_v49 = vpop.f32.mrb[14].mxu1 }
 0x3ea   : > { %v2259_v20 = vpop.f32.mrb[14].mxu0  ;;  %v2331_v57 = vadd.f32 %v2330_v49, %v2045_v6  ;;  %v2332_v0 = vpop.f32.mrb[15].mxu1 }
 0x3eb   : > { %v2260_v47 = vadd.f32 %v2259_v20, %v2045_v6  ;;  %v2261_v54 = vpop.f32.mrb[15].mxu0  ;;  %v2333_v4 = vadd.f32 %v2332_v0, %v2045_v6 }
 0x3ec   : > { %v2345_v46 = vadd.f32 %v2579_v13, %v2331_v57  ;;  %v2262_v24 = vadd.f32 %v2261_v54, %v2045_v6 }
 0x3ed   : > { %v2343_v17 = vadd.f32 %v2580_v43, %v2260_v47  ;;  %v2346_v12 = vadd.f32 %v2333_v4, %v5202_v55 }
 0x3ee   : > { %v2344_v40 = vadd.f32 %v2262_v24, %v5203_v21 }
 0x3ef   : > { %v2358_v38 = vcombine.low %v2345_v46, %v2346_v12 }
 0x3f0   : > { %v2357_v41 = vcombine.low %v2343_v17, %v2344_v40 }
 0x3f1   : > { %2366 = vst [vmem:[%s4678_s9 + $0x18] sm:$0xff] %v2358_v38 }
 0x3f2   : > { %2365 = vst [vmem:[%s4678_s9 + $0x10] sm:$0xff] %v2357_v41 }
 0x3f3   : > { %2622 = shalt.err (!%p2619_p7)
}
 0x3f4   : > { %s2623_s22 = scalar_lea.hbm %s4693_s15, 512  ;;  %s2627_s8 = scalar_lea.hbm %s4746_s7, 1024 }
 0x3f5   : > { %p2624_p8 = scmp.ne.s32.totalorder %s4693_s15, %s2623_s22  ;;  %p2628_p1 = scmp.lt.u32.totalorder %s4693_s15, %s4746_s7 }
 0x3f6   : > { %p2629_p0 = scmp.lt.u32.totalorder %s2627_s8, %s2623_s22  ;;  %p2631_p6 = scmp.lt.u32.totalorder %s2623_s22, %s4693_s15 }
 0x3f7   : > { %p2625_p11 = pnand %p2624_p8, %p5204_p9 }
 0x3f8   : > { %p2630_p5 = por %p2629_p0, %p2628_p1 }
 0x3f9   : > { %p2626_p13 = pneg %p2625_p11 }
 0x3fa   : > { %p2632_p10 = por %p2631_p6, %p2630_p5 }
 0x3fc   : > { %p2633_p12 = pnand %p2632_p10, %p2626_p13 }
 0x3fe   : > { %2636 = shalt.err (!%p2633_p12)
}
 0x3ff   : > { %2513 = dma.vmem_to_hbm [thread:$0]  (%p5204_p9), %s4695_s17, 512, %s4693_s15, %s2368_s19  }
 0x400 PF: > { %p2525_p2 = scmp.ge.s32.totalorder %s2675_s27, 2  ;;  %s2394_s16 = sand.u32 1, %s2663_s24  }
 0x401   : > { %p5205_p3 = scmp.ne.s32.totalorder %s4880_s12, 0  ;;  %s2395_s13 = scalar_lea.sflag [#allocation4], %s2394_s16 }
 0x403   : > { %p2520_p4 = pnand %p2525_p2, %p5205_p3 }
 0x405   : > { %2658 = dma.done.wait (!%p2520_p4), %s2395_s13, 512  }
 0x406   : > { %2660 = vsyncadd (!%p2520_p4), %s2395_s13, 4294966784  ;;  %p18_p7 = scmp.ge.s32.totalorder %s2756_s30, 4   ;;  %s5206_s24 = smov %s2667_s25 }
 0x407   : > { %s5207_s25 = smov %s2671_s26  ;;  %s5208_s26 = smov %s2767_s10 }
 0x408   : > { %s5209_s27 = smov %s2756_s30  ;;  %20 = sbr.rel (!%p18_p7) target bundleno = 4 (0x4), region = 96 }
 0x40f   :  { %2400 = vsyncpa [#allocation3], 1 }
 0x410   :  { %2402 = vsyncpa [#allocation3 + $0x1], 1 }
 0x411   :  { %2403 = vsyncpa [#allocation4], 1 }
 0x412   :  { %2405 = vsyncpa [#allocation4 + $0x1], 1 }

</bundles_post_ra>
